<compile_context>
chip_gen: v7x
topology: tpu7x:2x2x1
jax: 0.10.0
libtpu: 0.0.40
codegen_flags: <defaults>
</compile_context>

<pallas_src>
import functools

import jax
import jax.numpy as jnp
import numpy as np
from jax import lax
from jax.experimental import pallas as pl
from jax.experimental.pallas import tpu as pltpu


def _ista_kernel(lr_ref, c_ref, g_ref, h_ref, *, lmbd, tol, n_iters, check_every):
    """Whole problem resident in VMEM (sizes here are tiny: <1 MiB total).

    lr_ref: (1,) f32 in SMEM  -- step size 0.99 / max eigenvalue of D D^T
    c_ref : (B, K) f32 in VMEM -- x @ D.T
    g_ref : (K, K) f32 in VMEM -- D @ D.T (symmetric Gram matrix)
    h_ref : (B, K) f32 output in VMEM
    """
    lr = lr_ref[0]
    c = c_ref[...]
    G = g_ref[...]
    B, K = c_ref.shape
    thr = lr * lmbd                     # soft-threshold level
    tol_sq = tol * tol                  # compare squared norms, no sqrt needed
    n_blocks = n_iters // check_every

    def ista_step(h):
        # gradient = c - h @ G   (single MXU matmul per iteration)
        grad = c - lax.dot_general(
            h, G, (((1,), (0,)), ((), ())), preferred_element_type=jnp.float32
        )
        h_new = h + lr * grad
        # soft-threshold shrink: sign(a) * max(|a| - thr, 0) == a - clip(a, -thr, thr)
        return h_new - jnp.clip(h_new, -thr, thr)

    def cond(carry):
        blk, _h, _h_prev, done = carry
        return jnp.logical_and(blk < n_blocks, done == 0)

    def body(carry):
        blk, h, _h_prev, _done = carry

        def inner(_, hp):
            h_cur, _ = hp
            return ista_step(h_cur), h_cur

        # check_every unrolled ISTA steps, then one convergence check
        # (same criterion as the reference: last single-step change per row).
        h_new, h_prev = lax.fori_loop(0, check_every, inner, (h, h), unroll=True)
        diff_sq = jnp.sum((h_new - h_prev) ** 2, axis=1, keepdims=True)
        done = (jnp.max(diff_sq) < tol_sq).astype(jnp.int32)
        return blk + 1, h_new, h_prev, done

    h0 = jnp.zeros((B, K), jnp.float32)
    _, h_final, _, _ = lax.while_loop(
        cond, body, (jnp.int32(0), h0, h0, jnp.int32(0))
    )
    h_ref[...] = h_final


def sparse_coder_forward(x, D, *, lmbd=0.1, tol=1e-6, n_iters=1000, check_every=8):
    """Equivalent of SparseCoder.forward(x) with lr computed as in _init_lr()."""
    x = x.astype(jnp.float32)
    D = D.astype(jnp.float32)
    batch, _input_dim = x.shape
    dict_size = D.shape[0]

    # _init_lr(): lr = 0.99 / max eigenvalue of D D^T (plain JAX glue; Gram
    # matrix is reused inside the kernel).  eigvalsh has no Pallas equivalent.
    G = D @ D.T                                           # (K, K)
    max_e = jnp.max(jnp.linalg.eigvalsh(G))
    lr = (0.99 / max_e).astype(jnp.float32).reshape((1,))
    c = x @ D.T                                           # (B, K)

    # Pad batch rows to a multiple of 8 for clean sublane layout / MXU fill.
    # Padded rows have c == 0 so h stays exactly 0 and never affects the
    # convergence max; they are stripped before returning.
    pad_b = (-batch) % 8
    if pad_b:
        c = jnp.pad(c, ((0, pad_b), (0, 0)))
    b_padded = batch + pad_b

    # Amortised convergence check period (must divide n_iters so the total
    # iteration cap matches the reference exactly).
    check_every = max(1, int(check_every))
    while n_iters % check_every != 0:
        check_every -= 1

    kernel = functools.partial(
        _ista_kernel,
        lmbd=float(lmbd),
        tol=float(tol),
        n_iters=int(n_iters),
        check_every=int(check_every),
    )
    flops = 2 * int(n_iters) * b_padded * dict_size * dict_size
    bytes_accessed = 4 * (2 * b_padded * dict_size + dict_size * dict_size)

    h = pl.pallas_call(
        kernel,
        out_shape=jax.ShapeDtypeStruct((b_padded, dict_size), jnp.float32),
        in_specs=[
            pl.BlockSpec(memory_space=pltpu.MemorySpace.SMEM),   # lr scalar
            pl.BlockSpec(memory_space=pltpu.MemorySpace.VMEM),   # c = x @ D.T
            pl.BlockSpec(memory_space=pltpu.MemorySpace.VMEM),   # G = D @ D.T
        ],
        out_specs=pl.BlockSpec(memory_space=pltpu.MemorySpace.VMEM),
        cost_estimate=pl.CostEstimate(
            flops=flops, transcendentals=0, bytes_accessed=bytes_accessed
        ),
    )(lr, c, G)
    return h[:batch]


def _reference_ista(c, G, lr, lmbd, tol, n_iters):
    """Pure-JAX reference (checks convergence every iteration, like PyTorch)."""
    thr = lr * lmbd

    def cond(carry):
        i, _h, done = carry
        return jnp.logical_and(i < n_iters, jnp.logical_not(done))

    def body(carry):
        i, h, _ = carry
        grad = c - h @ G
        h_new = h + lr * grad
        h_new = jnp.sign(h_new) * jnp.maximum(jnp.abs(h_new) - thr, 0.0)
        done = jnp.max(jnp.sum((h_new - h) ** 2, axis=1)) < tol * tol
        return i + 1, h_new, done

    h0 = jnp.zeros_like(c)
    return lax.while_loop(cond, body, (jnp.int32(0), h0, jnp.array(False)))[1]


if __name__ == "__main__":
    key = jax.random.PRNGKey(0)
    kd, kx = jax.random.split(key)

    # Small but MXU-friendly sizes: batch rows fill the systolic M dimension.
    batch, input_dim, dict_size = 128, 128, 256
    lmbd, tol, n_iters = 0.1, 1e-6, 1000

    # Deterministic parameter init mirroring __init__ / _init_dict():
    # D ~ randn(dict_size, input_dim), rows normalized to unit L2 norm.
    D = jax.random.normal(kd, (dict_size, input_dim), dtype=jnp.float32)
    D = D / jnp.linalg.norm(D, axis=1, keepdims=True)
    x = jax.random.normal(kx, (batch, input_dim), dtype=jnp.float32)

    h = sparse_coder_forward(x, D, lmbd=lmbd, tol=tol, n_iters=n_iters)
    h = jax.block_until_ready(h)

    # Sanity check against a pure-JAX ISTA (loose tol: early-exit schedule may
    # differ by a few sub-tol steps from the per-iteration check).
    G = D @ D.T
    lr = 0.99 / jnp.max(jnp.linalg.eigvalsh(G))
    h_ref = jax.block_until_ready(_reference_ista(x @ D.T, G, lr, lmbd, tol, n_iters))
    assert h.shape == (batch, dict_size)
    assert np.all(np.isfinite(np.asarray(h)))
    np.testing.assert_allclose(np.asarray(h), np.asarray(h_ref), atol=1e-3)

    print("KERNEL_OK")
</pallas_src>

<mosaic_0001>
module attributes {stable_mosaic.version = 11 : i64} {
  func.func @_ista_kernel(%arg0: memref<1xf32, #tpu.memory_space<smem>>, %arg1: memref<128x256xf32, #tpu.memory_space<vmem>>, %arg2: memref<256x256xf32, #tpu.memory_space<vmem>>, %arg3: memref<128x256xf32, #tpu.memory_space<vmem>>) attributes {dimension_semantics = [], scalar_prefetch = 0 : i64, scratch_operands = 0 : i64, tpu.core_type = #tpu.core_type<tc>} {
    %c0 = arith.constant 0 : index
    %0 = memref.load %arg0[%c0] : memref<1xf32, #tpu.memory_space<smem>>
    %c0_0 = arith.constant 0 : index
    %c0_1 = arith.constant 0 : index
    %1 = vector.load %arg1[%c0_0, %c0_1] : memref<128x256xf32, #tpu.memory_space<vmem>>, vector<128x256xf32>
    %c0_2 = arith.constant 0 : index
    %c0_3 = arith.constant 0 : index
    %2 = vector.load %arg2[%c0_2, %c0_3] : memref<256x256xf32, #tpu.memory_space<vmem>>, vector<256x256xf32>
    %cst = arith.constant 1.000000e-01 : f32
    %3 = arith.mulf %0, %cst : f32
    %cst_4 = arith.constant 0.000000e+00 : f32
    %4 = vector.broadcast %cst_4 : f32 to vector<128x256xf32>
    %c0_i32 = arith.constant 0 : i32
    %c0_i32_5 = arith.constant 0 : i32
    %5:4 = scf.while (%arg4 = %c0_i32, %arg5 = %4, %arg6 = %4, %arg7 = %c0_i32_5) : (i32, vector<128x256xf32>, vector<128x256xf32>, i32) -> (i32, vector<128x256xf32>, vector<128x256xf32>, i32) {
      %c125_i32 = arith.constant 125 : i32
      %7 = arith.cmpi slt, %arg4, %c125_i32 : i32
      %c0_i32_8 = arith.constant 0 : i32
      %8 = arith.cmpi eq, %arg7, %c0_i32_8 : i32
      %9 = arith.andi %7, %8 : i1
      scf.condition(%9) %arg4, %arg5, %arg6, %arg7 : i32, vector<128x256xf32>, vector<128x256xf32>, i32
    } do {
    ^bb0(%arg4: i32, %arg5: vector<128x256xf32>, %arg6: vector<128x256xf32>, %arg7: i32):
      %c0_i32_8 = arith.constant 0 : i32
      %cst_9 = arith.constant dense<0.000000e+00> : vector<128x256xf32>
      %7 = tpu.matmul %arg5, %2, %cst_9 {dimension_numbers = #tpu.dot_dimension_numbers<[1], [0], [0], [1], [0, 0, 1, 1], [], []>} : vector<128x256xf32>, vector<256x256xf32>, vector<128x256xf32> -> vector<128x256xf32>
      %8 = arith.subf %1, %7 : vector<128x256xf32>
      %9 = vector.broadcast %0 : f32 to vector<128x256xf32>
      %10 = arith.mulf %9, %8 : vector<128x256xf32>
      %11 = arith.addf %arg5, %10 : vector<128x256xf32>
      %cst_10 = arith.constant 0.000000e+00 : f32
      %12 = arith.subf %cst_10, %3 : f32
      %13 = vector.broadcast %12 : f32 to vector<128x256xf32>
      %14 = arith.maximumf %13, %11 : vector<128x256xf32>
      %15 = vector.broadcast %3 : f32 to vector<128x256xf32>
      %16 = arith.minimumf %15, %14 : vector<128x256xf32>
      %17 = arith.subf %11, %16 : vector<128x256xf32>
      %c1_i32 = arith.constant 1 : i32
      %cst_11 = arith.constant dense<0.000000e+00> : vector<128x256xf32>
      %18 = tpu.matmul %17, %2, %cst_11 {dimension_numbers = #tpu.dot_dimension_numbers<[1], [0], [0], [1], [0, 0, 1, 1], [], []>} : vector<128x256xf32>, vector<256x256xf32>, vector<128x256xf32> -> vector<128x256xf32>
      %19 = arith.subf %1, %18 : vector<128x256xf32>
      %20 = vector.broadcast %0 : f32 to vector<128x256xf32>
      %21 = arith.mulf %20, %19 : vector<128x256xf32>
      %22 = arith.addf %17, %21 : vector<128x256xf32>
      %cst_12 = arith.constant 0.000000e+00 : f32
      %23 = arith.subf %cst_12, %3 : f32
      %24 = vector.broadcast %23 : f32 to vector<128x256xf32>
      %25 = arith.maximumf %24, %22 : vector<128x256xf32>
      %26 = vector.broadcast %3 : f32 to vector<128x256xf32>
      %27 = arith.minimumf %26, %25 : vector<128x256xf32>
      %28 = arith.subf %22, %27 : vector<128x256xf32>
      %c2_i32 = arith.constant 2 : i32
      %cst_13 = arith.constant dense<0.000000e+00> : vector<128x256xf32>
      %29 = tpu.matmul %28, %2, %cst_13 {dimension_numbers = #tpu.dot_dimension_numbers<[1], [0], [0], [1], [0, 0, 1, 1], [], []>} : vector<128x256xf32>, vector<256x256xf32>, vector<128x256xf32> -> vector<128x256xf32>
      %30 = arith.subf %1, %29 : vector<128x256xf32>
      %31 = vector.broadcast %0 : f32 to vector<128x256xf32>
      %32 = arith.mulf %31, %30 : vector<128x256xf32>
      %33 = arith.addf %28, %32 : vector<128x256xf32>
      %cst_14 = arith.constant 0.000000e+00 : f32
      %34 = arith.subf %cst_14, %3 : f32
      %35 = vector.broadcast %34 : f32 to vector<128x256xf32>
      %36 = arith.maximumf %35, %33 : vector<128x256xf32>
      %37 = vector.broadcast %3 : f32 to vector<128x256xf32>
      %38 = arith.minimumf %37, %36 : vector<128x256xf32>
      %39 = arith.subf %33, %38 : vector<128x256xf32>
      %c3_i32 = arith.constant 3 : i32
      %cst_15 = arith.constant dense<0.000000e+00> : vector<128x256xf32>
      %40 = tpu.matmul %39, %2, %cst_15 {dimension_numbers = #tpu.dot_dimension_numbers<[1], [0], [0], [1], [0, 0, 1, 1], [], []>} : vector<128x256xf32>, vector<256x256xf32>, vector<128x256xf32> -> vector<128x256xf32>
      %41 = arith.subf %1, %40 : vector<128x256xf32>
      %42 = vector.broadcast %0 : f32 to vector<128x256xf32>
      %43 = arith.mulf %42, %41 : vector<128x256xf32>
      %44 = arith.addf %39, %43 : vector<128x256xf32>
      %cst_16 = arith.constant 0.000000e+00 : f32
      %45 = arith.subf %cst_16, %3 : f32
      %46 = vector.broadcast %45 : f32 to vector<128x256xf32>
      %47 = arith.maximumf %46, %44 : vector<128x256xf32>
      %48 = vector.broadcast %3 : f32 to vector<128x256xf32>
      %49 = arith.minimumf %48, %47 : vector<128x256xf32>
      %50 = arith.subf %44, %49 : vector<128x256xf32>
      %c4_i32 = arith.constant 4 : i32
      %cst_17 = arith.constant dense<0.000000e+00> : vector<128x256xf32>
      %51 = tpu.matmul %50, %2, %cst_17 {dimension_numbers = #tpu.dot_dimension_numbers<[1], [0], [0], [1], [0, 0, 1, 1], [], []>} : vector<128x256xf32>, vector<256x256xf32>, vector<128x256xf32> -> vector<128x256xf32>
      %52 = arith.subf %1, %51 : vector<128x256xf32>
      %53 = vector.broadcast %0 : f32 to vector<128x256xf32>
      %54 = arith.mulf %53, %52 : vector<128x256xf32>
      %55 = arith.addf %50, %54 : vector<128x256xf32>
      %cst_18 = arith.constant 0.000000e+00 : f32
      %56 = arith.subf %cst_18, %3 : f32
      %57 = vector.broadcast %56 : f32 to vector<128x256xf32>
      %58 = arith.maximumf %57, %55 : vector<128x256xf32>
      %59 = vector.broadcast %3 : f32 to vector<128x256xf32>
      %60 = arith.minimumf %59, %58 : vector<128x256xf32>
      %61 = arith.subf %55, %60 : vector<128x256xf32>
      %c5_i32 = arith.constant 5 : i32
      %cst_19 = arith.constant dense<0.000000e+00> : vector<128x256xf32>
      %62 = tpu.matmul %61, %2, %cst_19 {dimension_numbers = #tpu.dot_dimension_numbers<[1], [0], [0], [1], [0, 0, 1, 1], [], []>} : vector<128x256xf32>, vector<256x256xf32>, vector<128x256xf32> -> vector<128x256xf32>
      %63 = arith.subf %1, %62 : vector<128x256xf32>
      %64 = vector.broadcast %0 : f32 to vector<128x256xf32>
      %65 = arith.mulf %64, %63 : vector<128x256xf32>
      %66 = arith.addf %61, %65 : vector<128x256xf32>
      %cst_20 = arith.constant 0.000000e+00 : f32
      %67 = arith.subf %cst_20, %3 : f32
      %68 = vector.broadcast %67 : f32 to vector<128x256xf32>
      %69 = arith.maximumf %68, %66 : vector<128x256xf32>
      %70 = vector.broadcast %3 : f32 to vector<128x256xf32>
      %71 = arith.minimumf %70, %69 : vector<128x256xf32>
      %72 = arith.subf %66, %71 : vector<128x256xf32>
      %c6_i32 = arith.constant 6 : i32
      %cst_21 = arith.constant dense<0.000000e+00> : vector<128x256xf32>
      %73 = tpu.matmul %72, %2, %cst_21 {dimension_numbers = #tpu.dot_dimension_numbers<[1], [0], [0], [1], [0, 0, 1, 1], [], []>} : vector<128x256xf32>, vector<256x256xf32>, vector<128x256xf32> -> vector<128x256xf32>
      %74 = arith.subf %1, %73 : vector<128x256xf32>
      %75 = vector.broadcast %0 : f32 to vector<128x256xf32>
      %76 = arith.mulf %75, %74 : vector<128x256xf32>
      %77 = arith.addf %72, %76 : vector<128x256xf32>
      %cst_22 = arith.constant 0.000000e+00 : f32
      %78 = arith.subf %cst_22, %3 : f32
      %79 = vector.broadcast %78 : f32 to vector<128x256xf32>
      %80 = arith.maximumf %79, %77 : vector<128x256xf32>
      %81 = vector.broadcast %3 : f32 to vector<128x256xf32>
      %82 = arith.minimumf %81, %80 : vector<128x256xf32>
      %83 = arith.subf %77, %82 : vector<128x256xf32>
      %c7_i32 = arith.constant 7 : i32
      %cst_23 = arith.constant dense<0.000000e+00> : vector<128x256xf32>
      %84 = tpu.matmul %83, %2, %cst_23 {dimension_numbers = #tpu.dot_dimension_numbers<[1], [0], [0], [1], [0, 0, 1, 1], [], []>} : vector<128x256xf32>, vector<256x256xf32>, vector<128x256xf32> -> vector<128x256xf32>
      %85 = arith.subf %1, %84 : vector<128x256xf32>
      %86 = vector.broadcast %0 : f32 to vector<128x256xf32>
      %87 = arith.mulf %86, %85 : vector<128x256xf32>
      %88 = arith.addf %83, %87 : vector<128x256xf32>
      %cst_24 = arith.constant 0.000000e+00 : f32
      %89 = arith.subf %cst_24, %3 : f32
      %90 = vector.broadcast %89 : f32 to vector<128x256xf32>
      %91 = arith.maximumf %90, %88 : vector<128x256xf32>
      %92 = vector.broadcast %3 : f32 to vector<128x256xf32>
      %93 = arith.minimumf %92, %91 : vector<128x256xf32>
      %94 = arith.subf %88, %93 : vector<128x256xf32>
      %c8_i32 = arith.constant 8 : i32
      %95 = arith.subf %94, %83 : vector<128x256xf32>
      %96 = arith.mulf %95, %95 : vector<128x256xf32>
      %cst_25 = arith.constant dense<0.000000e+00> : vector<128xf32>
      %97 = vector.multi_reduction <add>, %96, %cst_25 [1] : vector<128x256xf32> to vector<128xf32>
      %98 = vector.shape_cast %97 : vector<128xf32> to vector<128x1xf32>
      %99 = vector.shape_cast %98 : vector<128x1xf32> to vector<1x128x1xf32>
      %cst_26 = arith.constant dense<0xFF800000> : vector<1xf32>
      %100 = vector.multi_reduction <maximumf>, %99, %cst_26 [1, 2] : vector<1x128x1xf32> to vector<1xf32>
      %101 = vector.shape_cast %100 : vector<1xf32> to vector<1x1x1xf32>
      %102 = vector.extract %101[0, 0, 0] : f32 from vector<1x1x1xf32>
      %cst_27 = arith.constant 9.99999996E-13 : f32
      %103 = arith.cmpf olt, %102, %cst_27 : f32
      %104 = arith.extui %103 : i1 to i32
      %c1_i32_28 = arith.constant 1 : i32
      %105 = arith.addi %arg4, %c1_i32_28 : i32
      scf.yield %105, %94, %83, %104 : i32, vector<128x256xf32>, vector<128x256xf32>, i32
    }
    %c0_6 = arith.constant 0 : index
    %c0_7 = arith.constant 0 : index
    %6 = vector.load %arg3[%c0_6, %c0_7] : memref<128x256xf32, #tpu.memory_space<vmem>>, vector<128x256xf32>
    tpu.vector_store %arg3[%c0_6, %c0_7], %5#1 {strides = array<i32>} : memref<128x256xf32, #tpu.memory_space<vmem>>, vector<128x256xf32>,
    return
  }
}

</mosaic_0001>

<bundles_post_ra>
// kernel: tpu_custom_call.1
= control target key start
LH: loop header
LB: loop body
LE: loop exit
PB: predicated region body
PF: predicated region fallthrough
CT: control target
= control target key end

     0   :  { %9 = vsyncpa [#allocation4], 0  ;;  %s7505_s0 = inlined_call_operand.<no memory space> [shape: f32[1], index: 0, kind: input, shape index: {}]   ;;  %s7506_s1 = inlined_call_operand.hbm [shape: f32[128,256], index: 1, kind: input, shape index: {}]   ;;  %s7507_s2 = inlined_call_operand.hbm [shape: f32[256,256], index: 2, kind: input, shape index: {}]   ;;  %s7508_s3 = inlined_call_operand.hbm [shape: f32[128,256], index: 3, kind: output, shape index: {}]  }
   0x1   :  { %10 = vsyncpa [#allocation7], 0 }
   0x2   :  { %11 = vsyncpa [#allocation5], 0  ;;  %s4421_s12 = smov [#allocation3]   ;;  %s4085_s16 = scalar_lea.hbm %s7506_s1, 4096 }
   0x3   :  { %s19_s13 = sshll.u32 %s4421_s12, 4  ;;  %p4086_p0 = scmp.ne.s32.totalorder %s7506_s1, %s4085_s16  ;;  %s20_s13 = int_to_ptr.vmem [resolvable:$true] %s19_s13 }
   0x4   :  { %p4089_p1 = scmp.lt.u32.totalorder %s4085_s16, %s7506_s1 }
   0x6   :  { %p4091_p2 = pnand %p4089_p1, %p4086_p0 }
   0x8   :  { %4094 = shalt.err (!%p4091_p2)
}
   0x9   :  { %s4095_s21 = scalar_lea.vmem %s20_s13, 4096  ;;  %p4100_p4 = scmp.lt.s32.totalorder %s20_s13, %s20_s13 }
   0xa   :  { %p4096_p3 = scmp.ne.s32.totalorder %s20_s13, %s4095_s21  ;;  %p4101_p5 = scmp.lt.s32.totalorder %s4095_s21, %s4095_s21 }
   0xc   :  { %p4102_p6 = por %p4101_p5, %p4100_p4 }
   0xe   :  { %p4103_p7 = pnand %p4102_p6, %p4096_p3 }
  0x10   :  { %4106 = shalt.err (!%p4103_p7)
}
  0x11   :  { %s4422_s22 = smov 256   ;;  %s4423_s23 = smov 16  }
  0x12   :  { %25 = dma.hbm_to_vmem [thread:$0]  %s7506_s1, 4096, %s20_s13, [#allocation4], %s4422_s22, %s4422_s22, %s4423_s23  }
  0x13   :  { %s4424_s26 = smov [#allocation6]   ;;  %s4107_s30 = scalar_lea.hbm %s7507_s2, 8192 }
  0x14   :  { %s31_s27 = sshll.u32 %s4424_s26, 4  ;;  %p4108_p8 = scmp.ne.s32.totalorder %s7507_s2, %s4107_s30  ;;  %s32_s27 = int_to_ptr.vmem [resolvable:$true] %s31_s27 }
  0x15   :  { %p4111_p9 = scmp.lt.u32.totalorder %s4107_s30, %s7507_s2 }
  0x17   :  { %p4113_p10 = pnand %p4111_p9, %p4108_p8 }
  0x19   :  { %4116 = shalt.err (!%p4113_p10)
}
  0x1a   :  { %s4117_s8 = scalar_lea.vmem %s32_s27, 8192  ;;  %p4122_p12 = scmp.lt.s32.totalorder %s32_s27, %s32_s27 }
  0x1b   :  { %p4118_p11 = scmp.ne.s32.totalorder %s32_s27, %s4117_s8  ;;  %p4123_p13 = scmp.lt.s32.totalorder %s4117_s8, %s4117_s8 }
  0x1d   :  { %p4124_p0 = por %p4123_p13, %p4122_p12 }
  0x1f   :  { %p4125_p1 = pnand %p4124_p0, %p4118_p11 }
  0x21   :  { %4128 = shalt.err (!%p4125_p1)
}
  0x22   :  { %37 = dma.hbm_to_vmem [thread:$0]  %s7507_s2, 8192, %s32_s27, [#allocation7], %s4422_s22, %s4422_s22, %s4423_s23  }
  0x23   :  { %4283 = dma.done.wait [#allocation4], 4096  }
  0x24   :  { %4284 = vsyncadd [#allocation4], 4294963200 }
  0x25   :  { %4285 = dma.done.wait [#allocation7], 8192  }
  0x26   :  { %4286 = vsyncadd [#allocation7], 4294959104  ;;  %s141_s12 = smul.f32 0.1, %s7505_s0  ;;  %v4479_v0 = vld [vmem:[#allocation3] sm:$0xff]  ;;  %v4481_v1 = vld [vmem:[#allocation3 + $0x8] sm:$0xff] }
  0x27   :  { %7694 = vst [vmem:[#allocation12_spill] sm:$0xff] %v4479_v0  ;;  %7695 = vst [vmem:[#allocation13_spill] sm:$0xff] %v4481_v1  ;;  %v4483_v2 = vld [vmem:[#allocation3 + $0x10] sm:$0xff]  ;;  %v4485_v3 = vld [vmem:[#allocation3 + $0x18] sm:$0xff]  ;;  %s4735_s2 = smov 0  }
  0x28   :  { %7696 = vst [vmem:[#allocation14_spill] sm:$0xff] %v4483_v2  ;;  %7697 = vst [vmem:[#allocation15_spill] sm:$0xff] %v4485_v3  ;;  %v4487_v4 = vld [vmem:[#allocation3 + $0x20] sm:$0xff]  ;;  %v4489_v5 = vld [vmem:[#allocation3 + $0x28] sm:$0xff] }
  0x29   :  { %7698 = vst [vmem:[#allocation16_spill] sm:$0xff] %v4487_v4  ;;  %7699 = vst [vmem:[#allocation17_spill] sm:$0xff] %v4489_v5  ;;  %v4491_v6 = vld [vmem:[#allocation3 + $0x30] sm:$0xff]  ;;  %v4493_v7 = vld [vmem:[#allocation3 + $0x38] sm:$0xff] }
  0x2a   :  { %7700 = vst [vmem:[#allocation18_spill] sm:$0xff] %v4491_v6  ;;  %7701 = vst [vmem:[#allocation19_spill] sm:$0xff] %v4493_v7  ;;  %v4495_v8 = vld [vmem:[#allocation3 + $0x40] sm:$0xff]  ;;  %v4497_v9 = vld [vmem:[#allocation3 + $0x48] sm:$0xff] }
  0x2b   :  { %7702 = vst [vmem:[#allocation20_spill] sm:$0xff] %v4495_v8  ;;  %7703 = vst [vmem:[#allocation21_spill] sm:$0xff] %v4497_v9  ;;  %v4499_v10 = vld [vmem:[#allocation3 + $0x50] sm:$0xff]  ;;  %v4501_v11 = vld [vmem:[#allocation3 + $0x58] sm:$0xff] }
  0x2c   :  { %7704 = vst [vmem:[#allocation22_spill] sm:$0xff] %v4499_v10  ;;  %7705 = vst [vmem:[#allocation23_spill] sm:$0xff] %v4501_v11  ;;  %v4503_v12 = vld [vmem:[#allocation3 + $0x60] sm:$0xff]  ;;  %v4505_v13 = vld [vmem:[#allocation3 + $0x68] sm:$0xff] }
  0x2d   :  { %7706 = vst [vmem:[#allocation24_spill] sm:$0xff] %v4503_v12  ;;  %7707 = vst [vmem:[#allocation25_spill] sm:$0xff] %v4505_v13  ;;  %v4507_v14 = vld [vmem:[#allocation3 + $0x70] sm:$0xff]  ;;  %v4509_v15 = vld [vmem:[#allocation3 + $0x78] sm:$0xff] }
  0x2e   :  { %7708 = vst [vmem:[#allocation26_spill] sm:$0xff] %v4507_v14  ;;  %7709 = vst [vmem:[#allocation27_spill] sm:$0xff] %v4509_v15  ;;  %v4511_v16 = vld [vmem:[#allocation3 + $0x80] sm:$0xff]  ;;  %v4513_v17 = vld [vmem:[#allocation3 + $0x88] sm:$0xff] }
  0x2f   :  { %7710 = vst [vmem:[#allocation28_spill] sm:$0xff] %v4511_v16  ;;  %7711 = vst [vmem:[#allocation29_spill] sm:$0xff] %v4513_v17  ;;  %v4515_v18 = vld [vmem:[#allocation3 + $0x90] sm:$0xff]  ;;  %v4517_v19 = vld [vmem:[#allocation3 + $0x98] sm:$0xff] }
  0x30   :  { %7712 = vst [vmem:[#allocation30_spill] sm:$0xff] %v4515_v18  ;;  %7713 = vst [vmem:[#allocation31_spill] sm:$0xff] %v4517_v19  ;;  %v4519_v20 = vld [vmem:[#allocation3 + $0xa0] sm:$0xff]  ;;  %v4521_v21 = vld [vmem:[#allocation3 + $0xa8] sm:$0xff] }
  0x31   :  { %7714 = vst [vmem:[#allocation32_spill] sm:$0xff] %v4519_v20  ;;  %7715 = vst [vmem:[#allocation33_spill] sm:$0xff] %v4521_v21  ;;  %v4523_v22 = vld [vmem:[#allocation3 + $0xb0] sm:$0xff]  ;;  %v4525_v23 = vld [vmem:[#allocation3 + $0xb8] sm:$0xff] }
  0x32   :  { %7716 = vst [vmem:[#allocation34_spill] sm:$0xff] %v4523_v22  ;;  %7717 = vst [vmem:[#allocation35_spill] sm:$0xff] %v4525_v23  ;;  %v4527_v24 = vld [vmem:[#allocation3 + $0xc0] sm:$0xff]  ;;  %v4529_v25 = vld [vmem:[#allocation3 + $0xc8] sm:$0xff] }
  0x33   :  { %7718 = vst [vmem:[#allocation36_spill] sm:$0xff] %v4527_v24  ;;  %7719 = vst [vmem:[#allocation37_spill] sm:$0xff] %v4529_v25  ;;  %v4531_v26 = vld [vmem:[#allocation3 + $0xd0] sm:$0xff]  ;;  %v4533_v27 = vld [vmem:[#allocation3 + $0xd8] sm:$0xff] }
  0x34   :  { %7720 = vst [vmem:[#allocation38_spill] sm:$0xff] %v4531_v26  ;;  %7721 = vst [vmem:[#allocation39_spill] sm:$0xff] %v4533_v27  ;;  %v4535_v28 = vld [vmem:[#allocation3 + $0xe0] sm:$0xff]  ;;  %v4537_v29 = vld [vmem:[#allocation3 + $0xe8] sm:$0xff] }
  0x35   :  { %7722 = vst [vmem:[#allocation40_spill] sm:$0xff] %v4535_v28  ;;  %7723 = vst [vmem:[#allocation41_spill] sm:$0xff] %v4537_v29  ;;  %v4539_v30 = vld [vmem:[#allocation3 + $0xf0] sm:$0xff]  ;;  %v4541_v31 = vld [vmem:[#allocation3 + $0xf8] sm:$0xff] }
  0x36   :  { %7724 = vst [vmem:[#allocation42_spill] sm:$0xff] %v4539_v30  ;;  %7725 = vst [vmem:[#allocation43_spill] sm:$0xff] %v4541_v31  ;;  %v4543_v32 = vld [vmem:[#allocation6] sm:$0xff]  ;;  %v4545_v33 = vld [vmem:[#allocation6 + $0x8] sm:$0xff] }
  0x37   :  { %7726 = vst [vmem:[#allocation44_spill] sm:$0xff] %v4543_v32  ;;  %7727 = vst [vmem:[#allocation45_spill] sm:$0xff] %v4545_v33  ;;  %v4547_v34 = vld [vmem:[#allocation6 + $0x10] sm:$0xff]  ;;  %v4549_v35 = vld [vmem:[#allocation6 + $0x18] sm:$0xff] }
  0x38   :  { %7728 = vst [vmem:[#allocation46_spill] sm:$0xff] %v4547_v34  ;;  %7729 = vst [vmem:[#allocation47_spill] sm:$0xff] %v4549_v35  ;;  %v4551_v36 = vld [vmem:[#allocation6 + $0x20] sm:$0xff]  ;;  %v4553_v37 = vld [vmem:[#allocation6 + $0x28] sm:$0xff] }
  0x39   :  { %7730 = vst [vmem:[#allocation48_spill] sm:$0xff] %v4551_v36  ;;  %7731 = vst [vmem:[#allocation49_spill] sm:$0xff] %v4553_v37  ;;  %v4555_v38 = vld [vmem:[#allocation6 + $0x30] sm:$0xff]  ;;  %v4557_v39 = vld [vmem:[#allocation6 + $0x38] sm:$0xff] }
  0x3a   :  { %7732 = vst [vmem:[#allocation50_spill] sm:$0xff] %v4555_v38  ;;  %7733 = vst [vmem:[#allocation51_spill] sm:$0xff] %v4557_v39  ;;  %v4559_v40 = vld [vmem:[#allocation6 + $0x40] sm:$0xff]  ;;  %v4561_v41 = vld [vmem:[#allocation6 + $0x48] sm:$0xff] }
  0x3b   :  { %7734 = vst [vmem:[#allocation52_spill] sm:$0xff] %v4559_v40  ;;  %7735 = vst [vmem:[#allocation53_spill] sm:$0xff] %v4561_v41  ;;  %v4563_v42 = vld [vmem:[#allocation6 + $0x50] sm:$0xff]  ;;  %v4565_v43 = vld [vmem:[#allocation6 + $0x58] sm:$0xff] }
  0x3c   :  { %7736 = vst [vmem:[#allocation54_spill] sm:$0xff] %v4563_v42  ;;  %7737 = vst [vmem:[#allocation55_spill] sm:$0xff] %v4565_v43  ;;  %v4567_v44 = vld [vmem:[#allocation6 + $0x60] sm:$0xff]  ;;  %v4569_v45 = vld [vmem:[#allocation6 + $0x68] sm:$0xff] }
  0x3d   :  { %7738 = vst [vmem:[#allocation56_spill] sm:$0xff] %v4567_v44  ;;  %7739 = vst [vmem:[#allocation57_spill] sm:$0xff] %v4569_v45  ;;  %v4571_v46 = vld [vmem:[#allocation6 + $0x70] sm:$0xff]  ;;  %v4573_v47 = vld [vmem:[#allocation6 + $0x78] sm:$0xff] }
  0x3e   :  { %7740 = vst [vmem:[#allocation58_spill] sm:$0xff] %v4571_v46  ;;  %7741 = vst [vmem:[#allocation59_spill] sm:$0xff] %v4573_v47  ;;  %v4575_v48 = vld [vmem:[#allocation6 + $0x80] sm:$0xff]  ;;  %v4577_v49 = vld [vmem:[#allocation6 + $0x88] sm:$0xff] }
  0x3f   :  { %7742 = vst [vmem:[#allocation60_spill] sm:$0xff] %v4575_v48  ;;  %7743 = vst [vmem:[#allocation61_spill] sm:$0xff] %v4577_v49  ;;  %v4579_v50 = vld [vmem:[#allocation6 + $0x90] sm:$0xff]  ;;  %v4581_v51 = vld [vmem:[#allocation6 + $0x98] sm:$0xff] }
  0x40   :  { %7744 = vst [vmem:[#allocation62_spill] sm:$0xff] %v4579_v50  ;;  %7745 = vst [vmem:[#allocation63_spill] sm:$0xff] %v4581_v51  ;;  %v4583_v52 = vld [vmem:[#allocation6 + $0xa0] sm:$0xff]  ;;  %v4585_v53 = vld [vmem:[#allocation6 + $0xa8] sm:$0xff] }
  0x41   :  { %7746 = vst [vmem:[#allocation64_spill] sm:$0xff] %v4583_v52  ;;  %7747 = vst [vmem:[#allocation65_spill] sm:$0xff] %v4585_v53  ;;  %v4587_v54 = vld [vmem:[#allocation6 + $0xb0] sm:$0xff]  ;;  %v4589_v55 = vld [vmem:[#allocation6 + $0xb8] sm:$0xff] }
  0x42   :  { %7748 = vst [vmem:[#allocation66_spill] sm:$0xff] %v4587_v54  ;;  %7749 = vst [vmem:[#allocation67_spill] sm:$0xff] %v4589_v55  ;;  %v4591_v56 = vld [vmem:[#allocation6 + $0xc0] sm:$0xff]  ;;  %v4593_v57 = vld [vmem:[#allocation6 + $0xc8] sm:$0xff] }
  0x43   :  { %7750 = vst [vmem:[#allocation68_spill] sm:$0xff] %v4591_v56  ;;  %7751 = vst [vmem:[#allocation69_spill] sm:$0xff] %v4593_v57  ;;  %v4595_v58 = vld [vmem:[#allocation6 + $0xd0] sm:$0xff]  ;;  %v4597_v59 = vld [vmem:[#allocation6 + $0xd8] sm:$0xff] }
  0x44   :  { %7752 = vst [vmem:[#allocation70_spill] sm:$0xff] %v4595_v58  ;;  %7753 = vst [vmem:[#allocation71_spill] sm:$0xff] %v4597_v59  ;;  %v4599_v60 = vld [vmem:[#allocation6 + $0xe0] sm:$0xff]  ;;  %v4601_v61 = vld [vmem:[#allocation6 + $0xe8] sm:$0xff] }
  0x45   :  { %7754 = vst [vmem:[#allocation72_spill] sm:$0xff] %v4599_v60  ;;  %7755 = vst [vmem:[#allocation73_spill] sm:$0xff] %v4601_v61  ;;  %v4603_v62 = vld [vmem:[#allocation6 + $0xf0] sm:$0xff]  ;;  %v4605_v63 = vld [vmem:[#allocation6 + $0xf8] sm:$0xff] }
  0x46   :  { %7756 = vst [vmem:[#allocation74_spill] sm:$0xff] %v4603_v62  ;;  %7757 = vst [vmem:[#allocation75_spill] sm:$0xff] %v4605_v63  ;;  %v4607_v31 = vld [vmem:[#allocation6 + $0x100] sm:$0xff]  ;;  %v4609_v30 = vld [vmem:[#allocation6 + $0x108] sm:$0xff] }
  0x47   :  { %7758 = vst [vmem:[#allocation76_spill] sm:$0xff] %v4607_v31  ;;  %7759 = vst [vmem:[#allocation77_spill] sm:$0xff] %v4609_v30  ;;  %v4611_v29 = vld [vmem:[#allocation6 + $0x110] sm:$0xff]  ;;  %v4613_v28 = vld [vmem:[#allocation6 + $0x118] sm:$0xff]  ;;  %v4729_v31 = vmov 0.0   ;;  %v4733_v30 = vmov 0.0  }
  0x48   :  { %7760 = vst [vmem:[#allocation78_spill] sm:$0xff] %v4611_v29  ;;  %7761 = vst [vmem:[#allocation79_spill] sm:$0xff] %v4613_v28  ;;  %v4615_v27 = vld [vmem:[#allocation6 + $0x120] sm:$0xff]  ;;  %v4617_v26 = vld [vmem:[#allocation6 + $0x128] sm:$0xff]  ;;  %v4727_v29 = vmov 0.0   ;;  %v4731_v28 = vmov 0.0  }
  0x49   :  { %7762 = vst [vmem:[#allocation80_spill] sm:$0xff] %v4615_v27  ;;  %7763 = vst [vmem:[#allocation81_spill] sm:$0xff] %v4617_v26  ;;  %v4619_v25 = vld [vmem:[#allocation6 + $0x130] sm:$0xff]  ;;  %v4621_v24 = vld [vmem:[#allocation6 + $0x138] sm:$0xff]  ;;  %v4721_v27 = vmov 0.0   ;;  %v4725_v26 = vmov 0.0  }
  0x4a   :  { %7764 = vst [vmem:[#allocation82_spill] sm:$0xff] %v4619_v25  ;;  %7765 = vst [vmem:[#allocation83_spill] sm:$0xff] %v4621_v24  ;;  %v4623_v23 = vld [vmem:[#allocation6 + $0x140] sm:$0xff]  ;;  %v4625_v22 = vld [vmem:[#allocation6 + $0x148] sm:$0xff]  ;;  %v4719_v25 = vmov 0.0   ;;  %v4723_v24 = vmov 0.0  }
  0x4b   :  { %7766 = vst [vmem:[#allocation84_spill] sm:$0xff] %v4623_v23  ;;  %7767 = vst [vmem:[#allocation85_spill] sm:$0xff] %v4625_v22  ;;  %v4627_v21 = vld [vmem:[#allocation6 + $0x150] sm:$0xff]  ;;  %v4629_v20 = vld [vmem:[#allocation6 + $0x158] sm:$0xff]  ;;  %v4713_v23 = vmov 0.0   ;;  %v4717_v22 = vmov 0.0  }
  0x4c   :  { %7768 = vst [vmem:[#allocation86_spill] sm:$0xff] %v4627_v21  ;;  %7769 = vst [vmem:[#allocation87_spill] sm:$0xff] %v4629_v20  ;;  %v4631_v19 = vld [vmem:[#allocation6 + $0x160] sm:$0xff]  ;;  %v4633_v18 = vld [vmem:[#allocation6 + $0x168] sm:$0xff]  ;;  %v4711_v21 = vmov 0.0   ;;  %v4715_v20 = vmov 0.0  }
  0x4d   :  { %7770 = vst [vmem:[#allocation88_spill] sm:$0xff] %v4631_v19  ;;  %7771 = vst [vmem:[#allocation89_spill] sm:$0xff] %v4633_v18  ;;  %v4635_v17 = vld [vmem:[#allocation6 + $0x170] sm:$0xff]  ;;  %v4637_v16 = vld [vmem:[#allocation6 + $0x178] sm:$0xff]  ;;  %v4705_v19 = vmov 0.0   ;;  %v4709_v18 = vmov 0.0  }
  0x4e   :  { %7772 = vst [vmem:[#allocation90_spill] sm:$0xff] %v4635_v17  ;;  %7773 = vst [vmem:[#allocation91_spill] sm:$0xff] %v4637_v16  ;;  %v4639_v15 = vld [vmem:[#allocation6 + $0x180] sm:$0xff]  ;;  %v4641_v14 = vld [vmem:[#allocation6 + $0x188] sm:$0xff]  ;;  %v4703_v17 = vmov 0.0   ;;  %v4707_v16 = vmov 0.0  }
  0x4f   :  { %7774 = vst [vmem:[#allocation92_spill] sm:$0xff] %v4639_v15  ;;  %7775 = vst [vmem:[#allocation93_spill] sm:$0xff] %v4641_v14  ;;  %v4643_v13 = vld [vmem:[#allocation6 + $0x190] sm:$0xff]  ;;  %v4645_v12 = vld [vmem:[#allocation6 + $0x198] sm:$0xff]  ;;  %v4697_v15 = vmov 0.0   ;;  %v4701_v14 = vmov 0.0  }
  0x50   :  { %7776 = vst [vmem:[#allocation94_spill] sm:$0xff] %v4643_v13  ;;  %7777 = vst [vmem:[#allocation95_spill] sm:$0xff] %v4645_v12  ;;  %v4647_v11 = vld [vmem:[#allocation6 + $0x1a0] sm:$0xff]  ;;  %v4649_v10 = vld [vmem:[#allocation6 + $0x1a8] sm:$0xff]  ;;  %v4695_v13 = vmov 0.0   ;;  %v4699_v12 = vmov 0.0  }
  0x51   :  { %7778 = vst [vmem:[#allocation96_spill] sm:$0xff] %v4647_v11  ;;  %7779 = vst [vmem:[#allocation97_spill] sm:$0xff] %v4649_v10  ;;  %v4651_v9 = vld [vmem:[#allocation6 + $0x1b0] sm:$0xff]  ;;  %v4653_v8 = vld [vmem:[#allocation6 + $0x1b8] sm:$0xff]  ;;  %v4671_v11 = vmov 0.0   ;;  %v4693_v10 = vmov 0.0  }
  0x52   :  { %7780 = vst [vmem:[#allocation98_spill] sm:$0xff] %v4651_v9  ;;  %7781 = vst [vmem:[#allocation99_spill] sm:$0xff] %v4653_v8  ;;  %v4655_v7 = vld [vmem:[#allocation6 + $0x1c0] sm:$0xff]  ;;  %v4657_v6 = vld [vmem:[#allocation6 + $0x1c8] sm:$0xff]  ;;  %v4673_v9 = vmov 0.0   ;;  %v4675_v8 = vmov 0.0  }
  0x53   :  { %7782 = vst [vmem:[#allocation100_spill] sm:$0xff] %v4655_v7  ;;  %7783 = vst [vmem:[#allocation101_spill] sm:$0xff] %v4657_v6  ;;  %v4659_v5 = vld [vmem:[#allocation6 + $0x1d0] sm:$0xff]  ;;  %v4661_v4 = vld [vmem:[#allocation6 + $0x1d8] sm:$0xff]  ;;  %v4677_v7 = vmov 0.0   ;;  %v4679_v6 = vmov 0.0  }
  0x54   :  { %7784 = vst [vmem:[#allocation102_spill] sm:$0xff] %v4659_v5  ;;  %7785 = vst [vmem:[#allocation103_spill] sm:$0xff] %v4661_v4  ;;  %v4663_v3 = vld [vmem:[#allocation6 + $0x1e0] sm:$0xff]  ;;  %v4665_v2 = vld [vmem:[#allocation6 + $0x1e8] sm:$0xff]  ;;  %v4681_v5 = vmov 0.0   ;;  %v4683_v4 = vmov 0.0  }
  0x55   :  { %7786 = vst [vmem:[#allocation104_spill] sm:$0xff] %v4663_v3  ;;  %7787 = vst [vmem:[#allocation105_spill] sm:$0xff] %v4665_v2  ;;  %v4667_v1 = vld [vmem:[#allocation6 + $0x1f0] sm:$0xff]  ;;  %v4669_v0 = vld [vmem:[#allocation6 + $0x1f8] sm:$0xff]  ;;  %v4685_v3 = vmov 0.0   ;;  %v4687_v2 = vmov 0.0  }
  0x56   :  { %7788 = vst [vmem:[#allocation106_spill] sm:$0xff] %v4667_v1  ;;  %7789 = vst [vmem:[#allocation107_spill] sm:$0xff] %v4669_v0  ;;  %v4689_v1 = vmov 0.0   ;;  %v4691_v0 = vmov 0.0  }
  0x57 LB: > { %7790 = vst [vmem:[#allocation108_spill] sm:$0xff] %v4291_v11  ;;  %7791 = vst [vmem:[#allocation109_spill] sm:$0xff] %v4295_v9  ;;  %v7799_v33 = vld [vmem:[#allocation45_spill] sm:$0xff]  ;;  %v7800_v35 = vld [vmem:[#allocation47_spill] sm:$0xff]  ;;  %247 = vmatprep.mubr.f32.mxu0 %v4411_v28  ;;  %s441_s17 = ssub.f32 0.0, %s141_s12  ;;  %s3147_s20 = sadd.s32 1, %s4419_s2   ;;  %s4419_s2 = sphi %s4735_s2, %s8354_s2   ;;  %v4415_v30 = vphi %v4733_v30, %v8353_v30   ;;  %v4411_v28 = vphi %v4731_v28, %v8352_v28   ;;  %v4407_v31 = vphi %v4729_v31, %v8351_v31   ;;  %v4403_v29 = vphi %v4727_v29, %v8350_v29   ;;  %v4399_v26 = vphi %v4725_v26, %v8349_v26   ;;  %v4395_v24 = vphi %v4723_v24, %v8348_v24   ;;  %v4391_v27 = vphi %v4721_v27, %v8347_v27   ;;  %v4387_v25 = vphi %v4719_v25, %v8346_v25   ;;  %v4383_v22 = vphi %v4717_v22, %v8345_v22   ;;  %v4379_v20 = vphi %v4715_v20, %v8344_v20   ;;  %v4375_v23 = vphi %v4713_v23, %v8343_v23   ;;  %v4371_v21 = vphi %v4711_v21, %v8342_v21   ;;  %v4367_v18 = vphi %v4709_v18, %v8341_v18   ;;  %v4363_v16 = vphi %v4707_v16, %v8340_v16   ;;  %v4359_v19 = vphi %v4705_v19, %v8339_v19   ;;  %v4355_v17 = vphi %v4703_v17, %v8338_v17   ;;  %v4351_v14 = vphi %v4701_v14, %v8337_v14   ;;  %v4347_v12 = vphi %v4699_v12, %v8336_v12   ;;  %v4343_v15 = vphi %v4697_v15, %v8335_v15   ;;  %v4339_v13 = vphi %v4695_v13, %v8334_v13   ;;  %v4335_v10 = vphi %v4693_v10, %v8333_v10   ;;  %v4331_v0 = vphi %v4691_v0, %v8332_v0   ;;  %v4327_v1 = vphi %v4689_v1, %v8331_v1   ;;  %v4323_v2 = vphi %v4687_v2, %v8330_v2   ;;  %v4319_v3 = vphi %v4685_v3, %v8329_v3   ;;  %v4315_v4 = vphi %v4683_v4, %v8328_v4   ;;  %v4311_v5 = vphi %v4681_v5, %v8327_v5   ;;  %v4307_v6 = vphi %v4679_v6, %v8326_v6   ;;  %v4303_v7 = vphi %v4677_v7, %v8325_v7   ;;  %v4299_v8 = vphi %v4675_v8, %v8324_v8   ;;  %v4295_v9 = vphi %v4673_v9, %v8323_v9   ;;  %v4291_v11 = vphi %v4671_v11, %v8322_v11  }
  0x58   : > { %7792 = vst [vmem:[#allocation110_spill] sm:$0xff] %v4299_v8  ;;  %7793 = vst [vmem:[#allocation111_spill] sm:$0xff] %v4303_v7  ;;  %v4838_v9 = vpack.c.bf16 %v7800_v35, %v7799_v33  ;;  %v7802_v32 = vld [vmem:[#allocation44_spill] sm:$0xff]  ;;  %v7803_v34 = vld [vmem:[#allocation46_spill] sm:$0xff]  ;;  %p177_p3 = scmp.lt.s32.totalorder %s3147_s20, 125  ;;  %s8354_s2 = smov %s3147_s20 }
  0x59   : > { %7794 = vst [vmem:[#allocation112_spill] sm:$0xff] %v4307_v6  ;;  %7795 = vst [vmem:[#allocation113_spill] sm:$0xff] %v4311_v5  ;;  %v4842_v11 = vpack.c.bf16 %v7803_v34, %v7802_v32  ;;  %v7804_v37 = vld [vmem:[#allocation49_spill] sm:$0xff]  ;;  %v7805_v39 = vld [vmem:[#allocation51_spill] sm:$0xff] }
  0x5a   : > { %7796 = vst [vmem:[#allocation114_spill] sm:$0xff] %v4315_v4  ;;  %7797 = vst [vmem:[#allocation115_spill] sm:$0xff] %v4319_v3  ;;  %v4846_v7 = vpack.c.bf16 %v7805_v39, %v7804_v37  ;;  %3303 = vmatprep.subr.bf16.mxu0 %v4838_v9  ;;  %v7807_v36 = vld [vmem:[#allocation48_spill] sm:$0xff]  ;;  %v7808_v38 = vld [vmem:[#allocation50_spill] sm:$0xff]  ;;  %3367 = vmatprep.subr.bf16.mxu1 %v4838_v9 }
  0x5b   : > { %7798 = vst [vmem:[#allocation116_spill] sm:$0xff] %v4411_v28  ;;  %7801 = vst [vmem:[#allocation117_spill] sm:$0xff] %v4838_v9  ;;  %3305 = vmatpush1.bf16.msra.mxu0 %v4842_v11  ;;  %v4852_v8 = vpack.c.bf16 %v7808_v38, %v7807_v36  ;;  %v7810_v41 = vld [vmem:[#allocation53_spill] sm:$0xff]  ;;  %v7811_v43 = vld [vmem:[#allocation55_spill] sm:$0xff]  ;;  %3369 = vmatpush1.bf16.msra.mxu1 %v4842_v11 }
  0x5c   : > { %7806 = vst [vmem:[#allocation118_spill] sm:$0xff] %v4846_v7  ;;  %3307 = vmatprep.subr.bf16.mxu0 %v4846_v7  ;;  %v4857_v33 = vpack.c.bf16 %v7811_v43, %v7810_v41  ;;  %v7813_v40 = vld [vmem:[#allocation52_spill] sm:$0xff]  ;;  %v7814_v42 = vld [vmem:[#allocation54_spill] sm:$0xff]  ;;  %v7816_v45 = vld [vmem:[#allocation57_spill] sm:$0xff]  ;;  %3371 = vmatprep.subr.bf16.mxu1 %v4846_v7 }
  0x5d   : > { %7809 = vst [vmem:[#allocation119_spill] sm:$0xff] %v4852_v8  ;;  %v4864_v32 = vpack.c.bf16 %v7814_v42, %v7813_v40  ;;  %v7817_v47 = vld [vmem:[#allocation59_spill] sm:$0xff]  ;;  %v7819_v44 = vld [vmem:[#allocation56_spill] sm:$0xff]  ;;  %v7820_v46 = vld [vmem:[#allocation58_spill] sm:$0xff] }
  0x5e   : > { %7812 = vst [vmem:[#allocation120_spill] sm:$0xff] %v4857_v33  ;;  %v4869_v34 = vpack.c.bf16 %v7817_v47, %v7816_v45  ;;  %v4877_v35 = vpack.c.bf16 %v7820_v46, %v7819_v44  ;;  %v7822_v49 = vld [vmem:[#allocation61_spill] sm:$0xff]  ;;  %v7823_v51 = vld [vmem:[#allocation63_spill] sm:$0xff]  ;;  %v7825_v48 = vld [vmem:[#allocation60_spill] sm:$0xff] }
  0x5f   : > { %3309 = vmatpush1.bf16.msra.mxu0 %v4852_v8  ;;  %7815 = vst [vmem:[#allocation121_spill] sm:$0xff] %v4864_v32  ;;  %3373 = vmatpush1.bf16.msra.mxu1 %v4852_v8  ;;  %v4883_v36 = vpack.c.bf16 %v7823_v51, %v7822_v49  ;;  %v7826_v50 = vld [vmem:[#allocation62_spill] sm:$0xff]  ;;  %v7828_v53 = vld [vmem:[#allocation65_spill] sm:$0xff]  ;;  %v7829_v55 = vld [vmem:[#allocation67_spill] sm:$0xff] }
  0x60   : > { %3311 = vmatprep.subr.bf16.mxu0 %v4857_v33  ;;  %7818 = vst [vmem:[#allocation122_spill] sm:$0xff] %v4869_v34  ;;  %7821 = vst [vmem:[#allocation123_spill] sm:$0xff] %v4877_v35  ;;  %3375 = vmatprep.subr.bf16.mxu1 %v4857_v33  ;;  %v4889_v37 = vpack.c.bf16 %v7826_v50, %v7825_v48  ;;  %v4895_v38 = vpack.c.bf16 %v7829_v55, %v7828_v53  ;;  %v7831_v52 = vld [vmem:[#allocation64_spill] sm:$0xff]  ;;  %v7832_v54 = vld [vmem:[#allocation66_spill] sm:$0xff] }
  0x61   : > { %7824 = vst [vmem:[#allocation124_spill] sm:$0xff] %v4883_v36  ;;  %v4901_v39 = vpack.c.bf16 %v7832_v54, %v7831_v52  ;;  %v7834_v57 = vld [vmem:[#allocation69_spill] sm:$0xff]  ;;  %v7835_v59 = vld [vmem:[#allocation71_spill] sm:$0xff]  ;;  %v7837_v56 = vld [vmem:[#allocation68_spill] sm:$0xff] }
  0x62   : > { %7827 = vst [vmem:[#allocation125_spill] sm:$0xff] %v4889_v37  ;;  %7830 = vst [vmem:[#allocation126_spill] sm:$0xff] %v4895_v38  ;;  %v4907_v40 = vpack.c.bf16 %v7835_v59, %v7834_v57  ;;  %v7838_v58 = vld [vmem:[#allocation70_spill] sm:$0xff]  ;;  %v7840_v61 = vld [vmem:[#allocation73_spill] sm:$0xff] }
  0x63   : > { %3313 = vmatpush1.bf16.msra.mxu0 %v4864_v32  ;;  %3377 = vmatpush1.bf16.msra.mxu1 %v4864_v32  ;;  %7833 = vst [vmem:[#allocation127_spill] sm:$0xff] %v4901_v39  ;;  %v4913_v41 = vpack.c.bf16 %v7838_v58, %v7837_v56  ;;  %v7841_v63 = vld [vmem:[#allocation75_spill] sm:$0xff]  ;;  %v7843_v60 = vld [vmem:[#allocation72_spill] sm:$0xff]  ;;  %v7844_v62 = vld [vmem:[#allocation74_spill] sm:$0xff] }
  0x64   : > { %3315 = vmatprep.subr.bf16.mxu0 %v4869_v34  ;;  %3379 = vmatprep.subr.bf16.mxu1 %v4869_v34  ;;  %7836 = vst [vmem:[#allocation128_spill] sm:$0xff] %v4907_v40  ;;  %v4919_v42 = vpack.c.bf16 %v7841_v63, %v7840_v61  ;;  %v4925_v43 = vpack.c.bf16 %v7844_v62, %v7843_v60  ;;  %v7846_v44 = vld [vmem:[#allocation77_spill] sm:$0xff]  ;;  %v7847_v45 = vld [vmem:[#allocation79_spill] sm:$0xff]  ;;  %v7849_v47 = vld [vmem:[#allocation76_spill] sm:$0xff] }
  0x65   : > { %7839 = vst [vmem:[#allocation129_spill] sm:$0xff] %v4913_v41  ;;  %v4931_v46 = vpack.c.bf16 %v7847_v45, %v7846_v44  ;;  %v7850_v48 = vld [vmem:[#allocation78_spill] sm:$0xff]  ;;  %v7852_v50 = vld [vmem:[#allocation81_spill] sm:$0xff]  ;;  %v7853_v51 = vld [vmem:[#allocation83_spill] sm:$0xff] }
  0x66   : > { %7842 = vst [vmem:[#allocation130_spill] sm:$0xff] %v4919_v42  ;;  %7845 = vst [vmem:[#allocation131_spill] sm:$0xff] %v4925_v43  ;;  %v4937_v49 = vpack.c.bf16 %v7850_v48, %v7849_v47  ;;  %v4943_v52 = vpack.c.bf16 %v7853_v51, %v7852_v50  ;;  %v7855_v44 = vld [vmem:[#allocation80_spill] sm:$0xff]  ;;  %v7856_v45 = vld [vmem:[#allocation82_spill] sm:$0xff] }
  0x67   : > { %3317 = vmatpush1.bf16.msra.mxu0 %v4877_v35  ;;  %3381 = vmatpush1.bf16.msra.mxu1 %v4877_v35  ;;  %7848 = vst [vmem:[#allocation132_spill] sm:$0xff] %v4931_v46  ;;  %v4949_v53 = vpack.c.bf16 %v7856_v45, %v7855_v44  ;;  %v7858_v47 = vld [vmem:[#allocation85_spill] sm:$0xff]  ;;  %v7859_v48 = vld [vmem:[#allocation87_spill] sm:$0xff]  ;;  %v7861_v50 = vld [vmem:[#allocation84_spill] sm:$0xff] }
  0x68   : > { %3319 = vmatprep.subr.bf16.mxu0 %v4883_v36  ;;  %3383 = vmatprep.subr.bf16.mxu1 %v4883_v36  ;;  %7851 = vst [vmem:[#allocation133_spill] sm:$0xff] %v4937_v49  ;;  %7854 = vst [vmem:[#allocation134_spill] sm:$0xff] %v4943_v52  ;;  %v4955_v54 = vpack.c.bf16 %v7859_v48, %v7858_v47  ;;  %v7862_v51 = vld [vmem:[#allocation86_spill] sm:$0xff]  ;;  %v7864_v44 = vld [vmem:[#allocation89_spill] sm:$0xff] }
  0x69   : > { %7857 = vst [vmem:[#allocation135_spill] sm:$0xff] %v4949_v53  ;;  %v4961_v55 = vpack.c.bf16 %v7862_v51, %v7861_v50  ;;  %v7865_v45 = vld [vmem:[#allocation91_spill] sm:$0xff]  ;;  %v7867_v47 = vld [vmem:[#allocation88_spill] sm:$0xff]  ;;  %v7868_v48 = vld [vmem:[#allocation90_spill] sm:$0xff] }
  0x6a   : > { %7860 = vst [vmem:[#allocation136_spill] sm:$0xff] %v4955_v54  ;;  %v4967_v56 = vpack.c.bf16 %v7865_v45, %v7864_v44  ;;  %v4973_v57 = vpack.c.bf16 %v7868_v48, %v7867_v47  ;;  %v7870_v50 = vld [vmem:[#allocation93_spill] sm:$0xff]  ;;  %v7871_v51 = vld [vmem:[#allocation95_spill] sm:$0xff]  ;;  %v7873_v44 = vld [vmem:[#allocation92_spill] sm:$0xff] }
  0x6b   : > { %3321 = vmatpush1.bf16.msra.mxu0 %v4889_v37  ;;  %3385 = vmatpush1.bf16.msra.mxu1 %v4889_v37  ;;  %7863 = vst [vmem:[#allocation137_spill] sm:$0xff] %v4961_v55  ;;  %v4979_v58 = vpack.c.bf16 %v7871_v51, %v7870_v50  ;;  %v7874_v45 = vld [vmem:[#allocation94_spill] sm:$0xff]  ;;  %v7876_v47 = vld [vmem:[#allocation97_spill] sm:$0xff]  ;;  %v7877_v48 = vld [vmem:[#allocation99_spill] sm:$0xff] }
  0x6c   : > { %3323 = vmatprep.subr.bf16.mxu0 %v4895_v38  ;;  %3387 = vmatprep.subr.bf16.mxu1 %v4895_v38  ;;  %7866 = vst [vmem:[#allocation138_spill] sm:$0xff] %v4967_v56  ;;  %7869 = vst [vmem:[#allocation139_spill] sm:$0xff] %v4973_v57  ;;  %v4985_v59 = vpack.c.bf16 %v7874_v45, %v7873_v44  ;;  %v4991_v60 = vpack.c.bf16 %v7877_v48, %v7876_v47  ;;  %v7879_v50 = vld [vmem:[#allocation96_spill] sm:$0xff]  ;;  %v7880_v51 = vld [vmem:[#allocation98_spill] sm:$0xff] }
  0x6d   : > { %7872 = vst [vmem:[#allocation140_spill] sm:$0xff] %v4979_v58  ;;  %v4997_v61 = vpack.c.bf16 %v7880_v51, %v7879_v50  ;;  %v7882_v44 = vld [vmem:[#allocation101_spill] sm:$0xff]  ;;  %v7883_v45 = vld [vmem:[#allocation103_spill] sm:$0xff]  ;;  %v7885_v47 = vld [vmem:[#allocation100_spill] sm:$0xff] }
  0x6e   : > { %7875 = vst [vmem:[#allocation141_spill] sm:$0xff] %v4985_v59  ;;  %7878 = vst [vmem:[#allocation142_spill] sm:$0xff] %v4991_v60  ;;  %v5003_v62 = vpack.c.bf16 %v7883_v45, %v7882_v44  ;;  %v7886_v48 = vld [vmem:[#allocation102_spill] sm:$0xff]  ;;  %v7888_v50 = vld [vmem:[#allocation105_spill] sm:$0xff] }
  0x6f   : > { %3325 = vmatpush1.bf16.msra.mxu0 %v4901_v39  ;;  %3389 = vmatpush1.bf16.msra.mxu1 %v4901_v39  ;;  %7881 = vst [vmem:[#allocation143_spill] sm:$0xff] %v4997_v61  ;;  %v5009_v63 = vpack.c.bf16 %v7886_v48, %v7885_v47  ;;  %v7889_v51 = vld [vmem:[#allocation107_spill] sm:$0xff]  ;;  %v7891_v44 = vld [vmem:[#allocation104_spill] sm:$0xff]  ;;  %v7892_v45 = vld [vmem:[#allocation106_spill] sm:$0xff] }
  0x70   : > { %3327 = vmatprep.subr.bf16.mxu0 %v4907_v40  ;;  %3391 = vmatprep.subr.bf16.mxu1 %v4907_v40  ;;  %7884 = vst [vmem:[#allocation144_spill] sm:$0xff] %v5003_v62  ;;  %v5015_v28 = vpack.c.bf16 %v7889_v51, %v7888_v50  ;;  %v5021_v5 = vpack.c.bf16 %v7892_v45, %v7891_v44  ;;  %v7894_v47 = vld [vmem:[#allocation113_spill] sm:$0xff]  ;;  %v7895_v48 = vld [vmem:[#allocation110_spill] sm:$0xff]  ;;  %v7896_v50 = vld [vmem:[#allocation111_spill] sm:$0xff] }
  0x71   : > { %7887 = vst [vmem:[#allocation145_spill] sm:$0xff] %v5009_v63  ;;  %v7897_v51 = vld [vmem:[#allocation108_spill] sm:$0xff]  ;;  %v7898_v44 = vld [vmem:[#allocation109_spill] sm:$0xff] }
  0x72   : > { %7890 = vst [vmem:[#allocation146_spill] sm:$0xff] %v5015_v28  ;;  %7893 = vst [vmem:[#allocation147_spill] sm:$0xff] %v5021_v5 }
  0x73   : > { %3329 = vmatpush1.bf16.msra.mxu0 %v4913_v41  ;;  %3393 = vmatpush1.bf16.msra.mxu1 %v4913_v41 }
  0x74   : > { %3331 = vmatprep.subr.bf16.mxu0 %v4919_v42  ;;  %3395 = vmatprep.subr.bf16.mxu1 %v4919_v42 }
  0x77   : > { %3333 = vmatpush1.bf16.msra.mxu0 %v4925_v43  ;;  %3397 = vmatpush1.bf16.msra.mxu1 %v4925_v43 }
  0x78   : > { %3335 = vmatprep.subr.bf16.mxu0 %v4931_v46  ;;  %3399 = vmatprep.subr.bf16.mxu1 %v4931_v46 }
  0x7b   : > { %3337 = vmatpush1.bf16.msra.mxu0 %v4937_v49  ;;  %3401 = vmatpush1.bf16.msra.mxu1 %v4937_v49 }
  0x7c   : > { %3339 = vmatprep.subr.bf16.mxu0 %v4943_v52  ;;  %3403 = vmatprep.subr.bf16.mxu1 %v4943_v52 }
  0x7f   : > { %3341 = vmatpush1.bf16.msra.mxu0 %v4949_v53  ;;  %3405 = vmatpush1.bf16.msra.mxu1 %v4949_v53 }
  0x80   : > { %3343 = vmatprep.subr.bf16.mxu0 %v4955_v54  ;;  %3407 = vmatprep.subr.bf16.mxu1 %v4955_v54 }
  0x83   : > { %3345 = vmatpush1.bf16.msra.mxu0 %v4961_v55  ;;  %3409 = vmatpush1.bf16.msra.mxu1 %v4961_v55 }
  0x84   : > { %3347 = vmatprep.subr.bf16.mxu0 %v4967_v56  ;;  %3411 = vmatprep.subr.bf16.mxu1 %v4967_v56 }
  0x87   : > { %3349 = vmatpush1.bf16.msra.mxu0 %v4973_v57  ;;  %3413 = vmatpush1.bf16.msra.mxu1 %v4973_v57 }
  0x88   : > { %3351 = vmatprep.subr.bf16.mxu0 %v4979_v58  ;;  %3415 = vmatprep.subr.bf16.mxu1 %v4979_v58 }
  0x8b   : > { %3353 = vmatpush1.bf16.msra.mxu0 %v4985_v59  ;;  %3417 = vmatpush1.bf16.msra.mxu1 %v4985_v59 }
  0x8c   : > { %3355 = vmatprep.subr.bf16.mxu0 %v4991_v60  ;;  %3419 = vmatprep.subr.bf16.mxu1 %v4991_v60 }
  0x8f   : > { %3357 = vmatpush1.bf16.msra.mxu0 %v4997_v61  ;;  %3421 = vmatpush1.bf16.msra.mxu1 %v4997_v61 }
  0x90   : > { %3359 = vmatprep.subr.bf16.mxu0 %v5003_v62  ;;  %3423 = vmatprep.subr.bf16.mxu1 %v5003_v62 }
  0x93   : > { %3361 = vmatpush1.bf16.msra.mxu0 %v5009_v63  ;;  %3425 = vmatpush1.bf16.msra.mxu1 %v5009_v63 }
  0x94   : > { %3363 = vmatprep.subr.bf16.mxu0 %v5015_v28  ;;  %3427 = vmatprep.subr.bf16.mxu1 %v5015_v28 }
  0x97   : > { %3365 = vmatpush1.bf16.msra.mxu0 %v5021_v5  ;;  %3429 = vmatpush1.bf16.msra.mxu1 %v5021_v5 }
  0x98   : > { %3431 = vmatprep.subr.bf16.mxu0 %v4838_v9  ;;  %3495 = vmatprep.subr.bf16.mxu1 %v4838_v9 }
  0x9a   : > { %248 = vmatmul.mubr.f32.vlgmr.msra.gmra.mrb[0].mxu0 %v4415_v30 }
  0x9b   : > { %253 = vmatprep.mubr.f32.mxu0 %v4403_v29  ;;  %3433 = vmatpush1.bf16.msra.mxu0 %v4842_v11 }
  0x9c   : > { %3435 = vmatprep.subr.bf16.mxu0 %v4846_v7 }
  0x9e   : > { %254 = vmatmul.mubr.f32.gmra.mrb[2].mxu0 %v4407_v31 }
  0x9f   : > { %259 = vmatprep.mubr.f32.mxu0 %v4395_v24  ;;  %3437 = vmatpush1.bf16.msra.mxu0 %v4852_v8 }
  0xa0   : > { %3439 = vmatprep.subr.bf16.mxu0 %v4857_v33 }
  0xa2   : > { %260 = vmatmul.mubr.f32.gmra.mrb[4].mxu0 %v4399_v26 }
  0xa3   : > { %265 = vmatprep.mubr.f32.mxu0 %v4387_v25  ;;  %3441 = vmatpush1.bf16.msra.mxu0 %v4864_v32 }
  0xa4   : > { %3443 = vmatprep.subr.bf16.mxu0 %v4869_v34 }
  0xa6   : > { %266 = vmatmul.mubr.f32.gmra.mrb[6].mxu0 %v4391_v27 }
  0xa7   : > { %271 = vmatprep.mubr.f32.mxu0 %v4379_v20  ;;  %3445 = vmatpush1.bf16.msra.mxu0 %v4877_v35 }
  0xa8   : > { %3447 = vmatprep.subr.bf16.mxu0 %v4883_v36 }
  0xaa   : > { %272 = vmatmul.mubr.f32.gmra.mrb[8].mxu0 %v4383_v22 }
  0xab   : > { %277 = vmatprep.mubr.f32.mxu0 %v4371_v21  ;;  %3449 = vmatpush1.bf16.msra.mxu0 %v4889_v37 }
  0xac   : > { %3451 = vmatprep.subr.bf16.mxu0 %v4895_v38 }
  0xae   : > { %278 = vmatmul.mubr.f32.gmra.mrb[10].mxu0 %v4375_v23 }
  0xaf   : > { %283 = vmatprep.mubr.f32.mxu0 %v4363_v16  ;;  %3453 = vmatpush1.bf16.msra.mxu0 %v4901_v39 }
  0xb0   : > { %3455 = vmatprep.subr.bf16.mxu0 %v4907_v40 }
  0xb2   : > { %284 = vmatmul.mubr.f32.gmra.mrb[12].mxu0 %v4367_v18 }
  0xb3   : > { %289 = vmatprep.mubr.f32.mxu0 %v4355_v17  ;;  %3457 = vmatpush1.bf16.msra.mxu0 %v4913_v41 }
  0xb4   : > { %3459 = vmatprep.subr.bf16.mxu0 %v4919_v42 }
  0xb6   : > { %290 = vmatmul.mubr.f32.gmra.mrb[14].mxu0 %v4359_v19 }
  0xb7   : > { %295 = vmatprep.mubr.f32.mxu0 %v4347_v12  ;;  %3461 = vmatpush1.bf16.msra.mxu0 %v4925_v43 }
  0xb8   : > { %3463 = vmatprep.subr.bf16.mxu0 %v4931_v46 }
  0xba   : > { %296 = vmatmul.mubr.f32.gmra.mrb[16].mxu0 %v4351_v14 }
  0xbb   : > { %301 = vmatprep.mubr.f32.mxu0 %v4339_v13  ;;  %3465 = vmatpush1.bf16.msra.mxu0 %v4937_v49 }
  0xbc   : > { %3467 = vmatprep.subr.bf16.mxu0 %v4943_v52 }
  0xbe   : > { %302 = vmatmul.mubr.f32.gmra.mrb[18].mxu0 %v4343_v15 }
  0xbf   : > { %307 = vmatprep.mubr.f32.mxu0 %v4331_v0  ;;  %3469 = vmatpush1.bf16.msra.mxu0 %v4949_v53 }
  0xc0   : > { %3471 = vmatprep.subr.bf16.mxu0 %v4955_v54 }
  0xc2   : > { %308 = vmatmul.mubr.f32.gmra.mrb[20].mxu0 %v4335_v10 }
  0xc3   : > { %313 = vmatprep.mubr.f32.mxu0 %v4323_v2  ;;  %3473 = vmatpush1.bf16.msra.mxu0 %v4961_v55  ;;  %v7903_v55 = vld [vmem:[#allocation116_spill] sm:$0xff] }
  0xc4   : > { %3475 = vmatprep.subr.bf16.mxu0 %v4967_v56 }
  0xc6   : > { %314 = vmatmul.mubr.f32.gmra.mrb[22].mxu0 %v4327_v1 }
  0xc7   : > { %319 = vmatprep.mubr.f32.mxu0 %v4315_v4  ;;  %3477 = vmatpush1.bf16.msra.mxu0 %v4973_v57 }
  0xc8   : > { %3479 = vmatprep.subr.bf16.mxu0 %v4979_v58  ;;  %v7901_v58 = vld [vmem:[#allocation14_spill] sm:$0xff] }
  0xca   : > { %320 = vmatmul.mubr.f32.gmra.mrb[24].mxu0 %v4319_v3 }
  0xcb   : > { %325 = vmatprep.mubr.f32.mxu0 %v4307_v6  ;;  %3481 = vmatpush1.bf16.msra.mxu0 %v4985_v59  ;;  %v7902_v6 = vld [vmem:[#allocation15_spill] sm:$0xff] }
  0xcc   : > { %3483 = vmatprep.subr.bf16.mxu0 %v4991_v60 }
  0xce   : > { %326 = vmatmul.mubr.f32.gmra.mrb[26].mxu0 %v7894_v47 }
  0xcf   : > { %331 = vmatprep.mubr.f32.mxu0 %v7895_v48  ;;  %3485 = vmatpush1.bf16.msra.mxu0 %v4997_v61  ;;  %v5097_v61 = vstv %s7505_s0 }
  0xd0   : > { %3487 = vmatprep.subr.bf16.mxu0 %v5003_v62 }
  0xd2   : > { %332 = vmatmul.mubr.f32.gmra.mrb[28].mxu0 %v7896_v50 }
  0xd3   : > { %337 = vmatprep.mubr.f32.mxu0 %v7897_v51  ;;  %3489 = vmatpush1.bf16.msra.mxu0 %v5009_v63  ;;  %v7899_v63 = vld [vmem:[#allocation12_spill] sm:$0xff]  ;;  %v7900_v51 = vld [vmem:[#allocation13_spill] sm:$0xff] }
  0xd4   : > { %3491 = vmatprep.subr.bf16.mxu0 %v5015_v28 }
  0xd6   : > { %338 = vmatmul.mubr.f32.gmra.mrb[30].mxu0 %v7898_v44  ;;  %v5106_v44 = vstv %s441_s17 }
  0xd7   : > { %3493 = vmatpush1.bf16.msra.mxu0 %v5021_v5 }
  0xd8   : > { %3559 = vmatprep.subr.bf16.mxu0 %v4838_v9 }
 0x16d   : > { %v249_v45 = vpop.f32.mrb[0].mxu0 }
 0x16e   : > { %v344_v62 = vsub.f32 %v7899_v63, %v249_v45  ;;  %v251_v28 = vpop.f32.mrb[1].mxu0 }
 0x16f   : > { %v345_v60 = vsub.f32 %v7900_v51, %v251_v28  ;;  %v5117_v28 = vstv %s141_s12  ;;  %v7906_v51 = vld [vmem:[#allocation17_spill] sm:$0xff] }
 0x170   : > { %v377_v5 = vmul.f32 %v5097_v61, %v344_v62 }
 0x171   : > { %v378_v9 = vmul.f32 %v5097_v61, %v345_v60  ;;  %v255_v59 = vpop.f32.mrb[2].mxu0 }
 0x172   : > { %v409_v48 = vadd.f32 %v4415_v30, %v377_v5  ;;  %v346_v50 = vsub.f32 %v7901_v58, %v255_v59  ;;  %v257_v57 = vpop.f32.mrb[3].mxu0 }
 0x173   : > { %v347_v47 = vsub.f32 %v7902_v6, %v257_v57  ;;  %v410_v4 = vadd.f32 %v7903_v55, %v378_v9  ;;  %v7904_v6 = vld [vmem:[#allocation16_spill] sm:$0xff] }
 0x174   : > { %v443_v62 = vmax.f32 %v5106_v44, %v409_v48  ;;  %v379_v60 = vmul.f32 %v5097_v61, %v346_v50  ;;  %v7905_v57 = vmov %v7904_v6 }
 0x175   : > { %v380_v45 = vmul.f32 %v5097_v61, %v347_v47  ;;  %v261_v5 = vpop.f32.mrb[4].mxu0  ;;  %v444_v30 = vmax.f32 %v5106_v44, %v410_v4 }
 0x176   : > { %v411_v59 = vadd.f32 %v4407_v31, %v379_v60  ;;  %v348_v56 = vsub.f32 %v7904_v6, %v261_v5  ;;  %v263_v9 = vpop.f32.mrb[5].mxu0  ;;  %v476_v55 = vmin.f32 %v5117_v28, %v443_v62  ;;  %v7907_v62 = vld [vmem:[#allocation18_spill] sm:$0xff] }
 0x177   : > { %v412_v58 = vadd.f32 %v4403_v29, %v380_v45  ;;  %v349_v63 = vsub.f32 %v7906_v51, %v263_v9  ;;  %v477_v54 = vmin.f32 %v5117_v28, %v444_v30  ;;  %v7908_v51 = vld [vmem:[#allocation19_spill] sm:$0xff] }
 0x178   : > { %v445_v50 = vmax.f32 %v5106_v44, %v411_v59  ;;  %v381_v47 = vmul.f32 %v5097_v61, %v348_v56  ;;  %v5137_v45 = vsub.f32 %v409_v48, %v476_v55 }
 0x179   : > { %v446_v3 = vmax.f32 %v5106_v44, %v412_v58  ;;  %v382_v53 = vmul.f32 %v5097_v61, %v349_v63  ;;  %v267_v31 = vpop.f32.mrb[6].mxu0  ;;  %v5133_v60 = vsub.f32 %v410_v4, %v477_v54 }
 0x17a   : > { %v413_v5 = vadd.f32 %v4399_v26, %v381_v47  ;;  %v350_v6 = vsub.f32 %v7907_v62, %v267_v31  ;;  %v269_v29 = vpop.f32.mrb[7].mxu0  ;;  %v478_v30 = vmin.f32 %v5117_v28, %v445_v50 }
 0x17b   : > { %v414_v9 = vadd.f32 %v4395_v24, %v382_v53  ;;  %v351_v56 = vsub.f32 %v7908_v51, %v269_v29  ;;  %604 = vmatprep.mubr.f32.mxu1 %v5133_v60  ;;  %v479_v63 = vmin.f32 %v5117_v28, %v446_v3  ;;  %v7909_v53 = vld [vmem:[#allocation20_spill] sm:$0xff]  ;;  %v7910_v51 = vld [vmem:[#allocation21_spill] sm:$0xff] }
 0x17c   : > { %v447_v4 = vmax.f32 %v5106_v44, %v413_v5  ;;  %v383_v54 = vmul.f32 %v5097_v61, %v350_v6  ;;  %605 = vmatmul.mubr.f32.vlgmr.msra.gmra.mrb[0].mxu1 %v5137_v45  ;;  %v5154_v31 = vsub.f32 %v411_v59, %v478_v30 }
 0x17d   : > { %v448_v26 = vmax.f32 %v5106_v44, %v414_v9  ;;  %v384_v48 = vmul.f32 %v5097_v61, %v351_v56  ;;  %v273_v55 = vpop.f32.mrb[8].mxu0  ;;  %v5149_v50 = vsub.f32 %v412_v58, %v479_v63  ;;  %3497 = vmatpush1.bf16.msra.mxu1 %v4842_v11 }
 0x17e   : > { %v415_v24 = vadd.f32 %v4391_v27, %v383_v54  ;;  %v352_v47 = vsub.f32 %v7909_v53, %v273_v55  ;;  %v275_v3 = vpop.f32.mrb[9].mxu0  ;;  %v480_v6 = vmin.f32 %v5117_v28, %v447_v4  ;;  %3499 = vmatprep.subr.bf16.mxu1 %v4846_v7  ;;  %v7912_v7 = vld [vmem:[#allocation23_spill] sm:$0xff] }
 0x17f   : > { %v416_v29 = vadd.f32 %v4387_v25, %v384_v48  ;;  %v353_v56 = vsub.f32 %v7910_v51, %v275_v3  ;;  %610 = vmatprep.mubr.f32.mxu1 %v5149_v50  ;;  %v481_v58 = vmin.f32 %v5117_v28, %v448_v26  ;;  %v7911_v48 = vld [vmem:[#allocation22_spill] sm:$0xff] }
 0x180   : > { %v449_v63 = vmax.f32 %v5106_v44, %v415_v24  ;;  %v385_v27 = vmul.f32 %v5097_v61, %v352_v47  ;;  %611 = vmatmul.mubr.f32.gmra.mrb[2].mxu1 %v5154_v31  ;;  %v5172_v3 = vsub.f32 %v413_v5, %v480_v6 }
 0x181   : > { %v450_v59 = vmax.f32 %v5106_v44, %v416_v29  ;;  %v386_v30 = vmul.f32 %v5097_v61, %v353_v56  ;;  %v279_v4 = vpop.f32.mrb[10].mxu0  ;;  %v5167_v54 = vsub.f32 %v414_v9, %v481_v58  ;;  %3501 = vmatpush1.bf16.msra.mxu1 %v4852_v8 }
 0x182   : > { %v417_v25 = vadd.f32 %v4383_v22, %v385_v27  ;;  %v354_v55 = vsub.f32 %v7911_v48, %v279_v4  ;;  %v281_v26 = vpop.f32.mrb[11].mxu0  ;;  %v482_v47 = vmin.f32 %v5117_v28, %v449_v63  ;;  %3503 = vmatprep.subr.bf16.mxu1 %v4857_v33  ;;  %v7915_v33 = vld [vmem:[#allocation25_spill] sm:$0xff] }
 0x183   : > { %v418_v51 = vadd.f32 %v4379_v20, %v386_v30  ;;  %v355_v56 = vsub.f32 %v7912_v7, %v281_v26  ;;  %616 = vmatprep.mubr.f32.mxu1 %v5167_v54  ;;  %v483_v9 = vmin.f32 %v5117_v28, %v450_v59  ;;  %v7913_v20 = vld [vmem:[#allocation24_spill] sm:$0xff] }
 0x184   : > { %v451_v58 = vmax.f32 %v5106_v44, %v417_v25  ;;  %v387_v22 = vmul.f32 %v5097_v61, %v354_v55  ;;  %617 = vmatmul.mubr.f32.gmra.mrb[4].mxu1 %v5172_v3  ;;  %v7914_v53 = vmov %v7913_v20  ;;  %v5190_v4 = vsub.f32 %v415_v24, %v482_v47 }
 0x185   : > { %v452_v5 = vmax.f32 %v5106_v44, %v418_v51  ;;  %v388_v6 = vmul.f32 %v5097_v61, %v355_v56  ;;  %v285_v63 = vpop.f32.mrb[12].mxu0  ;;  %v5185_v27 = vsub.f32 %v416_v29, %v483_v9  ;;  %3505 = vmatpush1.bf16.msra.mxu1 %v4864_v32 }
 0x186   : > { %v419_v7 = vadd.f32 %v4375_v23, %v387_v22  ;;  %v356_v30 = vsub.f32 %v7913_v20, %v285_v63  ;;  %v287_v59 = vpop.f32.mrb[13].mxu0  ;;  %v484_v55 = vmin.f32 %v5117_v28, %v451_v58  ;;  %3507 = vmatprep.subr.bf16.mxu1 %v4869_v34  ;;  %v7918_v34 = vld [vmem:[#allocation27_spill] sm:$0xff] }
 0x187   : > { %v420_v26 = vadd.f32 %v4371_v21, %v388_v6  ;;  %v357_v56 = vsub.f32 %v7915_v33, %v287_v59  ;;  %622 = vmatprep.mubr.f32.mxu1 %v5185_v27  ;;  %v485_v29 = vmin.f32 %v5117_v28, %v452_v5  ;;  %v7916_v6 = vld [vmem:[#allocation26_spill] sm:$0xff] }
 0x188   : > { %v453_v9 = vmax.f32 %v5106_v44, %v419_v7  ;;  %v389_v23 = vmul.f32 %v5097_v61, %v356_v30  ;;  %623 = vmatmul.mubr.f32.gmra.mrb[6].mxu1 %v5190_v4  ;;  %v7917_v63 = vmov %v7916_v6  ;;  %v5208_v59 = vsub.f32 %v417_v25, %v484_v55 }
 0x189   : > { %v454_v24 = vmax.f32 %v5106_v44, %v420_v26  ;;  %v390_v47 = vmul.f32 %v5097_v61, %v357_v56  ;;  %v291_v58 = vpop.f32.mrb[14].mxu0  ;;  %v5203_v22 = vsub.f32 %v418_v51, %v485_v29  ;;  %3509 = vmatpush1.bf16.msra.mxu1 %v4877_v35 }
 0x18a   : > { %v421_v21 = vadd.f32 %v4367_v18, %v389_v23  ;;  %v358_v20 = vsub.f32 %v7916_v6, %v291_v58  ;;  %v293_v5 = vpop.f32.mrb[15].mxu0  ;;  %v486_v30 = vmin.f32 %v5117_v28, %v453_v9  ;;  %3511 = vmatprep.subr.bf16.mxu1 %v4883_v36 }
 0x18b   : > { %v422_v33 = vadd.f32 %v4363_v16, %v390_v47  ;;  %v359_v56 = vsub.f32 %v7918_v34, %v293_v5  ;;  %628 = vmatprep.mubr.f32.mxu1 %v5203_v22  ;;  %v487_v51 = vmin.f32 %v5117_v28, %v454_v24  ;;  %v7919_v47 = vld [vmem:[#allocation28_spill] sm:$0xff]  ;;  %v7920_v34 = vld [vmem:[#allocation29_spill] sm:$0xff] }
 0x18c   : > { %v455_v29 = vmax.f32 %v5106_v44, %v421_v21  ;;  %v391_v18 = vmul.f32 %v5097_v61, %v358_v20  ;;  %629 = vmatmul.mubr.f32.gmra.mrb[8].mxu1 %v5208_v59  ;;  %v5226_v6 = vsub.f32 %v419_v7, %v486_v30 }
 0x18d   : > { %v456_v25 = vmax.f32 %v5106_v44, %v422_v33  ;;  %v392_v55 = vmul.f32 %v5097_v61, %v359_v56  ;;  %v297_v9 = vpop.f32.mrb[16].mxu0  ;;  %v5221_v23 = vsub.f32 %v420_v26, %v487_v51  ;;  %3513 = vmatpush1.bf16.msra.mxu1 %v4889_v37 }
 0x18e   : > { %v423_v16 = vadd.f32 %v4359_v19, %v391_v18  ;;  %v360_v58 = vsub.f32 %v7919_v47, %v297_v9  ;;  %v299_v24 = vpop.f32.mrb[17].mxu0  ;;  %v488_v20 = vmin.f32 %v5117_v28, %v455_v29  ;;  %3515 = vmatprep.subr.bf16.mxu1 %v4895_v38  ;;  %v7922_v38 = vld [vmem:[#allocation31_spill] sm:$0xff] }
 0x18f   : > { %v424_v5 = vadd.f32 %v4355_v17, %v392_v55  ;;  %v361_v56 = vsub.f32 %v7920_v34, %v299_v24  ;;  %634 = vmatprep.mubr.f32.mxu1 %v5221_v23  ;;  %v489_v26 = vmin.f32 %v5117_v28, %v456_v25  ;;  %v7921_v55 = vld [vmem:[#allocation30_spill] sm:$0xff] }
 0x190   : > { %v457_v51 = vmax.f32 %v5106_v44, %v423_v16  ;;  %v393_v19 = vmul.f32 %v5097_v61, %v360_v58  ;;  %635 = vmatmul.mubr.f32.gmra.mrb[10].mxu1 %v5226_v6  ;;  %v5244_v24 = vsub.f32 %v421_v21, %v488_v20 }
 0x191   : > { %v458_v7 = vmax.f32 %v5106_v44, %v424_v5  ;;  %v394_v30 = vmul.f32 %v5097_v61, %v361_v56  ;;  %v303_v29 = vpop.f32.mrb[18].mxu0  ;;  %v5239_v18 = vsub.f32 %v422_v33, %v489_v26  ;;  %3517 = vmatpush1.bf16.msra.mxu1 %v4901_v39 }
 0x192   : > { %v425_v17 = vadd.f32 %v4351_v14, %v393_v19  ;;  %v362_v9 = vsub.f32 %v7921_v55, %v303_v29  ;;  %v305_v25 = vpop.f32.mrb[19].mxu0  ;;  %v490_v58 = vmin.f32 %v5117_v28, %v457_v51  ;;  %3519 = vmatprep.subr.bf16.mxu1 %v4907_v40  ;;  %v7925_v55 = vld [vmem:[#allocation33_spill] sm:$0xff] }
 0x193   : > { %v426_v34 = vadd.f32 %v4347_v12, %v394_v30  ;;  %v363_v56 = vsub.f32 %v7922_v38, %v305_v25  ;;  %640 = vmatprep.mubr.f32.mxu1 %v5239_v18  ;;  %v491_v33 = vmin.f32 %v5117_v28, %v458_v7  ;;  %v7923_v30 = vld [vmem:[#allocation32_spill] sm:$0xff] }
 0x194   : > { %v459_v26 = vmax.f32 %v5106_v44, %v425_v17  ;;  %v395_v14 = vmul.f32 %v5097_v61, %v362_v9  ;;  %641 = vmatmul.mubr.f32.gmra.mrb[12].mxu1 %v5244_v24  ;;  %v7924_v38 = vmov %v7923_v30  ;;  %v5262_v25 = vsub.f32 %v423_v16, %v490_v58 }
 0x195   : > { %v460_v21 = vmax.f32 %v5106_v44, %v426_v34  ;;  %v396_v20 = vmul.f32 %v5097_v61, %v363_v56  ;;  %v309_v51 = vpop.f32.mrb[20].mxu0  ;;  %v5257_v19 = vsub.f32 %v424_v5, %v491_v33  ;;  %3521 = vmatpush1.bf16.msra.mxu1 %v4913_v41 }
 0x196   : > { %v427_v12 = vadd.f32 %v4343_v15, %v395_v14  ;;  %v364_v29 = vsub.f32 %v7923_v30, %v309_v51  ;;  %v311_v7 = vpop.f32.mrb[21].mxu0  ;;  %v492_v9 = vmin.f32 %v5117_v28, %v459_v26  ;;  %3523 = vmatprep.subr.bf16.mxu1 %v4919_v42  ;;  %v7927_v42 = vld [vmem:[#allocation35_spill] sm:$0xff] }
 0x197   : > { %v428_v40 = vadd.f32 %v4339_v13, %v396_v20  ;;  %v365_v56 = vsub.f32 %v7925_v55, %v311_v7  ;;  %646 = vmatprep.mubr.f32.mxu1 %v5257_v19  ;;  %v493_v5 = vmin.f32 %v5117_v28, %v460_v21  ;;  %v7926_v20 = vld [vmem:[#allocation34_spill] sm:$0xff] }
 0x198   : > { %v461_v33 = vmax.f32 %v5106_v44, %v427_v12  ;;  %v397_v15 = vmul.f32 %v5097_v61, %v364_v29  ;;  %647 = vmatmul.mubr.f32.gmra.mrb[14].mxu1 %v5262_v25  ;;  %v5280_v7 = vsub.f32 %v425_v17, %v492_v9 }
 0x199   : > { %v462_v16 = vmax.f32 %v5106_v44, %v428_v40  ;;  %v398_v58 = vmul.f32 %v5097_v61, %v365_v56  ;;  %v315_v26 = vpop.f32.mrb[22].mxu0  ;;  %v5275_v14 = vsub.f32 %v426_v34, %v493_v5  ;;  %3525 = vmatpush1.bf16.msra.mxu1 %v4925_v43  ;;  %v7937_v43 = vld [vmem:[#allocation39_spill] sm:$0xff] }
 0x19a   : > { %v429_v13 = vadd.f32 %v4335_v10, %v397_v15  ;;  %v366_v30 = vsub.f32 %v7926_v20, %v315_v26  ;;  %v317_v21 = vpop.f32.mrb[23].mxu0  ;;  %v494_v29 = vmin.f32 %v5117_v28, %v461_v33  ;;  %3527 = vmatprep.subr.bf16.mxu1 %v4931_v46  ;;  %v7936_v46 = vld [vmem:[#allocation114_spill] sm:$0xff] }
 0x19b   : > { %v430_v55 = vadd.f32 %v4331_v0, %v398_v58  ;;  %v367_v56 = vsub.f32 %v7927_v42, %v317_v21  ;;  %652 = vmatprep.mubr.f32.mxu1 %v5275_v14  ;;  %v495_v34 = vmin.f32 %v5117_v28, %v462_v16  ;;  %v7928_v58 = vld [vmem:[#allocation36_spill] sm:$0xff]  ;;  %v7929_v42 = vld [vmem:[#allocation37_spill] sm:$0xff] }
 0x19c   : > { %v463_v5 = vmax.f32 %v5106_v44, %v429_v13  ;;  %v399_v10 = vmul.f32 %v5097_v61, %v366_v30  ;;  %653 = vmatmul.mubr.f32.gmra.mrb[16].mxu1 %v5280_v7  ;;  %v5298_v20 = vsub.f32 %v427_v12, %v494_v29 }
 0x19d   : > { %v464_v17 = vmax.f32 %v5106_v44, %v430_v55  ;;  %v400_v9 = vmul.f32 %v5097_v61, %v367_v56  ;;  %v321_v33 = vpop.f32.mrb[24].mxu0  ;;  %v5293_v15 = vsub.f32 %v428_v40, %v495_v34  ;;  %3529 = vmatpush1.bf16.msra.mxu1 %v4937_v49  ;;  %v7935_v49 = vld [vmem:[#allocation136_spill] sm:$0xff] }
 0x19e   : > { %v431_v0 = vadd.f32 %v4327_v1, %v399_v10  ;;  %v368_v26 = vsub.f32 %v7928_v58, %v321_v33  ;;  %v323_v16 = vpop.f32.mrb[25].mxu0  ;;  %v496_v30 = vmin.f32 %v5117_v28, %v463_v5  ;;  %3531 = vmatprep.subr.bf16.mxu1 %v4943_v52 }
 0x19f   : > { %v432_v21 = vadd.f32 %v4323_v2, %v400_v9  ;;  %v369_v56 = vsub.f32 %v7929_v42, %v323_v16  ;;  %658 = vmatprep.mubr.f32.mxu1 %v5293_v15  ;;  %v497_v40 = vmin.f32 %v5117_v28, %v464_v17  ;;  %v7931_v2 = vld [vmem:[#allocation135_spill] sm:$0xff]  ;;  %v7933_v16 = vld [vmem:[#allocation38_spill] sm:$0xff] }
 0x1a0   : > { %v465_v34 = vmax.f32 %v5106_v44, %v431_v0  ;;  %v401_v1 = vmul.f32 %v5097_v61, %v368_v26  ;;  %659 = vmatmul.mubr.f32.gmra.mrb[18].mxu1 %v5298_v20  ;;  %v7932_v9 = vld [vmem:[#allocation115_spill] sm:$0xff]  ;;  %v5316_v58 = vsub.f32 %v429_v13, %v496_v30  ;;  %v7943_v42 = vld [vmem:[#allocation138_spill] sm:$0xff] }
 0x1a1   : > { %v466_v12 = vmax.f32 %v5106_v44, %v432_v21  ;;  %v402_v29 = vmul.f32 %v5097_v61, %v369_v56  ;;  %v327_v5 = vpop.f32.mrb[26].mxu0  ;;  %v5311_v10 = vsub.f32 %v430_v55, %v497_v40  ;;  %3533 = vmatpush1.bf16.msra.mxu1 %v7931_v2  ;;  %v7944_v2 = vld [vmem:[#allocation112_spill] sm:$0xff] }
 0x1a2   : > { %v433_v33 = vadd.f32 %v7932_v9, %v401_v1  ;;  %v370_v52 = vsub.f32 %v7933_v16, %v327_v5  ;;  %v329_v17 = vpop.f32.mrb[27].mxu0  ;;  %7934 = vst [vmem:[#allocation115_spill] sm:$0xff] %v5316_v58  ;;  %v498_v26 = vmin.f32 %v5117_v28, %v465_v34  ;;  %3535 = vmatprep.subr.bf16.mxu1 %v7935_v49  ;;  %v7941_v16 = vld [vmem:[#allocation40_spill] sm:$0xff] }
 0x1a3   : > { %7930 = vst [vmem:[#allocation116_spill] sm:$0xff] %v5311_v10  ;;  %v434_v51 = vadd.f32 %v7936_v46, %v402_v29  ;;  %v371_v56 = vsub.f32 %v7937_v43, %v329_v17  ;;  %664 = vmatprep.mubr.f32.mxu1 %v5311_v10  ;;  %v499_v55 = vmin.f32 %v5117_v28, %v466_v12  ;;  %v7939_v46 = vld [vmem:[#allocation137_spill] sm:$0xff]  ;;  %v7950_v43 = vld [vmem:[#allocation140_spill] sm:$0xff] }
 0x1a4   : > { %v467_v40 = vmax.f32 %v5106_v44, %v433_v33  ;;  %v403_v1 = vmul.f32 %v5097_v61, %v370_v52  ;;  %665 = vmatmul.mubr.f32.gmra.mrb[20].mxu1 %v5316_v58  ;;  %v7940_v29 = vld [vmem:[#allocation113_spill] sm:$0xff]  ;;  %v5334_v49 = vsub.f32 %v431_v0, %v498_v26 }
 0x1a5   : > { %v468_v13 = vmax.f32 %v5106_v44, %v434_v51  ;;  %v404_v30 = vmul.f32 %v5097_v61, %v371_v56  ;;  %v333_v34 = vpop.f32.mrb[28].mxu0  ;;  %v5329_v5 = vsub.f32 %v432_v21, %v499_v55  ;;  %3537 = vmatpush1.bf16.msra.mxu1 %v7939_v46  ;;  %v7945_v58 = vld [vmem:[#allocation41_spill] sm:$0xff]  ;;  %v7951_v46 = vld [vmem:[#allocation110_spill] sm:$0xff] }
 0x1a6   : > { %v435_v9 = vadd.f32 %v7940_v29, %v403_v1  ;;  %v372_v17 = vsub.f32 %v7941_v16, %v333_v34  ;;  %v335_v12 = vpop.f32.mrb[29].mxu0  ;;  %7942 = vst [vmem:[#allocation113_spill] sm:$0xff] %v5334_v49  ;;  %v500_v52 = vmin.f32 %v5117_v28, %v467_v40  ;;  %3539 = vmatprep.subr.bf16.mxu1 %v7943_v42  ;;  %v7948_v16 = vld [vmem:[#allocation42_spill] sm:$0xff] }
 0x1a7   : > { %7938 = vst [vmem:[#allocation114_spill] sm:$0xff] %v5329_v5  ;;  %v436_v10 = vadd.f32 %v7944_v2, %v404_v30  ;;  %v373_v56 = vsub.f32 %v7945_v58, %v335_v12  ;;  %670 = vmatprep.mubr.f32.mxu1 %v5329_v5  ;;  %v501_v21 = vmin.f32 %v5117_v28, %v468_v13  ;;  %v7946_v2 = vld [vmem:[#allocation139_spill] sm:$0xff] }
 0x1a8   : > { %v469_v55 = vmax.f32 %v5106_v44, %v435_v9  ;;  %v405_v1 = vmul.f32 %v5097_v61, %v372_v17  ;;  %671 = vmatmul.mubr.f32.gmra.mrb[22].mxu1 %v5334_v49  ;;  %v7947_v30 = vld [vmem:[#allocation111_spill] sm:$0xff]  ;;  %v7949_v58 = vmov %v7948_v16  ;;  %v5352_v42 = vsub.f32 %v433_v33, %v500_v52 }
 0x1a9   : > { %v470_v0 = vmax.f32 %v5106_v44, %v436_v10  ;;  %v406_v26 = vmul.f32 %v5097_v61, %v373_v56  ;;  %v339_v40 = vpop.f32.mrb[30].mxu0  ;;  %v5347_v34 = vsub.f32 %v434_v51, %v501_v21  ;;  %3541 = vmatpush1.bf16.msra.mxu1 %v7946_v2  ;;  %v7952_v49 = vld [vmem:[#allocation43_spill] sm:$0xff] }
 0x1aa   : > { %v437_v29 = vadd.f32 %v7947_v30, %v405_v1  ;;  %v374_v12 = vsub.f32 %v7948_v16, %v339_v40  ;;  %v341_v13 = vpop.f32.mrb[31].mxu0  ;;  %v502_v17 = vmin.f32 %v5117_v28, %v469_v55  ;;  %3543 = vmatprep.subr.bf16.mxu1 %v7950_v43  ;;  %v7953_v40 = vld [vmem:[#allocation141_spill] sm:$0xff]  ;;  %v7955_v16 = vld [vmem:[#allocation142_spill] sm:$0xff] }
 0x1ab   : > { %v438_v5 = vadd.f32 %v7951_v46, %v406_v26  ;;  %v375_v56 = vsub.f32 %v7952_v49, %v341_v13  ;;  %676 = vmatprep.mubr.f32.mxu1 %v5347_v34  ;;  %v503_v51 = vmin.f32 %v5117_v28, %v470_v0  ;;  %v7954_v46 = vld [vmem:[#allocation109_spill] sm:$0xff]  ;;  %v7956_v13 = vld [vmem:[#allocation108_spill] sm:$0xff] }
 0x1ac   : > { %v471_v21 = vmax.f32 %v5106_v44, %v437_v29  ;;  %v407_v1 = vmul.f32 %v5097_v61, %v374_v12  ;;  %677 = vmatmul.mubr.f32.gmra.mrb[24].mxu1 %v5352_v42  ;;  %v5369_v30 = vsub.f32 %v435_v9, %v502_v17  ;;  %v7958_v9 = vld [vmem:[#allocation143_spill] sm:$0xff] }
 0x1ad   : > { %v472_v33 = vmax.f32 %v5106_v44, %v438_v5  ;;  %v408_v52 = vmul.f32 %v5097_v61, %v375_v56  ;;  %v5365_v55 = vsub.f32 %v436_v10, %v503_v51  ;;  %3545 = vmatpush1.bf16.msra.mxu1 %v7953_v40  ;;  %v7969_v40 = vld [vmem:[#allocation15_spill] sm:$0xff] }
 0x1ae   : > { %v439_v26 = vadd.f32 %v7954_v46, %v407_v1  ;;  %v504_v0 = vmin.f32 %v5117_v28, %v471_v21  ;;  %3547 = vmatprep.subr.bf16.mxu1 %v7955_v16  ;;  %v7959_v1 = vld [vmem:[#allocation144_spill] sm:$0xff]  ;;  %v7961_v46 = vld [vmem:[#allocation145_spill] sm:$0xff] }
 0x1af   : > { %v440_v12 = vadd.f32 %v7956_v13, %v408_v52  ;;  %682 = vmatprep.mubr.f32.mxu1 %v5365_v55  ;;  %v505_v49 = vmin.f32 %v5117_v28, %v472_v33 }
 0x1b0   : > { %v473_v56 = vmax.f32 %v5106_v44, %v439_v26  ;;  %683 = vmatmul.mubr.f32.gmra.mrb[26].mxu1 %v5369_v30  ;;  %v5382_v17 = vsub.f32 %v437_v29, %v504_v0  ;;  %v7964_v29 = vld [vmem:[#allocation147_spill] sm:$0xff]  ;;  %v7965_v0 = vld [vmem:[#allocation117_spill] sm:$0xff] }
 0x1b1   : > { %v474_v10 = vmax.f32 %v5106_v44, %v440_v12  ;;  %v5379_v51 = vsub.f32 %v438_v5, %v505_v49  ;;  %3549 = vmatpush1.bf16.msra.mxu1 %v7958_v9  ;;  %v7963_v5 = vld [vmem:[#allocation146_spill] sm:$0xff] }
 0x1b2   : > { %v506_v21 = vmin.f32 %v5117_v28, %v473_v56  ;;  %3551 = vmatprep.subr.bf16.mxu1 %v7959_v1  ;;  %v7966_v56 = vld [vmem:[#allocation12_spill] sm:$0xff] }
 0x1b3   : > { %7957 = vst [vmem:[#allocation112_spill] sm:$0xff] %v5379_v51  ;;  %688 = vmatprep.mubr.f32.mxu1 %v5379_v51  ;;  %v507_v33 = vmin.f32 %v5117_v28, %v474_v10 }
 0x1b4   : > { %689 = vmatmul.mubr.f32.gmra.mrb[28].mxu1 %v5382_v17  ;;  %v5392_v49 = vsub.f32 %v439_v26, %v506_v21 }
 0x1b5   : > { %v5389_v52 = vsub.f32 %v440_v12, %v507_v33  ;;  %3553 = vmatpush1.bf16.msra.mxu1 %v7961_v46  ;;  %v7967_v12 = vld [vmem:[#allocation13_spill] sm:$0xff] }
 0x1b6   : > { %7962 = vst [vmem:[#allocation111_spill] sm:$0xff] %v5392_v49  ;;  %3555 = vmatprep.subr.bf16.mxu1 %v7963_v5 }
 0x1b7   : > { %7960 = vst [vmem:[#allocation139_spill] sm:$0xff] %v5389_v52  ;;  %694 = vmatprep.mubr.f32.mxu1 %v5389_v52  ;;  %v7968_v52 = vld [vmem:[#allocation14_spill] sm:$0xff] }
 0x1b8   : > { %695 = vmatmul.mubr.f32.gmra.mrb[30].mxu1 %v5392_v49 }
 0x1b9   : > { %3557 = vmatpush1.bf16.msra.mxu1 %v7964_v29 }
 0x1ba   : > { %3623 = vmatprep.subr.bf16.mxu1 %v7965_v0 }
 0x24f   : > { %v606_v13 = vpop.f32.mrb[0].mxu1 }
 0x250   : > { %v701_v10 = vsub.f32 %v7966_v56, %v606_v13  ;;  %v608_v1 = vpop.f32.mrb[1].mxu1 }
 0x251   : > { %v702_v9 = vsub.f32 %v7967_v12, %v608_v1 }
 0x252   : > { %v733_v46 = vmul.f32 %v701_v10, %v5097_v61 }
 0x253   : > { %v734_v26 = vmul.f32 %v702_v9, %v5097_v61  ;;  %v612_v21 = vpop.f32.mrb[2].mxu1 }
 0x254   : > { %v765_v5 = vadd.f32 %v733_v46, %v5137_v45  ;;  %v703_v16 = vsub.f32 %v7968_v52, %v612_v21  ;;  %v614_v49 = vpop.f32.mrb[3].mxu1  ;;  %v7976_v52 = vld [vmem:[#allocation23_spill] sm:$0xff] }
 0x255   : > { %v766_v29 = vadd.f32 %v734_v26, %v5133_v60  ;;  %v704_v0 = vsub.f32 %v7969_v40, %v614_v49  ;;  %v7970_v26 = vld [vmem:[#allocation17_spill] sm:$0xff] }
 0x256   : > { %v797_v51 = vmax.f32 %v5106_v44, %v765_v5  ;;  %v735_v13 = vmul.f32 %v703_v16, %v5097_v61 }
 0x257   : > { %v798_v1 = vmax.f32 %v5106_v44, %v766_v29  ;;  %v736_v10 = vmul.f32 %v704_v0, %v5097_v61  ;;  %v618_v12 = vpop.f32.mrb[4].mxu1 }
 0x258   : > { %v829_v9 = vmin.f32 %v5117_v28, %v797_v51  ;;  %v767_v45 = vadd.f32 %v735_v13, %v5154_v31  ;;  %v705_v46 = vsub.f32 %v7905_v57, %v618_v12  ;;  %v620_v21 = vpop.f32.mrb[5].mxu1 }
 0x259   : > { %v768_v60 = vadd.f32 %v736_v10, %v5149_v50  ;;  %v706_v49 = vsub.f32 %v7970_v26, %v620_v21  ;;  %v830_v40 = vmin.f32 %v5117_v28, %v798_v1  ;;  %v7971_v21 = vld [vmem:[#allocation19_spill] sm:$0xff] }
 0x25a   : > { %v799_v16 = vmax.f32 %v5106_v44, %v767_v45  ;;  %v737_v33 = vmul.f32 %v705_v46, %v5097_v61  ;;  %v5423_v31 = vsub.f32 %v765_v5, %v829_v9 }
 0x25b   : > { %v800_v0 = vmax.f32 %v5106_v44, %v768_v60  ;;  %v738_v56 = vmul.f32 %v706_v49, %v5097_v61  ;;  %v624_v51 = vpop.f32.mrb[6].mxu1  ;;  %v5421_v43 = vsub.f32 %v766_v29, %v830_v40 }
 0x25c   : > { %v769_v13 = vadd.f32 %v737_v33, %v5172_v3  ;;  %v707_v50 = vsub.f32 %v7907_v62, %v624_v51  ;;  %v626_v10 = vpop.f32.mrb[7].mxu1  ;;  %v831_v1 = vmin.f32 %v5117_v28, %v799_v16 }
 0x25d   : > { %v770_v12 = vadd.f32 %v738_v56, %v5167_v54  ;;  %v708_v46 = vsub.f32 %v7971_v21, %v626_v10  ;;  %957 = vmatprep.mubr.f32.mxu0 %v5421_v43  ;;  %v832_v26 = vmin.f32 %v5117_v28, %v800_v0  ;;  %v7972_v56 = vld [vmem:[#allocation20_spill] sm:$0xff]  ;;  %v7974_v21 = vld [vmem:[#allocation21_spill] sm:$0xff] }
 0x25e   : > { %v801_v40 = vmax.f32 %v5106_v44, %v769_v13  ;;  %v739_v5 = vmul.f32 %v707_v50, %v5097_v61  ;;  %958 = vmatmul.mubr.f32.vlgmr.msra.gmra.mrb[32].mxu0 %v5423_v31  ;;  %v5442_v0 = vsub.f32 %v767_v45, %v831_v1  ;;  %v7973_v50 = vld [vmem:[#allocation118_spill] sm:$0xff] }
 0x25f   : > { %v802_v3 = vmax.f32 %v5106_v44, %v770_v12  ;;  %v740_v29 = vmul.f32 %v708_v46, %v5097_v61  ;;  %v630_v33 = vpop.f32.mrb[8].mxu1  ;;  %v5437_v9 = vsub.f32 %v768_v60, %v832_v26  ;;  %3561 = vmatpush1.bf16.msra.mxu0 %v4842_v11 }
 0x260   : > { %v771_v54 = vadd.f32 %v739_v5, %v5190_v4  ;;  %v709_v49 = vsub.f32 %v7972_v56, %v630_v33  ;;  %v632_v16 = vpop.f32.mrb[9].mxu1  ;;  %v833_v51 = vmin.f32 %v5117_v28, %v801_v40  ;;  %3563 = vmatprep.subr.bf16.mxu0 %v7973_v50 }
 0x261   : > { %v772_v10 = vadd.f32 %v740_v29, %v5185_v27  ;;  %v710_v46 = vsub.f32 %v7974_v21, %v632_v16  ;;  %963 = vmatprep.mubr.f32.mxu0 %v5437_v9  ;;  %v834_v60 = vmin.f32 %v5117_v28, %v802_v3  ;;  %v7975_v16 = vld [vmem:[#allocation120_spill] sm:$0xff] }
 0x262   : > { %v803_v26 = vmax.f32 %v5106_v44, %v771_v54  ;;  %v741_v4 = vmul.f32 %v709_v49, %v5097_v61  ;;  %964 = vmatmul.mubr.f32.gmra.mrb[34].mxu0 %v5442_v0  ;;  %v5460_v33 = vsub.f32 %v769_v13, %v833_v51 }
 0x263   : > { %v804_v45 = vmax.f32 %v5106_v44, %v772_v10  ;;  %v742_v1 = vmul.f32 %v710_v46, %v5097_v61  ;;  %v636_v40 = vpop.f32.mrb[10].mxu1  ;;  %v5455_v5 = vsub.f32 %v770_v12, %v834_v60  ;;  %3565 = vmatpush1.bf16.msra.mxu0 %v4852_v8 }
 0x264   : > { %v773_v27 = vadd.f32 %v741_v4, %v5208_v59  ;;  %v711_v29 = vsub.f32 %v7911_v48, %v636_v40  ;;  %v638_v3 = vpop.f32.mrb[11].mxu1  ;;  %v835_v49 = vmin.f32 %v5117_v28, %v803_v26  ;;  %3567 = vmatprep.subr.bf16.mxu0 %v7975_v16  ;;  %v7978_v16 = vld [vmem:[#allocation25_spill] sm:$0xff] }
 0x265   : > { %v774_v21 = vadd.f32 %v742_v1, %v5203_v22  ;;  %v712_v46 = vsub.f32 %v7976_v52, %v638_v3  ;;  %969 = vmatprep.mubr.f32.mxu0 %v5455_v5  ;;  %v836_v12 = vmin.f32 %v5117_v28, %v804_v45  ;;  %v7977_v3 = vld [vmem:[#allocation122_spill] sm:$0xff]  ;;  %v7979_v48 = vmov %v7978_v16 }
 0x266   : > { %v805_v60 = vmax.f32 %v5106_v44, %v773_v27  ;;  %v743_v59 = vmul.f32 %v711_v29, %v5097_v61  ;;  %970 = vmatmul.mubr.f32.gmra.mrb[36].mxu0 %v5460_v33  ;;  %v5478_v40 = vsub.f32 %v771_v54, %v835_v49 }
 0x267   : > { %v806_v13 = vmax.f32 %v5106_v44, %v774_v21  ;;  %v744_v51 = vmul.f32 %v712_v46, %v5097_v61  ;;  %v642_v26 = vpop.f32.mrb[12].mxu1  ;;  %v5473_v4 = vsub.f32 %v772_v10, %v836_v12  ;;  %3569 = vmatpush1.bf16.msra.mxu0 %v4864_v32 }
 0x268   : > { %v775_v22 = vadd.f32 %v743_v59, %v5226_v6  ;;  %v713_v1 = vsub.f32 %v7914_v53, %v642_v26  ;;  %v644_v45 = vpop.f32.mrb[13].mxu1  ;;  %v837_v29 = vmin.f32 %v5117_v28, %v805_v60  ;;  %3571 = vmatprep.subr.bf16.mxu0 %v7977_v3 }
 0x269   : > { %v776_v52 = vadd.f32 %v744_v51, %v5221_v23  ;;  %v714_v46 = vsub.f32 %v7978_v16, %v644_v45  ;;  %975 = vmatprep.mubr.f32.mxu0 %v5473_v4  ;;  %v838_v10 = vmin.f32 %v5117_v28, %v806_v13  ;;  %v7980_v45 = vld [vmem:[#allocation27_spill] sm:$0xff] }
 0x26a   : > { %v807_v12 = vmax.f32 %v5106_v44, %v775_v22  ;;  %v745_v6 = vmul.f32 %v713_v1, %v5097_v61  ;;  %976 = vmatmul.mubr.f32.gmra.mrb[38].mxu0 %v5478_v40  ;;  %v5496_v51 = vsub.f32 %v773_v27, %v837_v29 }
 0x26b   : > { %v808_v54 = vmax.f32 %v5106_v44, %v776_v52  ;;  %v746_v49 = vmul.f32 %v714_v46, %v5097_v61  ;;  %v648_v60 = vpop.f32.mrb[14].mxu1  ;;  %v5491_v59 = vsub.f32 %v774_v21, %v838_v10  ;;  %3573 = vmatpush1.bf16.msra.mxu0 %v4877_v35 }
 0x26c   : > { %v777_v23 = vadd.f32 %v745_v6, %v5244_v24  ;;  %v715_v16 = vsub.f32 %v7917_v63, %v648_v60  ;;  %v650_v13 = vpop.f32.mrb[15].mxu1  ;;  %v839_v26 = vmin.f32 %v5117_v28, %v807_v12  ;;  %3575 = vmatprep.subr.bf16.mxu0 %v4883_v36  ;;  %v7982_v36 = vld [vmem:[#allocation29_spill] sm:$0xff] }
 0x26d   : > { %v778_v1 = vadd.f32 %v746_v49, %v5239_v18  ;;  %v716_v46 = vsub.f32 %v7980_v45, %v650_v13  ;;  %981 = vmatprep.mubr.f32.mxu0 %v5491_v59  ;;  %v840_v21 = vmin.f32 %v5117_v28, %v808_v54  ;;  %v7981_v13 = vld [vmem:[#allocation126_spill] sm:$0xff] }
 0x26e   : > { %v809_v10 = vmax.f32 %v5106_v44, %v777_v23  ;;  %v747_v24 = vmul.f32 %v715_v16, %v5097_v61  ;;  %982 = vmatmul.mubr.f32.gmra.mrb[40].mxu0 %v5496_v51  ;;  %v5514_v60 = vsub.f32 %v775_v22, %v839_v26 }
 0x26f   : > { %v810_v27 = vmax.f32 %v5106_v44, %v778_v1  ;;  %v748_v29 = vmul.f32 %v716_v46, %v5097_v61  ;;  %v654_v12 = vpop.f32.mrb[16].mxu1  ;;  %v5509_v6 = vsub.f32 %v776_v52, %v840_v21  ;;  %3577 = vmatpush1.bf16.msra.mxu0 %v4889_v37  ;;  %v7985_v37 = vld [vmem:[#allocation31_spill] sm:$0xff] }
 0x270   : > { %v779_v18 = vadd.f32 %v747_v24, %v5262_v25  ;;  %v717_v49 = vsub.f32 %v7919_v47, %v654_v12  ;;  %v656_v54 = vpop.f32.mrb[17].mxu1  ;;  %v841_v16 = vmin.f32 %v5117_v28, %v809_v10  ;;  %3579 = vmatprep.subr.bf16.mxu0 %v7981_v13  ;;  %v7984_v13 = vld [vmem:[#allocation128_spill] sm:$0xff] }
 0x271   : > { %v780_v45 = vadd.f32 %v748_v29, %v5257_v19  ;;  %v718_v46 = vsub.f32 %v7982_v36, %v656_v54  ;;  %987 = vmatprep.mubr.f32.mxu0 %v5509_v6  ;;  %v842_v52 = vmin.f32 %v5117_v28, %v810_v27  ;;  %v7983_v29 = vld [vmem:[#allocation30_spill] sm:$0xff] }
 0x272   : > { %v811_v21 = vmax.f32 %v5106_v44, %v779_v18  ;;  %v749_v25 = vmul.f32 %v717_v49, %v5097_v61  ;;  %988 = vmatmul.mubr.f32.gmra.mrb[42].mxu0 %v5514_v60  ;;  %v5532_v36 = vsub.f32 %v777_v23, %v841_v16 }
 0x273   : > { %v812_v22 = vmax.f32 %v5106_v44, %v780_v45  ;;  %v750_v26 = vmul.f32 %v718_v46, %v5097_v61  ;;  %v660_v10 = vpop.f32.mrb[18].mxu1  ;;  %v5527_v24 = vsub.f32 %v778_v1, %v842_v52  ;;  %3581 = vmatpush1.bf16.msra.mxu0 %v4901_v39  ;;  %v7995_v39 = vld [vmem:[#allocation35_spill] sm:$0xff] }
 0x274   : > { %v781_v19 = vadd.f32 %v749_v25, %v5280_v7  ;;  %v719_v12 = vsub.f32 %v7983_v29, %v660_v10  ;;  %v662_v27 = vpop.f32.mrb[19].mxu1  ;;  %v843_v49 = vmin.f32 %v5117_v28, %v811_v21  ;;  %3583 = vmatprep.subr.bf16.mxu0 %v7984_v13  ;;  %v7994_v13 = vld [vmem:[#allocation116_spill] sm:$0xff] }
 0x275   : > { %v782_v47 = vadd.f32 %v750_v26, %v5275_v14  ;;  %v720_v46 = vsub.f32 %v7985_v37, %v662_v27  ;;  %993 = vmatprep.mubr.f32.mxu0 %v5527_v24  ;;  %v844_v1 = vmin.f32 %v5117_v28, %v812_v22  ;;  %v7987_v37 = vld [vmem:[#allocation33_spill] sm:$0xff] }
 0x276   : > { %v813_v52 = vmax.f32 %v5106_v44, %v781_v19  ;;  %v751_v7 = vmul.f32 %v719_v12, %v5097_v61  ;;  %994 = vmatmul.mubr.f32.gmra.mrb[44].mxu0 %v5532_v36  ;;  %v5550_v10 = vsub.f32 %v779_v18, %v843_v49  ;;  %v7986_v12 = vld [vmem:[#allocation130_spill] sm:$0xff] }
 0x277   : > { %v814_v23 = vmax.f32 %v5106_v44, %v782_v47  ;;  %v752_v16 = vmul.f32 %v720_v46, %v5097_v61  ;;  %v666_v21 = vpop.f32.mrb[20].mxu1  ;;  %v5545_v25 = vsub.f32 %v780_v45, %v844_v1  ;;  %3585 = vmatpush1.bf16.msra.mxu0 %v4913_v41  ;;  %v7993_v41 = vld [vmem:[#allocation132_spill] sm:$0xff] }
 0x278   : > { %v783_v14 = vadd.f32 %v751_v7, %v5298_v20  ;;  %v721_v26 = vsub.f32 %v7924_v38, %v666_v21  ;;  %v668_v22 = vpop.f32.mrb[21].mxu1  ;;  %v845_v29 = vmin.f32 %v5117_v28, %v813_v52  ;;  %3587 = vmatprep.subr.bf16.mxu0 %v7986_v12 }
 0x279   : > { %v784_v27 = vadd.f32 %v752_v16, %v5293_v15  ;;  %v722_v46 = vsub.f32 %v7987_v37, %v668_v22  ;;  %999 = vmatprep.mubr.f32.mxu0 %v5545_v25  ;;  %v846_v45 = vmin.f32 %v5117_v28, %v814_v23  ;;  %v7989_v15 = vld [vmem:[#allocation131_spill] sm:$0xff]  ;;  %v7991_v22 = vld [vmem:[#allocation34_spill] sm:$0xff] }
 0x27a   : > { %v815_v1 = vmax.f32 %v5106_v44, %v783_v14  ;;  %v753_v20 = vmul.f32 %v721_v26, %v5097_v61  ;;  %1000 = vmatmul.mubr.f32.gmra.mrb[46].mxu0 %v5550_v10  ;;  %v7990_v16 = vld [vmem:[#allocation115_spill] sm:$0xff]  ;;  %v5568_v38 = vsub.f32 %v781_v19, %v845_v29  ;;  %v8000_v37 = vld [vmem:[#allocation134_spill] sm:$0xff] }
 0x27b   : > { %v816_v18 = vmax.f32 %v5106_v44, %v784_v27  ;;  %v754_v49 = vmul.f32 %v722_v46, %v5097_v61  ;;  %v672_v52 = vpop.f32.mrb[22].mxu1  ;;  %v5563_v7 = vsub.f32 %v782_v47, %v846_v45  ;;  %3589 = vmatpush1.bf16.msra.mxu0 %v7989_v15  ;;  %v8001_v15 = vld [vmem:[#allocation114_spill] sm:$0xff] }
 0x27c   : > { %v785_v21 = vadd.f32 %v753_v20, %v7990_v16  ;;  %v723_v12 = vsub.f32 %v7991_v22, %v672_v52  ;;  %v674_v23 = vpop.f32.mrb[23].mxu1  ;;  %7992 = vst [vmem:[#allocation109_spill] sm:$0xff] %v5568_v38  ;;  %v847_v26 = vmin.f32 %v5117_v28, %v815_v1  ;;  %3591 = vmatprep.subr.bf16.mxu0 %v7993_v41  ;;  %v7999_v22 = vld [vmem:[#allocation36_spill] sm:$0xff] }
 0x27d   : > { %7988 = vst [vmem:[#allocation110_spill] sm:$0xff] %v5563_v7  ;;  %v786_v54 = vadd.f32 %v754_v49, %v7994_v13  ;;  %v724_v46 = vsub.f32 %v7995_v39, %v674_v23  ;;  %1005 = vmatprep.mubr.f32.mxu0 %v5563_v7  ;;  %v848_v47 = vmin.f32 %v5117_v28, %v816_v18  ;;  %v7997_v13 = vld [vmem:[#allocation133_spill] sm:$0xff]  ;;  %v8006_v39 = vld [vmem:[#allocation39_spill] sm:$0xff] }
 0x27e   : > { %v817_v45 = vmax.f32 %v5106_v44, %v785_v21  ;;  %v755_v20 = vmul.f32 %v723_v12, %v5097_v61  ;;  %1006 = vmatmul.mubr.f32.gmra.mrb[48].mxu0 %v5568_v38  ;;  %v7998_v49 = vld [vmem:[#allocation113_spill] sm:$0xff]  ;;  %v5586_v41 = vsub.f32 %v783_v14, %v847_v26 }
 0x27f   : > { %v818_v19 = vmax.f32 %v5106_v44, %v786_v54  ;;  %v756_v29 = vmul.f32 %v724_v46, %v5097_v61  ;;  %v678_v1 = vpop.f32.mrb[24].mxu1  ;;  %v5581_v52 = vsub.f32 %v784_v27, %v848_v47  ;;  %3593 = vmatpush1.bf16.msra.mxu0 %v7997_v13  ;;  %v8002_v38 = vld [vmem:[#allocation37_spill] sm:$0xff] }
 0x280   : > { %v787_v16 = vadd.f32 %v755_v20, %v7998_v49  ;;  %v725_v23 = vsub.f32 %v7999_v22, %v678_v1  ;;  %v680_v18 = vpop.f32.mrb[25].mxu1  ;;  %v849_v12 = vmin.f32 %v5117_v28, %v817_v45  ;;  %3595 = vmatprep.subr.bf16.mxu0 %v8000_v37  ;;  %v8004_v49 = vld [vmem:[#allocation38_spill] sm:$0xff] }
 0x281   : > { %7996 = vst [vmem:[#allocation108_spill] sm:$0xff] %v5581_v52  ;;  %v788_v7 = vadd.f32 %v756_v29, %v8001_v15  ;;  %v726_v46 = vsub.f32 %v8002_v38, %v680_v18  ;;  %1011 = vmatprep.mubr.f32.mxu0 %v5581_v52  ;;  %v850_v27 = vmin.f32 %v5117_v28, %v818_v19  ;;  %v8003_v15 = vld [vmem:[#allocation135_spill] sm:$0xff]  ;;  %v8005_v38 = vld [vmem:[#allocation136_spill] sm:$0xff] }
 0x282   : > { %v819_v47 = vmax.f32 %v5106_v44, %v787_v16  ;;  %v757_v20 = vmul.f32 %v725_v23, %v5097_v61  ;;  %1012 = vmatmul.mubr.f32.gmra.mrb[50].mxu0 %v5586_v41  ;;  %v5604_v18 = vsub.f32 %v785_v21, %v849_v12 }
 0x283   : > { %v820_v14 = vmax.f32 %v5106_v44, %v788_v7  ;;  %v758_v26 = vmul.f32 %v726_v46, %v5097_v61  ;;  %v684_v45 = vpop.f32.mrb[26].mxu1  ;;  %v5599_v1 = vsub.f32 %v786_v54, %v850_v27  ;;  %3597 = vmatpush1.bf16.msra.mxu0 %v8003_v15  ;;  %v8010_v15 = vld [vmem:[#allocation41_spill] sm:$0xff] }
 0x284   : > { %v789_v29 = vadd.f32 %v757_v20, %v5352_v42  ;;  %v727_v22 = vsub.f32 %v8004_v49, %v684_v45  ;;  %v686_v19 = vpop.f32.mrb[27].mxu1  ;;  %v851_v23 = vmin.f32 %v5117_v28, %v819_v47  ;;  %3599 = vmatprep.subr.bf16.mxu0 %v8005_v38  ;;  %v8008_v45 = vld [vmem:[#allocation40_spill] sm:$0xff]  ;;  %v8009_v38 = vld [vmem:[#allocation138_spill] sm:$0xff] }
 0x285   : > { %v790_v37 = vadd.f32 %v758_v26, %v5347_v34  ;;  %v728_v46 = vsub.f32 %v8006_v39, %v686_v19  ;;  %1017 = vmatprep.mubr.f32.mxu0 %v5599_v1  ;;  %v852_v54 = vmin.f32 %v5117_v28, %v820_v14  ;;  %v8007_v34 = vld [vmem:[#allocation137_spill] sm:$0xff] }
 0x286   : > { %v821_v27 = vmax.f32 %v5106_v44, %v789_v29  ;;  %v759_v42 = vmul.f32 %v727_v22, %v5097_v61  ;;  %1018 = vmatmul.mubr.f32.gmra.mrb[52].mxu0 %v5604_v18  ;;  %v5622_v39 = vsub.f32 %v787_v16, %v851_v23 }
 0x287   : > { %v822_v21 = vmax.f32 %v5106_v44, %v790_v37  ;;  %v760_v12 = vmul.f32 %v728_v46, %v5097_v61  ;;  %v690_v47 = vpop.f32.mrb[28].mxu1  ;;  %v5617_v20 = vsub.f32 %v788_v7, %v852_v54  ;;  %3601 = vmatpush1.bf16.msra.mxu0 %v8007_v34 }
 0x288   : > { %v791_v26 = vadd.f32 %v759_v42, %v5369_v30  ;;  %v729_v19 = vsub.f32 %v8008_v45, %v690_v47  ;;  %v692_v14 = vpop.f32.mrb[29].mxu1  ;;  %v853_v22 = vmin.f32 %v5117_v28, %v821_v27  ;;  %3603 = vmatprep.subr.bf16.mxu0 %v8009_v38  ;;  %v8013_v38 = vld [vmem:[#allocation43_spill] sm:$0xff] }
 0x289   : > { %v792_v49 = vadd.f32 %v760_v12, %v5365_v55  ;;  %v730_v46 = vsub.f32 %v8010_v15, %v692_v14  ;;  %1023 = vmatprep.mubr.f32.mxu0 %v5617_v20  ;;  %v854_v7 = vmin.f32 %v5117_v28, %v822_v21  ;;  %v8012_v14 = vld [vmem:[#allocation112_spill] sm:$0xff] }
 0x28a   : > { %v823_v54 = vmax.f32 %v5106_v44, %v791_v26  ;;  %v761_v30 = vmul.f32 %v729_v19, %v5097_v61  ;;  %1024 = vmatmul.mubr.f32.gmra.mrb[54].mxu0 %v5622_v39  ;;  %v5640_v12 = vsub.f32 %v789_v29, %v853_v22  ;;  %v8011_v19 = vld [vmem:[#allocation140_spill] sm:$0xff] }
 0x28b   : > { %v824_v16 = vmax.f32 %v5106_v44, %v792_v49  ;;  %v762_v23 = vmul.f32 %v730_v46, %v5097_v61  ;;  %v696_v27 = vpop.f32.mrb[30].mxu1  ;;  %v5635_v42 = vsub.f32 %v790_v37, %v854_v7  ;;  %3605 = vmatpush1.bf16.msra.mxu0 %v7946_v2 }
 0x28c   : > { %v793_v55 = vadd.f32 %v761_v30, %v5382_v17  ;;  %v731_v15 = vsub.f32 %v7949_v58, %v696_v27  ;;  %v698_v21 = vpop.f32.mrb[31].mxu1  ;;  %v855_v47 = vmin.f32 %v5117_v28, %v823_v54  ;;  %3607 = vmatprep.subr.bf16.mxu0 %v8011_v19  ;;  %v8014_v30 = vld [vmem:[#allocation141_spill] sm:$0xff] }
 0x28d   : > { %v794_v52 = vadd.f32 %v762_v23, %v8012_v14  ;;  %v732_v46 = vsub.f32 %v8013_v38, %v698_v21  ;;  %1029 = vmatprep.mubr.f32.mxu0 %v5635_v42  ;;  %v856_v37 = vmin.f32 %v5117_v28, %v824_v16  ;;  %v8015_v23 = vld [vmem:[#allocation111_spill] sm:$0xff]  ;;  %v8016_v14 = vld [vmem:[#allocation142_spill] sm:$0xff] }
 0x28e   : > { %v825_v7 = vmax.f32 %v5106_v44, %v793_v55  ;;  %v763_v17 = vmul.f32 %v731_v15, %v5097_v61  ;;  %1030 = vmatmul.mubr.f32.gmra.mrb[56].mxu0 %v5640_v12  ;;  %v5657_v21 = vsub.f32 %v791_v26, %v855_v47  ;;  %v8017_v38 = vld [vmem:[#allocation139_spill] sm:$0xff] }
 0x28f   : > { %v826_v29 = vmax.f32 %v5106_v44, %v794_v52  ;;  %v764_v22 = vmul.f32 %v732_v46, %v5097_v61  ;;  %v5653_v54 = vsub.f32 %v792_v49, %v856_v37  ;;  %3609 = vmatpush1.bf16.msra.mxu0 %v8014_v30  ;;  %v8019_v26 = vld [vmem:[#allocation143_spill] sm:$0xff] }
 0x290   : > { %v795_v27 = vadd.f32 %v763_v17, %v8015_v23  ;;  %v857_v16 = vmin.f32 %v5117_v28, %v825_v7  ;;  %3611 = vmatprep.subr.bf16.mxu0 %v8016_v14  ;;  %v8021_v17 = vld [vmem:[#allocation144_spill] sm:$0xff]  ;;  %v8027_v23 = vld [vmem:[#allocation117_spill] sm:$0xff]  ;;  %v8031_v30 = vld [vmem:[#allocation15_spill] sm:$0xff] }
 0x291   : > { %v796_v15 = vadd.f32 %v764_v22, %v8017_v38  ;;  %1035 = vmatprep.mubr.f32.mxu0 %v5653_v54  ;;  %v858_v19 = vmin.f32 %v5117_v28, %v826_v29  ;;  %v8023_v22 = vld [vmem:[#allocation145_spill] sm:$0xff] }
 0x292   : > { %v827_v46 = vmax.f32 %v5106_v44, %v795_v27  ;;  %1036 = vmatmul.mubr.f32.gmra.mrb[58].mxu0 %v5657_v21  ;;  %v5670_v47 = vsub.f32 %v793_v55, %v857_v16  ;;  %v8026_v55 = vld [vmem:[#allocation147_spill] sm:$0xff] }
 0x293   : > { %v828_v49 = vmax.f32 %v5106_v44, %v796_v15  ;;  %v5667_v37 = vsub.f32 %v794_v52, %v858_v19  ;;  %3613 = vmatpush1.bf16.msra.mxu0 %v8019_v26  ;;  %v8025_v19 = vld [vmem:[#allocation146_spill] sm:$0xff] }
 0x294   : > { %8020 = vst [vmem:[#allocation116_spill] sm:$0xff] %v5670_v47  ;;  %v859_v7 = vmin.f32 %v5117_v28, %v827_v46  ;;  %3615 = vmatprep.subr.bf16.mxu0 %v8021_v17  ;;  %v8028_v46 = vld [vmem:[#allocation12_spill] sm:$0xff] }
 0x295   : > { %8018 = vst [vmem:[#allocation115_spill] sm:$0xff] %v5667_v37  ;;  %1041 = vmatprep.mubr.f32.mxu0 %v5667_v37  ;;  %v860_v38 = vmin.f32 %v5117_v28, %v828_v49 }
 0x296   : > { %1042 = vmatmul.mubr.f32.gmra.mrb[60].mxu0 %v5670_v47  ;;  %v5680_v52 = vsub.f32 %v795_v27, %v859_v7 }
 0x297   : > { %v5677_v29 = vsub.f32 %v796_v15, %v860_v38  ;;  %3617 = vmatpush1.bf16.msra.mxu0 %v8023_v22  ;;  %v8029_v15 = vld [vmem:[#allocation13_spill] sm:$0xff] }
 0x298   : > { %8024 = vst [vmem:[#allocation114_spill] sm:$0xff] %v5680_v52  ;;  %3619 = vmatprep.subr.bf16.mxu0 %v8025_v19 }
 0x299   : > { %8022 = vst [vmem:[#allocation113_spill] sm:$0xff] %v5677_v29  ;;  %1047 = vmatprep.mubr.f32.mxu0 %v5677_v29  ;;  %v8030_v29 = vld [vmem:[#allocation14_spill] sm:$0xff] }
 0x29a   : > { %1048 = vmatmul.mubr.f32.gmra.mrb[62].mxu0 %v5680_v52 }
 0x29b   : > { %3621 = vmatpush1.bf16.msra.mxu0 %v8026_v55 }
 0x29c   : > { %3687 = vmatprep.subr.bf16.mxu0 %v8027_v23 }
 0x331   : > { %v959_v16 = vpop.f32.mrb[32].mxu0 }
 0x332   : > { %v1054_v49 = vsub.f32 %v8028_v46, %v959_v16  ;;  %v961_v17 = vpop.f32.mrb[33].mxu0 }
 0x333   : > { %v1055_v26 = vsub.f32 %v8029_v15, %v961_v17 }
 0x334   : > { %v1086_v22 = vmul.f32 %v1054_v49, %v5097_v61 }
 0x335   : > { %v1087_v27 = vmul.f32 %v1055_v26, %v5097_v61  ;;  %v965_v7 = vpop.f32.mrb[34].mxu0 }
 0x336   : > { %v1118_v19 = vadd.f32 %v1086_v22, %v5423_v31  ;;  %v1056_v14 = vsub.f32 %v8030_v29, %v965_v7  ;;  %v967_v52 = vpop.f32.mrb[35].mxu0 }
 0x337   : > { %v1119_v55 = vadd.f32 %v1087_v27, %v5421_v43  ;;  %v1057_v23 = vsub.f32 %v8031_v30, %v967_v52  ;;  %v8032_v27 = vld [vmem:[#allocation17_spill] sm:$0xff] }
 0x338   : > { %v1150_v47 = vmax.f32 %v5106_v44, %v1118_v19  ;;  %v1088_v16 = vmul.f32 %v1056_v14, %v5097_v61 }
 0x339   : > { %v1151_v17 = vmax.f32 %v5106_v44, %v1119_v55  ;;  %v1089_v49 = vmul.f32 %v1057_v23, %v5097_v61  ;;  %v971_v15 = vpop.f32.mrb[36].mxu0 }
 0x33a   : > { %v1182_v26 = vmin.f32 %v5117_v28, %v1150_v47  ;;  %v1120_v31 = vadd.f32 %v1088_v16, %v5442_v0  ;;  %v1058_v29 = vsub.f32 %v7905_v57, %v971_v15  ;;  %v973_v22 = vpop.f32.mrb[37].mxu0 }
 0x33b   : > { %v1121_v43 = vadd.f32 %v1089_v49, %v5437_v9  ;;  %v1059_v30 = vsub.f32 %v8032_v27, %v973_v22  ;;  %v1183_v52 = vmin.f32 %v5117_v28, %v1151_v17  ;;  %v8033_v22 = vld [vmem:[#allocation19_spill] sm:$0xff] }
 0x33c   : > { %v1152_v14 = vmax.f32 %v5106_v44, %v1120_v31  ;;  %v1090_v7 = vmul.f32 %v1058_v29, %v5097_v61  ;;  %v5711_v0 = vsub.f32 %v1118_v19, %v1182_v26  ;;  %v8034_v58 = vmov %v8033_v22 }
 0x33d   : > { %v1153_v23 = vmax.f32 %v5106_v44, %v1121_v43  ;;  %v1091_v37 = vmul.f32 %v1059_v30, %v5097_v61  ;;  %v977_v47 = vpop.f32.mrb[38].mxu0  ;;  %v5709_v38 = vsub.f32 %v1119_v55, %v1183_v52 }
 0x33e   : > { %v1122_v16 = vadd.f32 %v1090_v7, %v5460_v33  ;;  %v1060_v9 = vsub.f32 %v7907_v62, %v977_v47  ;;  %v979_v49 = vpop.f32.mrb[39].mxu0  ;;  %v1184_v17 = vmin.f32 %v5117_v28, %v1152_v14 }
 0x33f   : > { %v1123_v15 = vadd.f32 %v1091_v37, %v5455_v5  ;;  %v1061_v29 = vsub.f32 %v8033_v22, %v979_v49  ;;  %1310 = vmatprep.mubr.f32.mxu1 %v5709_v38  ;;  %v1185_v27 = vmin.f32 %v5117_v28, %v1153_v23 }
 0x340   : > { %v1154_v55 = vmax.f32 %v5106_v44, %v1122_v16  ;;  %v1092_v19 = vmul.f32 %v1060_v9, %v5097_v61  ;;  %1311 = vmatmul.mubr.f32.vlgmr.msra.gmra.mrb[32].mxu1 %v5711_v0  ;;  %v5730_v7 = vsub.f32 %v1120_v31, %v1184_v17  ;;  %v8035_v9 = vld [vmem:[#allocation21_spill] sm:$0xff] }
 0x341   : > { %v1155_v33 = vmax.f32 %v5106_v44, %v1123_v15  ;;  %v1093_v26 = vmul.f32 %v1061_v29, %v5097_v61  ;;  %v983_v30 = vpop.f32.mrb[40].mxu0  ;;  %v5725_v52 = vsub.f32 %v1121_v43, %v1185_v27  ;;  %3625 = vmatpush1.bf16.msra.mxu1 %v4842_v11 }
 0x342   : > { %v1124_v5 = vadd.f32 %v1092_v19, %v5478_v40  ;;  %v1062_v37 = vsub.f32 %v7972_v56, %v983_v30  ;;  %v985_v14 = vpop.f32.mrb[41].mxu0  ;;  %v1186_v23 = vmin.f32 %v5117_v28, %v1154_v55  ;;  %3627 = vmatprep.subr.bf16.mxu1 %v7973_v50  ;;  %v8036_v19 = vld [vmem:[#allocation22_spill] sm:$0xff]  ;;  %v8039_v50 = vld [vmem:[#allocation23_spill] sm:$0xff] }
 0x343   : > { %v1125_v47 = vadd.f32 %v1093_v26, %v5473_v4  ;;  %v1063_v22 = vsub.f32 %v8035_v9, %v985_v14  ;;  %1316 = vmatprep.mubr.f32.mxu1 %v5725_v52  ;;  %v1187_v43 = vmin.f32 %v5117_v28, %v1155_v33  ;;  %v8037_v49 = vmov %v8036_v19  ;;  %v8038_v14 = vld [vmem:[#allocation120_spill] sm:$0xff] }
 0x344   : > { %v1156_v29 = vmax.f32 %v5106_v44, %v1124_v5  ;;  %v1094_v40 = vmul.f32 %v1062_v37, %v5097_v61  ;;  %1317 = vmatmul.mubr.f32.gmra.mrb[34].mxu1 %v5730_v7  ;;  %v5748_v30 = vsub.f32 %v1122_v16, %v1186_v23 }
 0x345   : > { %v1157_v31 = vmax.f32 %v5106_v44, %v1125_v47  ;;  %v1095_v17 = vmul.f32 %v1063_v22, %v5097_v61  ;;  %v989_v27 = vpop.f32.mrb[42].mxu0  ;;  %v5743_v55 = vsub.f32 %v1123_v15, %v1187_v43  ;;  %3629 = vmatpush1.bf16.msra.mxu1 %v4852_v8 }
 0x346   : > { %v1126_v4 = vadd.f32 %v1094_v40, %v5496_v51  ;;  %v1064_v26 = vsub.f32 %v8036_v19, %v989_v27  ;;  %v991_v33 = vpop.f32.mrb[43].mxu0  ;;  %v1188_v37 = vmin.f32 %v5117_v28, %v1156_v29  ;;  %3631 = vmatprep.subr.bf16.mxu1 %v8038_v14 }
 0x347   : > { %v1127_v9 = vadd.f32 %v1095_v17, %v5491_v59  ;;  %v1065_v22 = vsub.f32 %v8039_v50, %v991_v33  ;;  %1322 = vmatprep.mubr.f32.mxu1 %v5743_v55  ;;  %v1189_v15 = vmin.f32 %v5117_v28, %v1157_v31 }
 0x348   : > { %v1158_v43 = vmax.f32 %v5106_v44, %v1126_v4  ;;  %v1096_v51 = vmul.f32 %v1064_v26, %v5097_v61  ;;  %1323 = vmatmul.mubr.f32.gmra.mrb[36].mxu1 %v5748_v30  ;;  %v5766_v27 = vsub.f32 %v1124_v5, %v1188_v37 }
 0x349   : > { %v1159_v16 = vmax.f32 %v5106_v44, %v1127_v9  ;;  %v1097_v23 = vmul.f32 %v1065_v22, %v5097_v61  ;;  %v995_v29 = vpop.f32.mrb[44].mxu0  ;;  %v5761_v40 = vsub.f32 %v1125_v47, %v1189_v15  ;;  %3633 = vmatpush1.bf16.msra.mxu1 %v4864_v32 }
 0x34a   : > { %v1128_v59 = vadd.f32 %v1096_v51, %v5514_v60  ;;  %v1066_v17 = vsub.f32 %v7914_v53, %v995_v29  ;;  %v997_v31 = vpop.f32.mrb[45].mxu0  ;;  %v1190_v19 = vmin.f32 %v5117_v28, %v1158_v43  ;;  %3635 = vmatprep.subr.bf16.mxu1 %v7977_v3  ;;  %v8046_v3 = vld [vmem:[#allocation29_spill] sm:$0xff]  ;;  %v8057_v53 = vld [vmem:[#allocation108_spill] sm:$0xff] }
 0x34b   : > { %v1129_v26 = vadd.f32 %v1097_v23, %v5509_v6  ;;  %v1067_v33 = vsub.f32 %v7979_v48, %v997_v31  ;;  %1328 = vmatprep.mubr.f32.mxu1 %v5761_v40  ;;  %v1191_v47 = vmin.f32 %v5117_v28, %v1159_v16  ;;  %v8041_v48 = vld [vmem:[#allocation27_spill] sm:$0xff] }
 0x34c   : > { %v1160_v22 = vmax.f32 %v5106_v44, %v1128_v59  ;;  %v1098_v60 = vmul.f32 %v1066_v17, %v5097_v61  ;;  %1329 = vmatmul.mubr.f32.gmra.mrb[38].mxu1 %v5766_v27  ;;  %v5784_v23 = vsub.f32 %v1126_v4, %v1190_v19  ;;  %v8040_v17 = vld [vmem:[#allocation124_spill] sm:$0xff] }
 0x34d   : > { %v1161_v5 = vmax.f32 %v5106_v44, %v1129_v26  ;;  %v1099_v37 = vmul.f32 %v1067_v33, %v5097_v61  ;;  %v1001_v15 = vpop.f32.mrb[46].mxu0  ;;  %v5779_v43 = vsub.f32 %v1127_v9, %v1191_v47  ;;  %3637 = vmatpush1.bf16.msra.mxu1 %v4877_v35 }
 0x34e   : > { %v1130_v6 = vadd.f32 %v1098_v60, %v5532_v36  ;;  %v1068_v51 = vsub.f32 %v7917_v63, %v1001_v15  ;;  %v1003_v16 = vpop.f32.mrb[47].mxu0  ;;  %v1192_v29 = vmin.f32 %v5117_v28, %v1160_v22  ;;  %3639 = vmatprep.subr.bf16.mxu1 %v8040_v17  ;;  %v8044_v15 = vld [vmem:[#allocation28_spill] sm:$0xff]  ;;  %v8045_v63 = vld [vmem:[#allocation126_spill] sm:$0xff] }
 0x34f   : > { %v1131_v31 = vadd.f32 %v1099_v37, %v5527_v24  ;;  %v1069_v33 = vsub.f32 %v8041_v48, %v1003_v16  ;;  %1334 = vmatprep.mubr.f32.mxu1 %v5779_v43  ;;  %v1193_v9 = vmin.f32 %v5117_v28, %v1161_v5  ;;  %v8043_v24 = vld [vmem:[#allocation125_spill] sm:$0xff]  ;;  %v8052_v48 = vld [vmem:[#allocation110_spill] sm:$0xff] }
 0x350   : > { %v1162_v47 = vmax.f32 %v5106_v44, %v1130_v6  ;;  %v1100_v36 = vmul.f32 %v1068_v51, %v5097_v61  ;;  %1335 = vmatmul.mubr.f32.gmra.mrb[40].mxu1 %v5784_v23  ;;  %v5802_v17 = vsub.f32 %v1128_v59, %v1192_v29 }
 0x351   : > { %v1163_v4 = vmax.f32 %v5106_v44, %v1131_v31  ;;  %v1101_v19 = vmul.f32 %v1069_v33, %v5097_v61  ;;  %v1007_v22 = vpop.f32.mrb[48].mxu0  ;;  %v5797_v60 = vsub.f32 %v1129_v26, %v1193_v9  ;;  %3641 = vmatpush1.bf16.msra.mxu1 %v8043_v24 }
 0x352   : > { %v1132_v37 = vadd.f32 %v1100_v36, %v5550_v10  ;;  %v1070_v16 = vsub.f32 %v8044_v15, %v1007_v22  ;;  %v1009_v5 = vpop.f32.mrb[49].mxu0  ;;  %v1194_v51 = vmin.f32 %v5117_v28, %v1162_v47  ;;  %3643 = vmatprep.subr.bf16.mxu1 %v8045_v63  ;;  %v8050_v22 = vld [vmem:[#allocation30_spill] sm:$0xff]  ;;  %v8051_v63 = vld [vmem:[#allocation128_spill] sm:$0xff] }
 0x353   : > { %8042 = vst [vmem:[#allocation112_spill] sm:$0xff] %v5797_v60  ;;  %v1133_v35 = vadd.f32 %v1101_v19, %v5545_v25  ;;  %v1071_v33 = vsub.f32 %v8046_v3, %v1009_v5  ;;  %1340 = vmatprep.mubr.f32.mxu1 %v5797_v60  ;;  %v1195_v26 = vmin.f32 %v5117_v28, %v1163_v4  ;;  %v8048_v25 = vld [vmem:[#allocation127_spill] sm:$0xff]  ;;  %v8049_v3 = vld [vmem:[#allocation109_spill] sm:$0xff] }
 0x354   : > { %v1164_v9 = vmax.f32 %v5106_v44, %v1132_v37  ;;  %v1102_v10 = vmul.f32 %v1070_v16, %v5097_v61  ;;  %1341 = vmatmul.mubr.f32.gmra.mrb[42].mxu1 %v5802_v17  ;;  %v5820_v5 = vsub.f32 %v1130_v6, %v1194_v51  ;;  %v8053_v60 = vld [vmem:[#allocation31_spill] sm:$0xff] }
 0x355   : > { %v1165_v59 = vmax.f32 %v5106_v44, %v1133_v35  ;;  %v1103_v29 = vmul.f32 %v1071_v33, %v5097_v61  ;;  %v1013_v47 = vpop.f32.mrb[50].mxu0  ;;  %v5815_v36 = vsub.f32 %v1131_v31, %v1195_v26  ;;  %3645 = vmatpush1.bf16.msra.mxu1 %v8048_v25 }
 0x356   : > { %v1134_v19 = vadd.f32 %v1102_v10, %v8049_v3  ;;  %v1072_v15 = vsub.f32 %v8050_v22, %v1013_v47  ;;  %v1015_v4 = vpop.f32.mrb[51].mxu0  ;;  %v1196_v16 = vmin.f32 %v5117_v28, %v1164_v9  ;;  %3647 = vmatprep.subr.bf16.mxu1 %v8051_v63  ;;  %v8055_v3 = vld [vmem:[#allocation32_spill] sm:$0xff]  ;;  %v8056_v63 = vld [vmem:[#allocation130_spill] sm:$0xff] }
 0x357   : > { %8047 = vst [vmem:[#allocation111_spill] sm:$0xff] %v5815_v36  ;;  %v1135_v24 = vadd.f32 %v1103_v29, %v8052_v48  ;;  %v1073_v33 = vsub.f32 %v8053_v60, %v1015_v4  ;;  %1346 = vmatprep.mubr.f32.mxu1 %v5815_v36  ;;  %v1197_v31 = vmin.f32 %v5117_v28, %v1165_v59  ;;  %v8054_v48 = vld [vmem:[#allocation129_spill] sm:$0xff] }
 0x358   : > { %v1166_v26 = vmax.f32 %v5106_v44, %v1134_v19  ;;  %v1104_v10 = vmul.f32 %v1072_v15, %v5097_v61  ;;  %1347 = vmatmul.mubr.f32.gmra.mrb[44].mxu1 %v5820_v5  ;;  %v5838_v4 = vsub.f32 %v1132_v37, %v1196_v16  ;;  %v8058_v36 = vld [vmem:[#allocation33_spill] sm:$0xff] }
 0x359   : > { %v1167_v6 = vmax.f32 %v5106_v44, %v1135_v24  ;;  %v1105_v51 = vmul.f32 %v1073_v33, %v5097_v61  ;;  %v1019_v9 = vpop.f32.mrb[52].mxu0  ;;  %v5833_v47 = vsub.f32 %v1133_v35, %v1197_v31  ;;  %3649 = vmatpush1.bf16.msra.mxu1 %v8054_v48  ;;  %v8062_v48 = vld [vmem:[#allocation35_spill] sm:$0xff] }
 0x35a   : > { %v1136_v29 = vadd.f32 %v1104_v10, %v5586_v41  ;;  %v1074_v22 = vsub.f32 %v8055_v3, %v1019_v9  ;;  %v1021_v59 = vpop.f32.mrb[53].mxu0  ;;  %v1198_v15 = vmin.f32 %v5117_v28, %v1166_v26  ;;  %3651 = vmatprep.subr.bf16.mxu1 %v8056_v63  ;;  %v8060_v9 = vld [vmem:[#allocation34_spill] sm:$0xff]  ;;  %v8061_v63 = vld [vmem:[#allocation132_spill] sm:$0xff] }
 0x35b   : > { %v1137_v25 = vadd.f32 %v1105_v51, %v8057_v53  ;;  %v1075_v33 = vsub.f32 %v8058_v36, %v1021_v59  ;;  %1352 = vmatprep.mubr.f32.mxu1 %v5833_v47  ;;  %v1199_v35 = vmin.f32 %v5117_v28, %v1167_v6  ;;  %v8059_v53 = vld [vmem:[#allocation131_spill] sm:$0xff]  ;;  %v8065_v59 = vld [vmem:[#allocation37_spill] sm:$0xff] }
 0x35c   : > { %v1168_v31 = vmax.f32 %v5106_v44, %v1136_v29  ;;  %v1106_v41 = vmul.f32 %v1074_v22, %v5097_v61  ;;  %1353 = vmatmul.mubr.f32.gmra.mrb[46].mxu1 %v5838_v4  ;;  %v5856_v36 = vsub.f32 %v1134_v19, %v1198_v15 }
 0x35d   : > { %v1169_v37 = vmax.f32 %v5106_v44, %v1137_v25  ;;  %v1107_v16 = vmul.f32 %v1075_v33, %v5097_v61  ;;  %v1025_v26 = vpop.f32.mrb[54].mxu0  ;;  %v5851_v10 = vsub.f32 %v1135_v24, %v1199_v35  ;;  %3653 = vmatpush1.bf16.msra.mxu1 %v8059_v53 }
 0x35e   : > { %v1138_v51 = vadd.f32 %v1106_v41, %v5604_v18  ;;  %v1076_v3 = vsub.f32 %v8060_v9, %v1025_v26  ;;  %v1027_v6 = vpop.f32.mrb[55].mxu0  ;;  %v1200_v22 = vmin.f32 %v5117_v28, %v1168_v31  ;;  %3655 = vmatprep.subr.bf16.mxu1 %v8061_v63 }
 0x35f   : > { %v1139_v60 = vadd.f32 %v1107_v16, %v5599_v1  ;;  %v1077_v33 = vsub.f32 %v8062_v48, %v1027_v6  ;;  %1358 = vmatprep.mubr.f32.mxu1 %v5851_v10  ;;  %v1201_v24 = vmin.f32 %v5117_v28, %v1169_v37  ;;  %v8063_v16 = vld [vmem:[#allocation36_spill] sm:$0xff]  ;;  %v8064_v6 = vld [vmem:[#allocation134_spill] sm:$0xff] }
 0x360   : > { %v1170_v35 = vmax.f32 %v5106_v44, %v1138_v51  ;;  %v1108_v18 = vmul.f32 %v1076_v3, %v5097_v61  ;;  %1359 = vmatmul.mubr.f32.gmra.mrb[48].mxu1 %v5856_v36  ;;  %v5874_v9 = vsub.f32 %v1136_v29, %v1200_v22 }
 0x361   : > { %v1171_v19 = vmax.f32 %v5106_v44, %v1139_v60  ;;  %v1109_v15 = vmul.f32 %v1077_v33, %v5097_v61  ;;  %v1031_v31 = vpop.f32.mrb[56].mxu0  ;;  %v5869_v41 = vsub.f32 %v1137_v25, %v1201_v24  ;;  %3657 = vmatpush1.bf16.msra.mxu1 %v7997_v13  ;;  %v8069_v13 = vld [vmem:[#allocation39_spill] sm:$0xff] }
 0x362   : > { %v1140_v1 = vadd.f32 %v1108_v18, %v5622_v39  ;;  %v1078_v26 = vsub.f32 %v8063_v16, %v1031_v31  ;;  %v1033_v37 = vpop.f32.mrb[57].mxu0  ;;  %v1202_v3 = vmin.f32 %v5117_v28, %v1170_v35  ;;  %3659 = vmatprep.subr.bf16.mxu1 %v8064_v6  ;;  %v8067_v31 = vld [vmem:[#allocation38_spill] sm:$0xff]  ;;  %v8068_v6 = vld [vmem:[#allocation136_spill] sm:$0xff] }
 0x363   : > { %v1141_v63 = vadd.f32 %v1109_v15, %v5617_v20  ;;  %v1079_v33 = vsub.f32 %v8065_v59, %v1033_v37  ;;  %1364 = vmatprep.mubr.f32.mxu1 %v5869_v41  ;;  %v1203_v25 = vmin.f32 %v5117_v28, %v1171_v19  ;;  %v8066_v20 = vld [vmem:[#allocation135_spill] sm:$0xff] }
 0x364   : > { %v1172_v24 = vmax.f32 %v5106_v44, %v1140_v1  ;;  %v1110_v39 = vmul.f32 %v1078_v26, %v5097_v61  ;;  %1365 = vmatmul.mubr.f32.gmra.mrb[50].mxu1 %v5874_v9  ;;  %v5892_v59 = vsub.f32 %v1138_v51, %v1202_v3 }
 0x365   : > { %v1173_v29 = vmax.f32 %v5106_v44, %v1141_v63  ;;  %v1111_v22 = vmul.f32 %v1079_v33, %v5097_v61  ;;  %v1037_v35 = vpop.f32.mrb[58].mxu0  ;;  %v5887_v18 = vsub.f32 %v1139_v60, %v1203_v25  ;;  %3661 = vmatpush1.bf16.msra.mxu1 %v8066_v20 }
 0x366   : > { %v1142_v15 = vadd.f32 %v1110_v39, %v5640_v12  ;;  %v1080_v16 = vsub.f32 %v8067_v31, %v1037_v35  ;;  %v1039_v19 = vpop.f32.mrb[59].mxu0  ;;  %v1204_v26 = vmin.f32 %v5117_v28, %v1172_v24  ;;  %3663 = vmatprep.subr.bf16.mxu1 %v8068_v6  ;;  %v8070_v31 = vld [vmem:[#allocation138_spill] sm:$0xff]  ;;  %v8077_v6 = vld [vmem:[#allocation43_spill] sm:$0xff] }
 0x367   : > { %v1143_v48 = vadd.f32 %v1111_v22, %v5635_v42  ;;  %v1081_v33 = vsub.f32 %v8069_v13, %v1039_v19  ;;  %1370 = vmatprep.mubr.f32.mxu1 %v5887_v18  ;;  %v1205_v60 = vmin.f32 %v5117_v28, %v1173_v29  ;;  %v8071_v19 = vld [vmem:[#allocation41_spill] sm:$0xff] }
 0x368   : > { %v1174_v25 = vmax.f32 %v5106_v44, %v1142_v15  ;;  %v1112_v12 = vmul.f32 %v1080_v16, %v5097_v61  ;;  %1371 = vmatmul.mubr.f32.gmra.mrb[52].mxu1 %v5892_v59  ;;  %v5910_v22 = vsub.f32 %v1140_v1, %v1204_v26 }
 0x369   : > { %v1175_v51 = vmax.f32 %v5106_v44, %v1143_v48  ;;  %v1113_v3 = vmul.f32 %v1081_v33, %v5097_v61  ;;  %v1043_v24 = vpop.f32.mrb[60].mxu0  ;;  %v5905_v39 = vsub.f32 %v1141_v63, %v1205_v60  ;;  %3665 = vmatpush1.bf16.msra.mxu1 %v8007_v34 }
 0x36a   : > { %v1144_v13 = vadd.f32 %v1112_v12, %v5657_v21  ;;  %v1082_v42 = vsub.f32 %v8008_v45, %v1043_v24  ;;  %v1045_v29 = vpop.f32.mrb[61].mxu0  ;;  %v1206_v35 = vmin.f32 %v5117_v28, %v1174_v25  ;;  %3667 = vmatprep.subr.bf16.mxu1 %v8070_v31  ;;  %v8073_v24 = vld [vmem:[#allocation42_spill] sm:$0xff]  ;;  %v8075_v31 = vld [vmem:[#allocation140_spill] sm:$0xff]  ;;  %v8076_v45 = vld [vmem:[#allocation115_spill] sm:$0xff] }
 0x36b   : > { %v1145_v16 = vadd.f32 %v1113_v3, %v5653_v54  ;;  %v1083_v33 = vsub.f32 %v8071_v19, %v1045_v29  ;;  %1376 = vmatprep.mubr.f32.mxu1 %v5905_v39  ;;  %v1207_v63 = vmin.f32 %v5117_v28, %v1175_v51  ;;  %v8072_v54 = vld [vmem:[#allocation116_spill] sm:$0xff]  ;;  %v8074_v53 = vmov %v8073_v24 }
 0x36c   : > { %v1176_v60 = vmax.f32 %v5106_v44, %v1144_v13  ;;  %v1114_v21 = vmul.f32 %v1082_v42, %v5097_v61  ;;  %1377 = vmatmul.mubr.f32.gmra.mrb[54].mxu1 %v5910_v22  ;;  %v5928_v19 = vsub.f32 %v1142_v15, %v1206_v35 }
 0x36d   : > { %v1177_v1 = vmax.f32 %v5106_v44, %v1145_v16  ;;  %v1115_v26 = vmul.f32 %v1083_v33, %v5097_v61  ;;  %v1049_v25 = vpop.f32.mrb[62].mxu0  ;;  %v5923_v12 = vsub.f32 %v1143_v48, %v1207_v63  ;;  %3669 = vmatpush1.bf16.msra.mxu1 %v7946_v2 }
 0x36e   : > { %v1146_v3 = vadd.f32 %v1114_v21, %v8072_v54  ;;  %v1084_v29 = vsub.f32 %v8073_v24, %v1049_v25  ;;  %v1051_v51 = vpop.f32.mrb[63].mxu0  ;;  %v1208_v42 = vmin.f32 %v5117_v28, %v1176_v60  ;;  %3671 = vmatprep.subr.bf16.mxu1 %v8075_v31  ;;  %v8078_v25 = vld [vmem:[#allocation141_spill] sm:$0xff]  ;;  %v8080_v54 = vld [vmem:[#allocation142_spill] sm:$0xff] }
 0x36f   : > { %v1147_v34 = vadd.f32 %v1115_v26, %v8076_v45  ;;  %v1085_v33 = vsub.f32 %v8077_v6, %v1051_v51  ;;  %1382 = vmatprep.mubr.f32.mxu1 %v5923_v12  ;;  %v1209_v48 = vmin.f32 %v5117_v28, %v1177_v1  ;;  %v8079_v45 = vld [vmem:[#allocation114_spill] sm:$0xff]  ;;  %v8081_v24 = vld [vmem:[#allocation113_spill] sm:$0xff] }
 0x370   : > { %v1178_v63 = vmax.f32 %v5106_v44, %v1146_v3  ;;  %v1116_v21 = vmul.f32 %v1084_v29, %v5097_v61  ;;  %1383 = vmatmul.mubr.f32.gmra.mrb[56].mxu1 %v5928_v19  ;;  %v5945_v26 = vsub.f32 %v1144_v13, %v1208_v42  ;;  %v8083_v13 = vld [vmem:[#allocation143_spill] sm:$0xff] }
 0x371   : > { %v1179_v15 = vmax.f32 %v5106_v44, %v1147_v34  ;;  %v1117_v35 = vmul.f32 %v1085_v33, %v5097_v61  ;;  %v5941_v60 = vsub.f32 %v1145_v16, %v1209_v48  ;;  %3673 = vmatpush1.bf16.msra.mxu1 %v8078_v25  ;;  %v8093_v25 = vld [vmem:[#allocation15_spill] sm:$0xff] }
 0x372   : > { %v1148_v6 = vadd.f32 %v1116_v21, %v8079_v45  ;;  %v1210_v1 = vmin.f32 %v5117_v28, %v1178_v63  ;;  %3675 = vmatprep.subr.bf16.mxu1 %v8080_v54  ;;  %v8084_v21 = vld [vmem:[#allocation144_spill] sm:$0xff]  ;;  %v8086_v45 = vld [vmem:[#allocation145_spill] sm:$0xff] }
 0x373   : > { %v1149_v29 = vadd.f32 %v1117_v35, %v8081_v24  ;;  %1388 = vmatprep.mubr.f32.mxu1 %v5941_v60  ;;  %v1211_v51 = vmin.f32 %v5117_v28, %v1179_v15  ;;  %v8088_v24 = vld [vmem:[#allocation146_spill] sm:$0xff] }
 0x374   : > { %v1180_v33 = vmax.f32 %v5106_v44, %v1148_v6  ;;  %1389 = vmatmul.mubr.f32.gmra.mrb[58].mxu1 %v5945_v26  ;;  %v5958_v42 = vsub.f32 %v1146_v3, %v1210_v1  ;;  %v8089_v3 = vld [vmem:[#allocation147_spill] sm:$0xff]  ;;  %v8090_v1 = vld [vmem:[#allocation117_spill] sm:$0xff] }
 0x375   : > { %v1181_v16 = vmax.f32 %v5106_v44, %v1149_v29  ;;  %v5955_v48 = vsub.f32 %v1147_v34, %v1211_v51  ;;  %3677 = vmatpush1.bf16.msra.mxu1 %v8083_v13 }
 0x376   : > { %v1212_v63 = vmin.f32 %v5117_v28, %v1180_v33  ;;  %3679 = vmatprep.subr.bf16.mxu1 %v8084_v21  ;;  %v8092_v21 = vld [vmem:[#allocation14_spill] sm:$0xff] }
 0x377   : > { %8082 = vst [vmem:[#allocation139_spill] sm:$0xff] %v5955_v48  ;;  %1394 = vmatprep.mubr.f32.mxu1 %v5955_v48  ;;  %v1213_v15 = vmin.f32 %v5117_v28, %v1181_v16 }
 0x378   : > { %1395 = vmatmul.mubr.f32.gmra.mrb[60].mxu1 %v5958_v42  ;;  %v5968_v34 = vsub.f32 %v1148_v6, %v1212_v63 }
 0x379   : > { %v5965_v35 = vsub.f32 %v1149_v29, %v1213_v15  ;;  %3681 = vmatpush1.bf16.msra.mxu1 %v8086_v45  ;;  %v8091_v29 = vld [vmem:[#allocation13_spill] sm:$0xff] }
 0x37a   : > { %8087 = vst [vmem:[#allocation110_spill] sm:$0xff] %v5968_v34  ;;  %3683 = vmatprep.subr.bf16.mxu1 %v8088_v24 }
 0x37b   : > { %8085 = vst [vmem:[#allocation109_spill] sm:$0xff] %v5965_v35  ;;  %1400 = vmatprep.mubr.f32.mxu1 %v5965_v35 }
 0x37c   : > { %1401 = vmatmul.mubr.f32.gmra.mrb[62].mxu1 %v5968_v34 }
 0x37d   : > { %3685 = vmatpush1.bf16.msra.mxu1 %v8089_v3 }
 0x37e   : > { %3751 = vmatprep.subr.bf16.mxu1 %v8090_v1 }
 0x413   : > { %v1312_v51 = vpop.f32.mrb[32].mxu1 }
 0x414   : > { %v1407_v33 = vsub.f32 %v8028_v46, %v1312_v51  ;;  %v1314_v16 = vpop.f32.mrb[33].mxu1 }
 0x415   : > { %v1408_v15 = vsub.f32 %v8091_v29, %v1314_v16 }
 0x416   : > { %v1439_v45 = vmul.f32 %v1407_v33, %v5097_v61 }
 0x417   : > { %v1440_v6 = vmul.f32 %v1408_v15, %v5097_v61  ;;  %v1318_v63 = vpop.f32.mrb[34].mxu1 }
 0x418   : > { %v1471_v24 = vadd.f32 %v1439_v45, %v5711_v0  ;;  %v1409_v13 = vsub.f32 %v8092_v21, %v1318_v63  ;;  %v1320_v34 = vpop.f32.mrb[35].mxu1 }
 0x419   : > { %v1472_v3 = vadd.f32 %v1440_v6, %v5709_v38  ;;  %v1410_v1 = vsub.f32 %v8093_v25, %v1320_v34  ;;  %v8094_v6 = vld [vmem:[#allocation17_spill] sm:$0xff] }
 0x41a   : > { %v1503_v48 = vmax.f32 %v5106_v44, %v1471_v24  ;;  %v1441_v51 = vmul.f32 %v1409_v13, %v5097_v61  ;;  %v8095_v63 = vmov %v8094_v6 }
 0x41b   : > { %v1504_v16 = vmax.f32 %v5106_v44, %v1472_v3  ;;  %v1442_v33 = vmul.f32 %v1410_v1, %v5097_v61  ;;  %v1324_v29 = vpop.f32.mrb[36].mxu1 }
 0x41c   : > { %v1535_v15 = vmin.f32 %v5117_v28, %v1503_v48  ;;  %v1473_v0 = vadd.f32 %v1441_v51, %v5730_v7  ;;  %v1411_v21 = vsub.f32 %v7905_v57, %v1324_v29  ;;  %v1326_v45 = vpop.f32.mrb[37].mxu1 }
 0x41d   : > { %v1474_v38 = vadd.f32 %v1442_v33, %v5725_v52  ;;  %v1412_v25 = vsub.f32 %v8094_v6, %v1326_v45  ;;  %v1536_v34 = vmin.f32 %v5117_v28, %v1504_v16 }
 0x41e   : > { %v1505_v13 = vmax.f32 %v5106_v44, %v1473_v0  ;;  %v1443_v37 = vmul.f32 %v1411_v21, %v5097_v61  ;;  %v5999_v7 = vsub.f32 %v1471_v24, %v1535_v15 }
 0x41f   : > { %v1506_v1 = vmax.f32 %v5106_v44, %v1474_v38  ;;  %v1444_v35 = vmul.f32 %v1412_v25, %v5097_v61  ;;  %v1330_v48 = vpop.f32.mrb[38].mxu1  ;;  %v5997_v54 = vsub.f32 %v1472_v3, %v1536_v34 }
 0x420   : > { %v1475_v51 = vadd.f32 %v1443_v37, %v5748_v30  ;;  %v1413_v52 = vsub.f32 %v7907_v62, %v1330_v48  ;;  %v1332_v33 = vpop.f32.mrb[39].mxu1  ;;  %v1537_v16 = vmin.f32 %v5117_v28, %v1505_v13 }
 0x421   : > { %v1476_v29 = vadd.f32 %v1444_v35, %v5743_v55  ;;  %v1414_v21 = vsub.f32 %v8034_v58, %v1332_v33  ;;  %1663 = vmatprep.mubr.f32.mxu0 %v5997_v54  ;;  %v1538_v45 = vmin.f32 %v5117_v28, %v1506_v1  ;;  %v8096_v1 = vld [vmem:[#allocation118_spill] sm:$0xff] }
 0x422   : > { %v1507_v3 = vmax.f32 %v5106_v44, %v1475_v51  ;;  %v1445_v24 = vmul.f32 %v1413_v52, %v5097_v61  ;;  %1664 = vmatmul.mubr.f32.vlgmr.msra.gmra.mrb[64].mxu0 %v5999_v7  ;;  %v6018_v34 = vsub.f32 %v1473_v0, %v1537_v16  ;;  %v8097_v52 = vld [vmem:[#allocation21_spill] sm:$0xff] }
 0x423   : > { %v1508_v30 = vmax.f32 %v5106_v44, %v1476_v29  ;;  %v1446_v37 = vmul.f32 %v1414_v21, %v5097_v61  ;;  %v1336_v15 = vpop.f32.mrb[40].mxu1  ;;  %v6013_v6 = vsub.f32 %v1474_v38, %v1538_v45  ;;  %3689 = vmatpush1.bf16.msra.mxu0 %v4842_v11 }
 0x424   : > { %v1477_v55 = vadd.f32 %v1445_v24, %v5766_v27  ;;  %v1415_v35 = vsub.f32 %v7972_v56, %v1336_v15  ;;  %v1338_v25 = vpop.f32.mrb[41].mxu1  ;;  %v1539_v13 = vmin.f32 %v5117_v28, %v1507_v3  ;;  %3691 = vmatprep.subr.bf16.mxu0 %v8096_v1 }
 0x425   : > { %v1478_v48 = vadd.f32 %v1446_v37, %v5761_v40  ;;  %v1416_v33 = vsub.f32 %v8097_v52, %v1338_v25  ;;  %1669 = vmatprep.mubr.f32.mxu0 %v6013_v6  ;;  %v1540_v38 = vmin.f32 %v5117_v28, %v1508_v30  ;;  %v8104_v52 = vld [vmem:[#allocation124_spill] sm:$0xff] }
 0x426   : > { %v1509_v21 = vmax.f32 %v5106_v44, %v1477_v55  ;;  %v1447_v27 = vmul.f32 %v1415_v35, %v5097_v61  ;;  %1670 = vmatmul.mubr.f32.gmra.mrb[66].mxu0 %v6018_v34  ;;  %v6036_v37 = vsub.f32 %v1475_v51, %v1539_v13 }
 0x427   : > { %v1510_v0 = vmax.f32 %v5106_v44, %v1478_v48  ;;  %v1448_v16 = vmul.f32 %v1416_v33, %v5097_v61  ;;  %v1342_v45 = vpop.f32.mrb[42].mxu1  ;;  %v6031_v3 = vsub.f32 %v1476_v29, %v1540_v38  ;;  %3693 = vmatpush1.bf16.msra.mxu0 %v4852_v8  ;;  %v8101_v8 = vld [vmem:[#allocation25_spill] sm:$0xff] }
 0x428   : > { %v1479_v40 = vadd.f32 %v1447_v27, %v5784_v23  ;;  %v1417_v24 = vsub.f32 %v8037_v49, %v1342_v45  ;;  %v1344_v30 = vpop.f32.mrb[43].mxu1  ;;  %v1541_v15 = vmin.f32 %v5117_v28, %v1509_v21  ;;  %3695 = vmatprep.subr.bf16.mxu0 %v8038_v14  ;;  %v8098_v27 = vld [vmem:[#allocation24_spill] sm:$0xff] }
 0x429   : > { %v1480_v35 = vadd.f32 %v1448_v16, %v5779_v43  ;;  %v1418_v25 = vsub.f32 %v8039_v50, %v1344_v30  ;;  %1675 = vmatprep.mubr.f32.mxu0 %v6031_v3  ;;  %v1542_v29 = vmin.f32 %v5117_v28, %v1510_v0  ;;  %v8099_v50 = vld [vmem:[#allocation122_spill] sm:$0xff]  ;;  %v8100_v14 = vld [vmem:[#allocation112_spill] sm:$0xff] }
 0x42a   : > { %v1511_v33 = vmax.f32 %v5106_v44, %v1479_v40  ;;  %v1449_v23 = vmul.f32 %v1417_v24, %v5097_v61  ;;  %1676 = vmatmul.mubr.f32.gmra.mrb[68].mxu0 %v6036_v37  ;;  %v6054_v30 = vsub.f32 %v1477_v55, %v1541_v15 }
 0x42b   : > { %v1512_v51 = vmax.f32 %v5106_v44, %v1480_v35  ;;  %v1450_v13 = vmul.f32 %v1418_v25, %v5097_v61  ;;  %v1348_v38 = vpop.f32.mrb[44].mxu1  ;;  %v6049_v21 = vsub.f32 %v1478_v48, %v1542_v29  ;;  %3697 = vmatpush1.bf16.msra.mxu0 %v4864_v32  ;;  %v8106_v32 = vld [vmem:[#allocation27_spill] sm:$0xff] }
 0x42c   : > { %v1481_v43 = vadd.f32 %v1449_v23, %v5802_v17  ;;  %v1419_v16 = vsub.f32 %v8098_v27, %v1348_v38  ;;  %v1350_v0 = vpop.f32.mrb[45].mxu1  ;;  %v1543_v24 = vmin.f32 %v5117_v28, %v1511_v33  ;;  %3699 = vmatprep.subr.bf16.mxu0 %v8099_v50  ;;  %v8105_v50 = vld [vmem:[#allocation111_spill] sm:$0xff]  ;;  %v8111_v38 = vld [vmem:[#allocation29_spill] sm:$0xff] }
 0x42d   : > { %v1482_v49 = vadd.f32 %v1450_v13, %v8100_v14  ;;  %v1420_v25 = vsub.f32 %v8101_v8, %v1350_v0  ;;  %1681 = vmatprep.mubr.f32.mxu0 %v6049_v21  ;;  %v1544_v48 = vmin.f32 %v5117_v28, %v1512_v51  ;;  %v8102_v14 = vld [vmem:[#allocation123_spill] sm:$0xff]  ;;  %v8103_v13 = vld [vmem:[#allocation26_spill] sm:$0xff] }
 0x42e   : > { %v1513_v29 = vmax.f32 %v5106_v44, %v1481_v43  ;;  %v1451_v17 = vmul.f32 %v1419_v16, %v5097_v61  ;;  %1682 = vmatmul.mubr.f32.gmra.mrb[70].mxu0 %v6054_v30  ;;  %v6072_v0 = vsub.f32 %v1479_v40, %v1543_v24 }
 0x42f   : > { %v1514_v55 = vmax.f32 %v5106_v44, %v1482_v49  ;;  %v1452_v15 = vmul.f32 %v1420_v25, %v5097_v61  ;;  %v1354_v33 = vpop.f32.mrb[46].mxu1  ;;  %v6067_v23 = vsub.f32 %v1480_v35, %v1544_v48  ;;  %3701 = vmatpush1.bf16.msra.mxu0 %v8102_v14  ;;  %v8115_v14 = vld [vmem:[#allocation31_spill] sm:$0xff] }
 0x430   : > { %v1483_v8 = vadd.f32 %v1451_v17, %v5820_v5  ;;  %v1421_v27 = vsub.f32 %v8103_v13, %v1354_v33  ;;  %v1356_v51 = vpop.f32.mrb[47].mxu1  ;;  %v1545_v16 = vmin.f32 %v5117_v28, %v1513_v29  ;;  %3703 = vmatprep.subr.bf16.mxu0 %v8104_v52  ;;  %v8108_v33 = vld [vmem:[#allocation28_spill] sm:$0xff] }
 0x431   : > { %v1484_v45 = vadd.f32 %v1452_v15, %v8105_v50  ;;  %v1422_v25 = vsub.f32 %v8106_v32, %v1356_v51  ;;  %1687 = vmatprep.mubr.f32.mxu0 %v6067_v23  ;;  %v1546_v35 = vmin.f32 %v5117_v28, %v1514_v55  ;;  %v8107_v50 = vld [vmem:[#allocation125_spill] sm:$0xff]  ;;  %v8110_v32 = vld [vmem:[#allocation126_spill] sm:$0xff] }
 0x432   : > { %v1515_v48 = vmax.f32 %v5106_v44, %v1483_v8  ;;  %v1453_v5 = vmul.f32 %v1421_v27, %v5097_v61  ;;  %1688 = vmatmul.mubr.f32.gmra.mrb[72].mxu0 %v6072_v0  ;;  %v6090_v51 = vsub.f32 %v1481_v43, %v1545_v16 }
 0x433   : > { %v1516_v40 = vmax.f32 %v5106_v44, %v1484_v45  ;;  %v1454_v24 = vmul.f32 %v1422_v25, %v5097_v61  ;;  %v1360_v29 = vpop.f32.mrb[48].mxu1  ;;  %v6085_v17 = vsub.f32 %v1482_v49, %v1546_v35  ;;  %3705 = vmatpush1.bf16.msra.mxu0 %v8107_v50 }
 0x434   : > { %v1485_v15 = vadd.f32 %v1453_v5, %v5838_v4  ;;  %v1423_v13 = vsub.f32 %v8108_v33, %v1360_v29  ;;  %v1362_v55 = vpop.f32.mrb[49].mxu1  ;;  %8109 = vst [vmem:[#allocation108_spill] sm:$0xff] %v6090_v51  ;;  %v1547_v27 = vmin.f32 %v5117_v28, %v1515_v48  ;;  %3707 = vmatprep.subr.bf16.mxu0 %v8110_v32  ;;  %v8113_v29 = vld [vmem:[#allocation30_spill] sm:$0xff]  ;;  %v8114_v33 = vld [vmem:[#allocation128_spill] sm:$0xff] }
 0x435   : > { %v1486_v52 = vadd.f32 %v1454_v24, %v5833_v47  ;;  %v1424_v25 = vsub.f32 %v8111_v38, %v1362_v55  ;;  %1693 = vmatprep.mubr.f32.mxu0 %v6085_v17  ;;  %v1548_v49 = vmin.f32 %v5117_v28, %v1516_v40  ;;  %v8112_v47 = vld [vmem:[#allocation127_spill] sm:$0xff]  ;;  %v8119_v55 = vld [vmem:[#allocation33_spill] sm:$0xff] }
 0x436   : > { %v1517_v35 = vmax.f32 %v5106_v44, %v1485_v15  ;;  %v1455_v4 = vmul.f32 %v1423_v13, %v5097_v61  ;;  %1694 = vmatmul.mubr.f32.gmra.mrb[74].mxu0 %v6090_v51  ;;  %v6108_v32 = vsub.f32 %v1483_v8, %v1547_v27  ;;  %v8118_v51 = vld [vmem:[#allocation130_spill] sm:$0xff] }
 0x437   : > { %v1518_v43 = vmax.f32 %v5106_v44, %v1486_v52  ;;  %v1456_v16 = vmul.f32 %v1424_v25, %v5097_v61  ;;  %v1366_v48 = vpop.f32.mrb[50].mxu1  ;;  %v6103_v5 = vsub.f32 %v1484_v45, %v1548_v49  ;;  %3709 = vmatpush1.bf16.msra.mxu0 %v8112_v47 }
 0x438   : > { %v1487_v24 = vadd.f32 %v1455_v4, %v5856_v36  ;;  %v1425_v38 = vsub.f32 %v8113_v29, %v1366_v48  ;;  %v1368_v40 = vpop.f32.mrb[51].mxu1  ;;  %v1549_v13 = vmin.f32 %v5117_v28, %v1517_v35  ;;  %3711 = vmatprep.subr.bf16.mxu0 %v8114_v33  ;;  %v8123_v48 = vld [vmem:[#allocation35_spill] sm:$0xff] }
 0x439   : > { %v1488_v50 = vadd.f32 %v1456_v16, %v5851_v10  ;;  %v1426_v25 = vsub.f32 %v8115_v14, %v1368_v40  ;;  %1699 = vmatprep.mubr.f32.mxu0 %v6103_v5  ;;  %v1550_v45 = vmin.f32 %v5117_v28, %v1518_v43  ;;  %v8116_v10 = vld [vmem:[#allocation129_spill] sm:$0xff]  ;;  %v8117_v16 = vld [vmem:[#allocation32_spill] sm:$0xff] }
 0x43a   : > { %v1519_v49 = vmax.f32 %v5106_v44, %v1487_v24  ;;  %v1457_v36 = vmul.f32 %v1425_v38, %v5097_v61  ;;  %1700 = vmatmul.mubr.f32.gmra.mrb[76].mxu0 %v6108_v32  ;;  %v6126_v40 = vsub.f32 %v1485_v15, %v1549_v13 }
 0x43b   : > { %v1520_v8 = vmax.f32 %v5106_v44, %v1488_v50  ;;  %v1458_v27 = vmul.f32 %v1426_v25, %v5097_v61  ;;  %v1372_v35 = vpop.f32.mrb[52].mxu1  ;;  %v6121_v4 = vsub.f32 %v1486_v52, %v1550_v45  ;;  %3713 = vmatpush1.bf16.msra.mxu0 %v8116_v10 }
 0x43c   : > { %v1489_v14 = vadd.f32 %v1457_v36, %v5874_v9  ;;  %v1427_v29 = vsub.f32 %v8117_v16, %v1372_v35  ;;  %v1374_v43 = vpop.f32.mrb[53].mxu1  ;;  %v1551_v38 = vmin.f32 %v5117_v28, %v1519_v49  ;;  %3715 = vmatprep.subr.bf16.mxu0 %v8118_v51  ;;  %v8121_v35 = vld [vmem:[#allocation34_spill] sm:$0xff] }
 0x43d   : > { %v1490_v33 = vadd.f32 %v1458_v27, %v5869_v41  ;;  %v1428_v25 = vsub.f32 %v8119_v55, %v1374_v43  ;;  %1705 = vmatprep.mubr.f32.mxu0 %v6121_v4  ;;  %v1552_v52 = vmin.f32 %v5117_v28, %v1520_v8  ;;  %v8120_v41 = vld [vmem:[#allocation131_spill] sm:$0xff]  ;;  %v8122_v55 = vld [vmem:[#allocation132_spill] sm:$0xff] }
 0x43e   : > { %v1521_v45 = vmax.f32 %v5106_v44, %v1489_v14  ;;  %v1459_v9 = vmul.f32 %v1427_v29, %v5097_v61  ;;  %1706 = vmatmul.mubr.f32.gmra.mrb[78].mxu0 %v6126_v40  ;;  %v6144_v43 = vsub.f32 %v1487_v24, %v1551_v38 }
 0x43f   : > { %v1522_v15 = vmax.f32 %v5106_v44, %v1490_v33  ;;  %v1460_v13 = vmul.f32 %v1428_v25, %v5097_v61  ;;  %v1378_v49 = vpop.f32.mrb[54].mxu1  ;;  %v6139_v36 = vsub.f32 %v1488_v50, %v1552_v52  ;;  %3717 = vmatpush1.bf16.msra.mxu0 %v8120_v41  ;;  %v8127_v41 = vld [vmem:[#allocation37_spill] sm:$0xff] }
 0x440   : > { %v1491_v27 = vadd.f32 %v1459_v9, %v5892_v59  ;;  %v1429_v16 = vsub.f32 %v8121_v35, %v1378_v49  ;;  %v1380_v8 = vpop.f32.mrb[55].mxu1  ;;  %v1553_v29 = vmin.f32 %v5117_v28, %v1521_v45  ;;  %3719 = vmatprep.subr.bf16.mxu0 %v8122_v55  ;;  %v8125_v49 = vld [vmem:[#allocation36_spill] sm:$0xff]  ;;  %v8126_v55 = vld [vmem:[#allocation134_spill] sm:$0xff] }
 0x441   : > { %v1492_v51 = vadd.f32 %v1460_v13, %v5887_v18  ;;  %v1430_v25 = vsub.f32 %v8123_v48, %v1380_v8  ;;  %1711 = vmatprep.mubr.f32.mxu0 %v6139_v36  ;;  %v1554_v50 = vmin.f32 %v5117_v28, %v1522_v15  ;;  %v8124_v18 = vld [vmem:[#allocation133_spill] sm:$0xff] }
 0x442   : > { %v1523_v52 = vmax.f32 %v5106_v44, %v1491_v27  ;;  %v1461_v59 = vmul.f32 %v1429_v16, %v5097_v61  ;;  %1712 = vmatmul.mubr.f32.gmra.mrb[80].mxu0 %v6144_v43  ;;  %v6162_v48 = vsub.f32 %v1489_v14, %v1553_v29 }
 0x443   : > { %v1524_v24 = vmax.f32 %v5106_v44, %v1492_v51  ;;  %v1462_v38 = vmul.f32 %v1430_v25, %v5097_v61  ;;  %v1384_v45 = vpop.f32.mrb[56].mxu1  ;;  %v6157_v9 = vsub.f32 %v1490_v33, %v1554_v50  ;;  %3721 = vmatpush1.bf16.msra.mxu0 %v8124_v18 }
 0x444   : > { %v1493_v13 = vadd.f32 %v1461_v59, %v5910_v22  ;;  %v1431_v8 = vsub.f32 %v8125_v49, %v1384_v45  ;;  %v1386_v15 = vpop.f32.mrb[57].mxu1  ;;  %v1555_v16 = vmin.f32 %v5117_v28, %v1523_v52  ;;  %3723 = vmatprep.subr.bf16.mxu0 %v8126_v55  ;;  %v8131_v49 = vld [vmem:[#allocation39_spill] sm:$0xff] }
 0x445   : > { %v1494_v35 = vadd.f32 %v1462_v38, %v5905_v39  ;;  %v1432_v25 = vsub.f32 %v8127_v41, %v1386_v15  ;;  %1717 = vmatprep.mubr.f32.mxu0 %v6157_v9  ;;  %v1556_v33 = vmin.f32 %v5117_v28, %v1524_v24  ;;  %v8129_v38 = vld [vmem:[#allocation38_spill] sm:$0xff]  ;;  %v8130_v41 = vld [vmem:[#allocation136_spill] sm:$0xff] }
 0x446   : > { %v1525_v50 = vmax.f32 %v5106_v44, %v1493_v13  ;;  %v1463_v22 = vmul.f32 %v1431_v8, %v5097_v61  ;;  %1718 = vmatmul.mubr.f32.gmra.mrb[82].mxu0 %v6162_v48  ;;  %v6180_v15 = vsub.f32 %v1491_v27, %v1555_v16 }
 0x447   : > { %v1526_v14 = vmax.f32 %v5106_v44, %v1494_v35  ;;  %v1464_v29 = vmul.f32 %v1432_v25, %v5097_v61  ;;  %v1390_v52 = vpop.f32.mrb[58].mxu1  ;;  %v6175_v59 = vsub.f32 %v1492_v51, %v1556_v33  ;;  %3725 = vmatpush1.bf16.msra.mxu0 %v8066_v20  ;;  %v8135_v20 = vld [vmem:[#allocation41_spill] sm:$0xff] }
 0x448   : > { %v1495_v39 = vadd.f32 %v1463_v22, %v5928_v19  ;;  %v1433_v45 = vsub.f32 %v8129_v38, %v1390_v52  ;;  %v1392_v24 = vpop.f32.mrb[59].mxu1  ;;  %v1557_v8 = vmin.f32 %v5117_v28, %v1525_v50  ;;  %3727 = vmatprep.subr.bf16.mxu0 %v8130_v41  ;;  %v8133_v52 = vld [vmem:[#allocation40_spill] sm:$0xff]  ;;  %v8134_v41 = vld [vmem:[#allocation138_spill] sm:$0xff] }
 0x449   : > { %8128 = vst [vmem:[#allocation116_spill] sm:$0xff] %v6175_v59  ;;  %v1496_v55 = vadd.f32 %v1464_v29, %v5923_v12  ;;  %v1434_v25 = vsub.f32 %v8131_v49, %v1392_v24  ;;  %1723 = vmatprep.mubr.f32.mxu0 %v6175_v59  ;;  %v1558_v51 = vmin.f32 %v5117_v28, %v1526_v14  ;;  %v8132_v12 = vld [vmem:[#allocation137_spill] sm:$0xff]  ;;  %v8137_v59 = vld [vmem:[#allocation43_spill] sm:$0xff] }
 0x44a   : > { %v1527_v33 = vmax.f32 %v5106_v44, %v1495_v39  ;;  %v1465_v19 = vmul.f32 %v1433_v45, %v5097_v61  ;;  %1724 = vmatmul.mubr.f32.gmra.mrb[84].mxu0 %v6180_v15  ;;  %v6198_v49 = vsub.f32 %v1493_v13, %v1557_v8 }
 0x44b   : > { %v1528_v27 = vmax.f32 %v5106_v44, %v1496_v55  ;;  %v1466_v16 = vmul.f32 %v1434_v25, %v5097_v61  ;;  %v1396_v50 = vpop.f32.mrb[60].mxu1  ;;  %v6193_v22 = vsub.f32 %v1494_v35, %v1558_v51  ;;  %3729 = vmatpush1.bf16.msra.mxu0 %v8132_v12 }
 0x44c   : > { %v1497_v29 = vadd.f32 %v1465_v19, %v5945_v26  ;;  %v1435_v24 = vsub.f32 %v8133_v52, %v1396_v50  ;;  %v1398_v14 = vpop.f32.mrb[61].mxu1  ;;  %v1559_v45 = vmin.f32 %v5117_v28, %v1527_v33  ;;  %3731 = vmatprep.subr.bf16.mxu0 %v8134_v41 }
 0x44d   : > { %v1498_v38 = vadd.f32 %v1466_v16, %v5941_v60  ;;  %v1436_v25 = vsub.f32 %v8135_v20, %v1398_v14  ;;  %1729 = vmatprep.mubr.f32.mxu0 %v6193_v22  ;;  %v1560_v35 = vmin.f32 %v5117_v28, %v1528_v27 }
 0x44e   : > { %v1529_v51 = vmax.f32 %v5106_v44, %v1497_v29  ;;  %v1467_v26 = vmul.f32 %v1435_v24, %v5097_v61  ;;  %1730 = vmatmul.mubr.f32.gmra.mrb[86].mxu0 %v6198_v49  ;;  %v6216_v16 = vsub.f32 %v1495_v39, %v1559_v45  ;;  %v8136_v24 = vld [vmem:[#allocation139_spill] sm:$0xff] }
 0x44f   : > { %v1530_v13 = vmax.f32 %v5106_v44, %v1498_v38  ;;  %v1468_v8 = vmul.f32 %v1436_v25, %v5097_v61  ;;  %v1402_v33 = vpop.f32.mrb[62].mxu1  ;;  %v6211_v19 = vsub.f32 %v1496_v55, %v1560_v35  ;;  %3733 = vmatpush1.bf16.msra.mxu0 %v7946_v2 }
 0x450   : > { %v1499_v20 = vadd.f32 %v1467_v26, %v5958_v42  ;;  %v1437_v60 = vsub.f32 %v8074_v53, %v1402_v33  ;;  %v1404_v27 = vpop.f32.mrb[63].mxu1  ;;  %v1561_v50 = vmin.f32 %v5117_v28, %v1529_v51  ;;  %3735 = vmatprep.subr.bf16.mxu0 %v8075_v31  ;;  %v8138_v26 = vld [vmem:[#allocation141_spill] sm:$0xff] }
 0x451   : > { %v1500_v14 = vadd.f32 %v1468_v8, %v8136_v24  ;;  %v1438_v25 = vsub.f32 %v8137_v59, %v1404_v27  ;;  %1735 = vmatprep.mubr.f32.mxu0 %v6211_v19  ;;  %v1562_v55 = vmin.f32 %v5117_v28, %v1530_v13  ;;  %v8139_v8 = vld [vmem:[#allocation110_spill] sm:$0xff]  ;;  %v8141_v59 = vld [vmem:[#allocation109_spill] sm:$0xff] }
 0x452   : > { %v1531_v35 = vmax.f32 %v5106_v44, %v1499_v20  ;;  %v1469_v42 = vmul.f32 %v1437_v60, %v5097_v61  ;;  %1736 = vmatmul.mubr.f32.gmra.mrb[88].mxu0 %v6216_v16  ;;  %v6233_v27 = vsub.f32 %v1497_v29, %v1561_v50  ;;  %v8140_v24 = vld [vmem:[#allocation142_spill] sm:$0xff]  ;;  %v8143_v29 = vld [vmem:[#allocation143_spill] sm:$0xff] }
 0x453   : > { %v1532_v39 = vmax.f32 %v5106_v44, %v1500_v14  ;;  %v1470_v45 = vmul.f32 %v1438_v25, %v5097_v61  ;;  %v6229_v51 = vsub.f32 %v1498_v38, %v1562_v55  ;;  %3737 = vmatpush1.bf16.msra.mxu0 %v8138_v26 }
 0x454   : > { %v1501_v33 = vadd.f32 %v1469_v42, %v8139_v8  ;;  %v1563_v13 = vmin.f32 %v5117_v28, %v1531_v35  ;;  %3739 = vmatprep.subr.bf16.mxu0 %v8140_v24  ;;  %v8144_v42 = vld [vmem:[#allocation144_spill] sm:$0xff] }
 0x455   : > { %v1502_v60 = vadd.f32 %v1470_v45, %v8141_v59  ;;  %1741 = vmatprep.mubr.f32.mxu0 %v6229_v51  ;;  %v1564_v31 = vmin.f32 %v5117_v28, %v1532_v39  ;;  %v8146_v45 = vld [vmem:[#allocation145_spill] sm:$0xff] }
 0x456   : > { %v1533_v25 = vmax.f32 %v5106_v44, %v1501_v33  ;;  %1742 = vmatmul.mubr.f32.gmra.mrb[90].mxu0 %v6233_v27  ;;  %v6246_v50 = vsub.f32 %v1499_v20, %v1563_v13  ;;  %v8149_v20 = vld [vmem:[#allocation147_spill] sm:$0xff] }
 0x457   : > { %v1534_v38 = vmax.f32 %v5106_v44, %v1502_v60  ;;  %v6243_v55 = vsub.f32 %v1500_v14, %v1564_v31  ;;  %3741 = vmatpush1.bf16.msra.mxu0 %v8143_v29  ;;  %v8148_v14 = vld [vmem:[#allocation146_spill] sm:$0xff] }
 0x458   : > { %v1565_v35 = vmin.f32 %v5117_v28, %v1533_v25  ;;  %3743 = vmatprep.subr.bf16.mxu0 %v8144_v42 }
 0x459   : > { %8142 = vst [vmem:[#allocation115_spill] sm:$0xff] %v6243_v55  ;;  %1747 = vmatprep.mubr.f32.mxu0 %v6243_v55  ;;  %v1566_v59 = vmin.f32 %v5117_v28, %v1534_v38  ;;  %v8150_v38 = vld [vmem:[#allocation13_spill] sm:$0xff] }
 0x45a   : > { %1748 = vmatmul.mubr.f32.gmra.mrb[92].mxu0 %v6246_v50  ;;  %v6256_v31 = vsub.f32 %v1501_v33, %v1565_v35 }
 0x45b   : > { %v6253_v39 = vsub.f32 %v1502_v60, %v1566_v59  ;;  %3745 = vmatpush1.bf16.msra.mxu0 %v8146_v45 }
 0x45c   : > { %8147 = vst [vmem:[#allocation113_spill] sm:$0xff] %v6256_v31  ;;  %3747 = vmatprep.subr.bf16.mxu0 %v8148_v14  ;;  %v8151_v14 = vld [vmem:[#allocation14_spill] sm:$0xff] }
 0x45d   : > { %8145 = vst [vmem:[#allocation114_spill] sm:$0xff] %v6253_v39  ;;  %1753 = vmatprep.mubr.f32.mxu0 %v6253_v39  ;;  %v8152_v45 = vmov %v8151_v14 }
 0x45e   : > { %1754 = vmatmul.mubr.f32.gmra.mrb[94].mxu0 %v6256_v31  ;;  %v8153_v31 = vld [vmem:[#allocation15_spill] sm:$0xff] }
 0x45f   : > { %3749 = vmatpush1.bf16.msra.mxu0 %v8149_v20 }
 0x4f5   : > { %v1665_v8 = vpop.f32.mrb[64].mxu0 }
 0x4f6   : > { %v1760_v13 = vsub.f32 %v8028_v46, %v1665_v8  ;;  %v1667_v25 = vpop.f32.mrb[65].mxu0 }
 0x4f7   : > { %v1761_v42 = vsub.f32 %v8150_v38, %v1667_v25 }
 0x4f8   : > { %v1792_v60 = vmul.f32 %v1760_v13, %v5097_v61 }
 0x4f9   : > { %v1793_v59 = vmul.f32 %v1761_v42, %v5097_v61  ;;  %v1671_v33 = vpop.f32.mrb[66].mxu0 }
 0x4fa   : > { %v1824_v35 = vadd.f32 %v1792_v60, %v5999_v7  ;;  %v1762_v29 = vsub.f32 %v8151_v14, %v1671_v33  ;;  %v1673_v39 = vpop.f32.mrb[67].mxu0 }
 0x4fb   : > { %v1825_v24 = vadd.f32 %v1793_v59, %v5997_v54  ;;  %v1763_v20 = vsub.f32 %v8153_v31, %v1673_v39 }
 0x4fc   : > { %v1856_v26 = vmax.f32 %v5106_v44, %v1824_v35  ;;  %v1794_v8 = vmul.f32 %v1762_v29, %v5097_v61 }
 0x4fd   : > { %v1857_v25 = vmax.f32 %v5106_v44, %v1825_v24  ;;  %v1795_v13 = vmul.f32 %v1763_v20, %v5097_v61  ;;  %v1677_v38 = vpop.f32.mrb[68].mxu0 }
 0x4fe   : > { %v1888_v42 = vmin.f32 %v5117_v28, %v1856_v26  ;;  %v1826_v7 = vadd.f32 %v1794_v8, %v6018_v34  ;;  %v1764_v14 = vsub.f32 %v7905_v57, %v1677_v38  ;;  %v1679_v60 = vpop.f32.mrb[69].mxu0 }
 0x4ff   : > { %v1827_v54 = vadd.f32 %v1795_v13, %v6013_v6  ;;  %v1765_v39 = vsub.f32 %v8095_v63, %v1679_v60  ;;  %v1889_v31 = vmin.f32 %v5117_v28, %v1857_v25 }
 0x500   : > { %v1858_v29 = vmax.f32 %v5106_v44, %v1826_v7  ;;  %v1796_v59 = vmul.f32 %v1764_v14, %v5097_v61  ;;  %v6286_v34 = vsub.f32 %v1824_v35, %v1888_v42 }
 0x501   : > { %v1859_v20 = vmax.f32 %v5106_v44, %v1827_v54  ;;  %v1797_v33 = vmul.f32 %v1765_v39, %v5097_v61  ;;  %v1683_v26 = vpop.f32.mrb[70].mxu0  ;;  %v6284_v55 = vsub.f32 %v1825_v24, %v1889_v31 }
 0x502   : > { %v1828_v38 = vadd.f32 %v1796_v59, %v6036_v37  ;;  %v1766_v6 = vsub.f32 %v7907_v62, %v1683_v26  ;;  %v1685_v8 = vpop.f32.mrb[71].mxu0  ;;  %v1890_v25 = vmin.f32 %v5117_v28, %v1858_v29 }
 0x503   : > { %v1829_v13 = vadd.f32 %v1797_v33, %v6031_v3  ;;  %v1767_v14 = vsub.f32 %v8034_v58, %v1685_v8  ;;  %2016 = vmatprep.mubr.f32.mxu1 %v6284_v55  ;;  %v1891_v60 = vmin.f32 %v5117_v28, %v1859_v20  ;;  %v8158_v58 = vld [vmem:[#allocation23_spill] sm:$0xff] }
 0x504   : > { %v1860_v24 = vmax.f32 %v5106_v44, %v1828_v38  ;;  %v1798_v35 = vmul.f32 %v1766_v6, %v5097_v61  ;;  %2017 = vmatmul.mubr.f32.vlgmr.msra.gmra.mrb[64].mxu1 %v6286_v34  ;;  %v6305_v20 = vsub.f32 %v1826_v7, %v1890_v25  ;;  %v8154_v6 = vld [vmem:[#allocation21_spill] sm:$0xff] }
 0x505   : > { %v1861_v37 = vmax.f32 %v5106_v44, %v1829_v13  ;;  %v1799_v42 = vmul.f32 %v1767_v14, %v5097_v61  ;;  %v1689_v39 = vpop.f32.mrb[72].mxu0  ;;  %v6300_v31 = vsub.f32 %v1827_v54, %v1891_v60  ;;  %3753 = vmatpush1.bf16.msra.mxu1 %v4842_v11 }
 0x506   : > { %v1830_v3 = vadd.f32 %v1798_v35, %v6054_v30  ;;  %v1768_v29 = vsub.f32 %v7972_v56, %v1689_v39  ;;  %v1691_v59 = vpop.f32.mrb[73].mxu0  ;;  %v1892_v33 = vmin.f32 %v5117_v28, %v1860_v24  ;;  %3755 = vmatprep.subr.bf16.mxu1 %v8096_v1  ;;  %v8156_v24 = vld [vmem:[#allocation22_spill] sm:$0xff]  ;;  %v8163_v56 = vld [vmem:[#allocation25_spill] sm:$0xff] }
 0x507   : > { %v1831_v26 = vadd.f32 %v1799_v42, %v6049_v21  ;;  %v1769_v8 = vsub.f32 %v8154_v6, %v1691_v59  ;;  %2022 = vmatprep.mubr.f32.mxu1 %v6300_v31  ;;  %v1893_v54 = vmin.f32 %v5117_v28, %v1861_v37  ;;  %v8155_v21 = vld [vmem:[#allocation119_spill] sm:$0xff]  ;;  %v8157_v59 = vld [vmem:[#allocation120_spill] sm:$0xff] }
 0x508   : > { %v1862_v11 = vmax.f32 %v5106_v44, %v1830_v3  ;;  %v1800_v30 = vmul.f32 %v1768_v29, %v5097_v61  ;;  %2023 = vmatmul.mubr.f32.gmra.mrb[66].mxu1 %v6305_v20  ;;  %v6323_v39 = vsub.f32 %v1828_v38, %v1892_v33 }
 0x509   : > { %v1863_v7 = vmax.f32 %v5106_v44, %v1831_v26  ;;  %v1801_v25 = vmul.f32 %v1769_v8, %v5097_v61  ;;  %v1695_v14 = vpop.f32.mrb[74].mxu0  ;;  %v6318_v1 = vsub.f32 %v1829_v13, %v1893_v54  ;;  %3757 = vmatpush1.bf16.msra.mxu1 %v8155_v21  ;;  %v8161_v21 = vld [vmem:[#allocation24_spill] sm:$0xff] }
 0x50a   : > { %v1832_v60 = vadd.f32 %v1800_v30, %v6072_v0  ;;  %v1770_v42 = vsub.f32 %v8156_v24, %v1695_v14  ;;  %v1697_v37 = vpop.f32.mrb[75].mxu0  ;;  %v1894_v29 = vmin.f32 %v5117_v28, %v1862_v11  ;;  %3759 = vmatprep.subr.bf16.mxu1 %v8157_v59 }
 0x50b   : > { %v1833_v6 = vadd.f32 %v1801_v25, %v6067_v23  ;;  %v1771_v8 = vsub.f32 %v8158_v58, %v1697_v37  ;;  %2028 = vmatprep.mubr.f32.mxu1 %v6318_v1  ;;  %v1895_v13 = vmin.f32 %v5117_v28, %v1863_v7  ;;  %v8159_v23 = vld [vmem:[#allocation121_spill] sm:$0xff]  ;;  %v8160_v25 = vld [vmem:[#allocation108_spill] sm:$0xff]  ;;  %v8162_v58 = vld [vmem:[#allocation122_spill] sm:$0xff] }
 0x50c   : > { %v1864_v54 = vmax.f32 %v5106_v44, %v1832_v60  ;;  %v1802_v0 = vmul.f32 %v1770_v42, %v5097_v61  ;;  %2029 = vmatmul.mubr.f32.gmra.mrb[68].mxu1 %v6323_v39  ;;  %v6341_v59 = vsub.f32 %v1830_v3, %v1894_v29  ;;  %v8168_v37 = vld [vmem:[#allocation27_spill] sm:$0xff] }
 0x50d   : > { %v1865_v38 = vmax.f32 %v5106_v44, %v1833_v6  ;;  %v1803_v33 = vmul.f32 %v1771_v8, %v5097_v61  ;;  %v1701_v11 = vpop.f32.mrb[76].mxu0  ;;  %v6336_v30 = vsub.f32 %v1831_v26, %v1895_v13  ;;  %3761 = vmatpush1.bf16.msra.mxu1 %v8159_v23 }
 0x50e   : > { %v1834_v14 = vadd.f32 %v1802_v0, %v8160_v25  ;;  %v1772_v24 = vsub.f32 %v8161_v21, %v1701_v11  ;;  %v1703_v7 = vpop.f32.mrb[77].mxu0  ;;  %v1896_v42 = vmin.f32 %v5117_v28, %v1864_v54  ;;  %3763 = vmatprep.subr.bf16.mxu1 %v8162_v58  ;;  %v8165_v11 = vld [vmem:[#allocation26_spill] sm:$0xff] }
 0x50f   : > { %v1835_v35 = vadd.f32 %v1803_v33, %v6085_v17  ;;  %v1773_v8 = vsub.f32 %v8163_v56, %v1703_v7  ;;  %2034 = vmatprep.mubr.f32.mxu1 %v6336_v30  ;;  %v1897_v26 = vmin.f32 %v5117_v28, %v1865_v38  ;;  %v8164_v17 = vld [vmem:[#allocation123_spill] sm:$0xff]  ;;  %v8166_v56 = vmov %v8165_v11 }
 0x510   : > { %v1866_v13 = vmax.f32 %v5106_v44, %v1834_v14  ;;  %v1804_v0 = vmul.f32 %v1772_v24, %v5097_v61  ;;  %2035 = vmatmul.mubr.f32.gmra.mrb[70].mxu1 %v6341_v59  ;;  %v6359_v25 = vsub.f32 %v1832_v60, %v1896_v42  ;;  %v8167_v24 = vld [vmem:[#allocation124_spill] sm:$0xff] }
 0x511   : > { %v1867_v3 = vmax.f32 %v5106_v44, %v1835_v35  ;;  %v1805_v29 = vmul.f32 %v1773_v8, %v5097_v61  ;;  %v1707_v54 = vpop.f32.mrb[78].mxu0  ;;  %v6354_v58 = vsub.f32 %v1833_v6, %v1897_v26  ;;  %3765 = vmatpush1.bf16.msra.mxu1 %v8164_v17 }
 0x512   : > { %v1836_v33 = vadd.f32 %v1804_v0, %v6108_v32  ;;  %v1774_v23 = vsub.f32 %v8165_v11, %v1707_v54  ;;  %v1709_v38 = vpop.f32.mrb[79].mxu0  ;;  %v1898_v21 = vmin.f32 %v5117_v28, %v1866_v13  ;;  %3767 = vmatprep.subr.bf16.mxu1 %v8167_v24  ;;  %v8170_v54 = vld [vmem:[#allocation28_spill] sm:$0xff] }
 0x513   : > { %v1837_v7 = vadd.f32 %v1805_v29, %v6103_v5  ;;  %v1775_v8 = vsub.f32 %v8168_v37, %v1709_v38  ;;  %2040 = vmatprep.mubr.f32.mxu1 %v6354_v58  ;;  %v1899_v6 = vmin.f32 %v5117_v28, %v1867_v3  ;;  %v8169_v5 = vld [vmem:[#allocation125_spill] sm:$0xff]  ;;  %v8171_v38 = vld [vmem:[#allocation126_spill] sm:$0xff] }
 0x514   : > { %v1868_v26 = vmax.f32 %v5106_v44, %v1836_v33  ;;  %v1806_v32 = vmul.f32 %v1774_v23, %v5097_v61  ;;  %2041 = vmatmul.mubr.f32.gmra.mrb[72].mxu1 %v6359_v25  ;;  %v6377_v11 = vsub.f32 %v1834_v14, %v1898_v21  ;;  %v8172_v37 = vld [vmem:[#allocation29_spill] sm:$0xff] }
 0x515   : > { %v1869_v60 = vmax.f32 %v5106_v44, %v1837_v7  ;;  %v1807_v42 = vmul.f32 %v1775_v8, %v5097_v61  ;;  %v1713_v13 = vpop.f32.mrb[80].mxu0  ;;  %v6372_v0 = vsub.f32 %v1835_v35, %v1899_v6  ;;  %3769 = vmatpush1.bf16.msra.mxu1 %v8169_v5 }
 0x516   : > { %v1838_v29 = vadd.f32 %v1806_v32, %v6126_v40  ;;  %v1776_v17 = vsub.f32 %v8170_v54, %v1713_v13  ;;  %v1715_v3 = vpop.f32.mrb[81].mxu0  ;;  %v1900_v23 = vmin.f32 %v5117_v28, %v1868_v26  ;;  %3771 = vmatprep.subr.bf16.mxu1 %v8171_v38 }
 0x517   : > { %v1839_v24 = vadd.f32 %v1807_v42, %v6121_v4  ;;  %v1777_v8 = vsub.f32 %v8172_v37, %v1715_v3  ;;  %2046 = vmatprep.mubr.f32.mxu1 %v6372_v0  ;;  %v1901_v35 = vmin.f32 %v5117_v28, %v1869_v60  ;;  %v8173_v42 = vld [vmem:[#allocation30_spill] sm:$0xff]  ;;  %v8174_v3 = vld [vmem:[#allocation128_spill] sm:$0xff]  ;;  %v8175_v37 = vld [vmem:[#allocation31_spill] sm:$0xff] }
 0x518   : > { %v1870_v6 = vmax.f32 %v5106_v44, %v1838_v29  ;;  %v1808_v40 = vmul.f32 %v1776_v17, %v5097_v61  ;;  %2047 = vmatmul.mubr.f32.gmra.mrb[74].mxu1 %v6377_v11  ;;  %v6395_v5 = vsub.f32 %v1836_v33, %v1900_v23 }
 0x519   : > { %v1871_v14 = vmax.f32 %v5106_v44, %v1839_v24  ;;  %v1809_v21 = vmul.f32 %v1777_v8, %v5097_v61  ;;  %v1719_v26 = vpop.f32.mrb[82].mxu0  ;;  %v6390_v32 = vsub.f32 %v1837_v7, %v1901_v35  ;;  %3773 = vmatpush1.bf16.msra.mxu1 %v8112_v47 }
 0x51a   : > { %v1840_v4 = vadd.f32 %v1808_v40, %v6144_v43  ;;  %v1778_v13 = vsub.f32 %v8173_v42, %v1719_v26  ;;  %v1721_v60 = vpop.f32.mrb[83].mxu0  ;;  %v1902_v17 = vmin.f32 %v5117_v28, %v1870_v6  ;;  %3775 = vmatprep.subr.bf16.mxu1 %v8174_v3  ;;  %v8177_v40 = vld [vmem:[#allocation32_spill] sm:$0xff] }
 0x51b   : > { %v1841_v38 = vadd.f32 %v1809_v21, %v6139_v36  ;;  %v1779_v8 = vsub.f32 %v8175_v37, %v1721_v60  ;;  %2052 = vmatprep.mubr.f32.mxu1 %v6390_v32  ;;  %v1903_v7 = vmin.f32 %v5117_v28, %v1871_v14  ;;  %v8178_v60 = vld [vmem:[#allocation130_spill] sm:$0xff]  ;;  %v8179_v37 = vld [vmem:[#allocation33_spill] sm:$0xff] }
 0x51c   : > { %v1872_v47 = vmax.f32 %v5106_v44, %v1840_v4  ;;  %v1810_v43 = vmul.f32 %v1778_v13, %v5097_v61  ;;  %2053 = vmatmul.mubr.f32.gmra.mrb[76].mxu1 %v6395_v5  ;;  %v6413_v26 = vsub.f32 %v1838_v29, %v1902_v17 }
 0x51d   : > { %v1873_v33 = vmax.f32 %v5106_v44, %v1841_v38  ;;  %v1811_v23 = vmul.f32 %v1779_v8, %v5097_v61  ;;  %v1725_v35 = vpop.f32.mrb[84].mxu0  ;;  %v6408_v6 = vsub.f32 %v1839_v24, %v1903_v7  ;;  %3777 = vmatpush1.bf16.msra.mxu1 %v8116_v10 }
 0x51e   : > { %v1842_v36 = vadd.f32 %v1810_v43, %v6162_v48  ;;  %v1780_v21 = vsub.f32 %v8177_v40, %v1725_v35  ;;  %v1727_v14 = vpop.f32.mrb[85].mxu0  ;;  %v1904_v13 = vmin.f32 %v5117_v28, %v1872_v47  ;;  %3779 = vmatprep.subr.bf16.mxu1 %v8178_v60  ;;  %v8184_v40 = vld [vmem:[#allocation116_spill] sm:$0xff] }
 0x51f   : > { %8176 = vst [vmem:[#allocation117_spill] sm:$0xff] %v6408_v6  ;;  %v1843_v3 = vadd.f32 %v1811_v23, %v6157_v9  ;;  %v1781_v8 = vsub.f32 %v8179_v37, %v1727_v14  ;;  %2058 = vmatprep.mubr.f32.mxu1 %v6408_v6  ;;  %v1905_v24 = vmin.f32 %v5117_v28, %v1873_v33  ;;  %v8180_v9 = vld [vmem:[#allocation131_spill] sm:$0xff]  ;;  %v8181_v23 = vld [vmem:[#allocation34_spill] sm:$0xff]  ;;  %v8183_v37 = vld [vmem:[#allocation132_spill] sm:$0xff] }
 0x520   : > { %v1874_v10 = vmax.f32 %v5106_v44, %v1842_v36  ;;  %v1812_v48 = vmul.f32 %v1780_v21, %v5097_v61  ;;  %2059 = vmatmul.mubr.f32.gmra.mrb[78].mxu1 %v6413_v26  ;;  %v8182_v35 = vmov %v8181_v23  ;;  %v6431_v60 = vsub.f32 %v1840_v4, %v1904_v13  ;;  %v8185_v6 = vld [vmem:[#allocation35_spill] sm:$0xff] }
 0x521   : > { %v1875_v29 = vmax.f32 %v5106_v44, %v1843_v3  ;;  %v1813_v17 = vmul.f32 %v1781_v8, %v5097_v61  ;;  %v1731_v7 = vpop.f32.mrb[86].mxu0  ;;  %v6426_v47 = vsub.f32 %v1841_v38, %v1905_v24  ;;  %3781 = vmatpush1.bf16.msra.mxu1 %v8180_v9  ;;  %v8186_v54 = vmov %v8185_v6  ;;  %v8188_v9 = vld [vmem:[#allocation134_spill] sm:$0xff] }
 0x522   : > { %v1844_v43 = vadd.f32 %v1812_v48, %v6180_v15  ;;  %v1782_v14 = vsub.f32 %v8181_v23, %v1731_v7  ;;  %v1733_v33 = vpop.f32.mrb[87].mxu0  ;;  %v1906_v21 = vmin.f32 %v5117_v28, %v1874_v10  ;;  %3783 = vmatprep.subr.bf16.mxu1 %v8183_v37 }
 0x523   : > { %v1845_v42 = vadd.f32 %v1813_v17, %v8184_v40  ;;  %v1783_v8 = vsub.f32 %v8185_v6, %v1733_v33  ;;  %2064 = vmatprep.mubr.f32.mxu1 %v6426_v47  ;;  %v1907_v38 = vmin.f32 %v5117_v28, %v1875_v29  ;;  %v8187_v40 = vld [vmem:[#allocation36_spill] sm:$0xff] }
 0x524   : > { %v1876_v24 = vmax.f32 %v5106_v44, %v1844_v43  ;;  %v1814_v15 = vmul.f32 %v1782_v14, %v5097_v61  ;;  %2065 = vmatmul.mubr.f32.gmra.mrb[80].mxu1 %v6431_v60  ;;  %v6449_v17 = vsub.f32 %v1842_v36, %v1906_v21  ;;  %v8189_v14 = vld [vmem:[#allocation37_spill] sm:$0xff] }
 0x525   : > { %v1877_v4 = vmax.f32 %v5106_v44, %v1845_v42  ;;  %v1815_v13 = vmul.f32 %v1783_v8, %v5097_v61  ;;  %v1737_v10 = vpop.f32.mrb[88].mxu0  ;;  %v6444_v37 = vsub.f32 %v1843_v3, %v1907_v38  ;;  %3785 = vmatpush1.bf16.msra.mxu1 %v8124_v18 }
 0x526   : > { %v1846_v6 = vadd.f32 %v1814_v15, %v6198_v49  ;;  %v1784_v48 = vsub.f32 %v8187_v40, %v1737_v10  ;;  %v1739_v29 = vpop.f32.mrb[89].mxu0  ;;  %v1908_v7 = vmin.f32 %v5117_v28, %v1876_v24  ;;  %3787 = vmatprep.subr.bf16.mxu1 %v8188_v9  ;;  %v8193_v9 = vld [vmem:[#allocation136_spill] sm:$0xff]  ;;  %v8194_v40 = vld [vmem:[#allocation39_spill] sm:$0xff] }
 0x527   : > { %v1847_v23 = vadd.f32 %v1815_v13, %v6193_v22  ;;  %v1785_v8 = vsub.f32 %v8189_v14, %v1739_v29  ;;  %2070 = vmatprep.mubr.f32.mxu1 %v6444_v37  ;;  %v1909_v3 = vmin.f32 %v5117_v28, %v1877_v4  ;;  %v8190_v22 = vld [vmem:[#allocation135_spill] sm:$0xff]  ;;  %v8191_v13 = vld [vmem:[#allocation38_spill] sm:$0xff] }
 0x528   : > { %v1878_v18 = vmax.f32 %v5106_v44, %v1846_v6  ;;  %v1816_v49 = vmul.f32 %v1784_v48, %v5097_v61  ;;  %2071 = vmatmul.mubr.f32.gmra.mrb[82].mxu1 %v6449_v17  ;;  %v8192_v33 = vmov %v8191_v13  ;;  %v6467_v29 = vsub.f32 %v1844_v43, %v1908_v7 }
 0x529   : > { %v1879_v36 = vmax.f32 %v5106_v44, %v1847_v23  ;;  %v1817_v21 = vmul.f32 %v1785_v8, %v5097_v61  ;;  %v1743_v38 = vpop.f32.mrb[90].mxu0  ;;  %v6462_v24 = vsub.f32 %v1845_v42, %v1909_v3  ;;  %3789 = vmatpush1.bf16.msra.mxu1 %v8190_v22 }
 0x52a   : > { %v1848_v15 = vadd.f32 %v1816_v49, %v6216_v16  ;;  %v1786_v10 = vsub.f32 %v8191_v13, %v1743_v38  ;;  %v1745_v4 = vpop.f32.mrb[91].mxu0  ;;  %v1910_v48 = vmin.f32 %v5117_v28, %v1878_v18  ;;  %3791 = vmatprep.subr.bf16.mxu1 %v8193_v9 }
 0x52b   : > { %v1849_v14 = vadd.f32 %v1817_v21, %v6211_v19  ;;  %v1787_v8 = vsub.f32 %v8194_v40, %v1745_v4  ;;  %2076 = vmatprep.mubr.f32.mxu1 %v6462_v24  ;;  %v1911_v42 = vmin.f32 %v5117_v28, %v1879_v36 }
 0x52c   : > { %v1880_v3 = vmax.f32 %v5106_v44, %v1848_v15  ;;  %v1818_v16 = vmul.f32 %v1786_v10, %v5097_v61  ;;  %2077 = vmatmul.mubr.f32.gmra.mrb[84].mxu1 %v6467_v29  ;;  %v6485_v38 = vsub.f32 %v1846_v6, %v1910_v48  ;;  %v8195_v10 = vld [vmem:[#allocation41_spill] sm:$0xff] }
 0x52d   : > { %v1881_v43 = vmax.f32 %v5106_v44, %v1849_v14  ;;  %v1819_v7 = vmul.f32 %v1787_v8, %v5097_v61  ;;  %v1749_v18 = vpop.f32.mrb[92].mxu0  ;;  %v6480_v49 = vsub.f32 %v1847_v23, %v1911_v42  ;;  %3793 = vmatpush1.bf16.msra.mxu1 %v8132_v12  ;;  %v8196_v40 = vmov %v8195_v10 }
 0x52e   : > { %v1850_v19 = vadd.f32 %v1818_v16, %v6233_v27  ;;  %v1788_v21 = vsub.f32 %v8133_v52, %v1749_v18  ;;  %v1751_v36 = vpop.f32.mrb[93].mxu0  ;;  %v1912_v22 = vmin.f32 %v5117_v28, %v1880_v3  ;;  %3795 = vmatprep.subr.bf16.mxu1 %v8134_v41 }
 0x52f   : > { %v1851_v13 = vadd.f32 %v1819_v7, %v6229_v51  ;;  %v1789_v4 = vsub.f32 %v8195_v10, %v1751_v36  ;;  %2082 = vmatprep.mubr.f32.mxu1 %v6480_v49  ;;  %v1913_v23 = vmin.f32 %v5117_v28, %v1881_v43  ;;  %v8197_v43 = vld [vmem:[#allocation140_spill] sm:$0xff]  ;;  %v8198_v7 = vld [vmem:[#allocation115_spill] sm:$0xff] }
 0x530   : > { %v1882_v12 = vmax.f32 %v5106_v44, %v1850_v19  ;;  %v1820_v27 = vmul.f32 %v1788_v21, %v5097_v61  ;;  %2083 = vmatmul.mubr.f32.gmra.mrb[86].mxu1 %v6485_v38  ;;  %v6503_v3 = vsub.f32 %v1848_v15, %v1912_v22  ;;  %v8199_v21 = vld [vmem:[#allocation43_spill] sm:$0xff] }
 0x531   : > { %v1883_v6 = vmax.f32 %v5106_v44, %v1851_v13  ;;  %v1821_v48 = vmul.f32 %v1789_v4, %v5097_v61  ;;  %v1755_v9 = vpop.f32.mrb[94].mxu0  ;;  %v6498_v41 = vsub.f32 %v1849_v14, %v1913_v23  ;;  %3797 = vmatpush1.bf16.msra.mxu1 %v7946_v2  ;;  %v8200_v36 = vmov %v8199_v21  ;;  %v8201_v23 = vld [vmem:[#allocation141_spill] sm:$0xff] }
 0x532   : > { %v1852_v51 = vadd.f32 %v1820_v27, %v6246_v50  ;;  %v1790_v8 = vsub.f32 %v8074_v53, %v1755_v9  ;;  %v1757_v42 = vpop.f32.mrb[95].mxu0  ;;  %v1914_v16 = vmin.f32 %v5117_v28, %v1882_v12  ;;  %3799 = vmatprep.subr.bf16.mxu1 %v8197_v43  ;;  %v8202_v12 = vld [vmem:[#allocation113_spill] sm:$0xff]  ;;  %v8203_v9 = vld [vmem:[#allocation142_spill] sm:$0xff] }
 0x533   : > { %v1853_v18 = vadd.f32 %v1821_v48, %v8198_v7  ;;  %v1791_v10 = vsub.f32 %v8199_v21, %v1757_v42  ;;  %2088 = vmatprep.mubr.f32.mxu1 %v6498_v41  ;;  %v1915_v14 = vmin.f32 %v5117_v28, %v1883_v6  ;;  %v8204_v42 = vld [vmem:[#allocation114_spill] sm:$0xff] }
 0x534   : > { %v1884_v2 = vmax.f32 %v5106_v44, %v1852_v51  ;;  %v1822_v50 = vmul.f32 %v1790_v8, %v5097_v61  ;;  %2089 = vmatmul.mubr.f32.gmra.mrb[88].mxu1 %v6503_v3  ;;  %v6520_v48 = vsub.f32 %v1850_v19, %v1914_v16  ;;  %v8205_v19 = vld [vmem:[#allocation143_spill] sm:$0xff] }
 0x535   : > { %v1885_v15 = vmax.f32 %v5106_v44, %v1853_v18  ;;  %v1823_v22 = vmul.f32 %v1791_v10, %v5097_v61  ;;  %v6516_v4 = vsub.f32 %v1851_v13, %v1915_v14  ;;  %3801 = vmatpush1.bf16.msra.mxu1 %v8201_v23  ;;  %v8206_v14 = vld [vmem:[#allocation144_spill] sm:$0xff] }
 0x536   : > { %v1854_v27 = vadd.f32 %v1822_v50, %v8202_v12  ;;  %v1916_v6 = vmin.f32 %v5117_v28, %v1884_v2  ;;  %3803 = vmatprep.subr.bf16.mxu1 %v8203_v9  ;;  %v8211_v9 = vld [vmem:[#allocation13_spill] sm:$0xff] }
 0x537   : > { %v1855_v8 = vadd.f32 %v1823_v22, %v8204_v42  ;;  %2094 = vmatprep.mubr.f32.mxu1 %v6516_v4  ;;  %v1917_v43 = vmin.f32 %v5117_v28, %v1885_v15  ;;  %v8208_v15 = vld [vmem:[#allocation145_spill] sm:$0xff]  ;;  %v8209_v22 = vld [vmem:[#allocation146_spill] sm:$0xff]  ;;  %v8212_v42 = vmov %v8211_v9 }
 0x538   : > { %v1886_v7 = vmax.f32 %v5106_v44, %v1854_v27  ;;  %2095 = vmatmul.mubr.f32.gmra.mrb[90].mxu1 %v6520_v48  ;;  %v6533_v16 = vsub.f32 %v1852_v51, %v1916_v6  ;;  %v8210_v51 = vld [vmem:[#allocation147_spill] sm:$0xff] }
 0x539   : > { %v1887_v13 = vmax.f32 %v5106_v44, %v1855_v8  ;;  %v6530_v21 = vsub.f32 %v1853_v18, %v1917_v43  ;;  %3805 = vmatpush1.bf16.msra.mxu1 %v8205_v19 }
 0x53a   : > { %v1918_v10 = vmin.f32 %v5117_v28, %v1886_v7  ;;  %3807 = vmatprep.subr.bf16.mxu1 %v8206_v14 }
 0x53b   : > { %2100 = vmatprep.mubr.f32.mxu1 %v6530_v21  ;;  %v1919_v2 = vmin.f32 %v5117_v28, %v1887_v13 }
 0x53c   : > { %2101 = vmatmul.mubr.f32.gmra.mrb[92].mxu1 %v6533_v16  ;;  %v6543_v18 = vsub.f32 %v1854_v27, %v1918_v10 }
 0x53d   : > { %v6540_v50 = vsub.f32 %v1855_v8, %v1919_v2  ;;  %3809 = vmatpush1.bf16.msra.mxu1 %v8208_v15  ;;  %v8213_v2 = vld [vmem:[#allocation15_spill] sm:$0xff] }
 0x53e   : > { %3811 = vmatprep.subr.bf16.mxu1 %v8209_v22 }
 0x53f   : > { %8207 = vst [vmem:[#allocation118_spill] sm:$0xff] %v6540_v50  ;;  %2106 = vmatprep.mubr.f32.mxu1 %v6540_v50 }
 0x540   : > { %2107 = vmatmul.mubr.f32.gmra.mrb[94].mxu1 %v6543_v18 }
 0x541   : > { %3813 = vmatpush1.bf16.msra.mxu1 %v8210_v51 }
 0x5d7   : > { %v2018_v23 = vpop.f32.mrb[64].mxu1 }
 0x5d8   : > { %v2113_v12 = vsub.f32 %v8028_v46, %v2018_v23  ;;  %v2020_v6 = vpop.f32.mrb[65].mxu1 }
 0x5d9   : > { %v2114_v43 = vsub.f32 %v8211_v9, %v2020_v6 }
 0x5da   : > { %v2145_v8 = vmul.f32 %v2113_v12, %v5097_v61 }
 0x5db   : > { %v2146_v7 = vmul.f32 %v2114_v43, %v5097_v61  ;;  %v2024_v27 = vpop.f32.mrb[66].mxu1 }
 0x5dc   : > { %v2177_v13 = vadd.f32 %v2145_v8, %v6286_v34  ;;  %v2115_v19 = vsub.f32 %v8152_v45, %v2024_v27  ;;  %v2026_v10 = vpop.f32.mrb[67].mxu1 }
 0x5dd   : > { %v2178_v14 = vadd.f32 %v2146_v7, %v6284_v55  ;;  %v2116_v15 = vsub.f32 %v8213_v2, %v2026_v10 }
 0x5de   : > { %v2209_v22 = vmax.f32 %v5106_v44, %v2177_v13  ;;  %v2147_v51 = vmul.f32 %v2115_v19, %v5097_v61 }
 0x5df   : > { %v2210_v23 = vmax.f32 %v5106_v44, %v2178_v14  ;;  %v2148_v12 = vmul.f32 %v2116_v15, %v5097_v61  ;;  %v2030_v6 = vpop.f32.mrb[68].mxu1 }
 0x5e0   : > { %v2241_v9 = vmin.f32 %v5117_v28, %v2209_v22  ;;  %v2179_v34 = vadd.f32 %v2147_v51, %v6305_v20  ;;  %v2117_v43 = vsub.f32 %v7905_v57, %v2030_v6  ;;  %v2032_v8 = vpop.f32.mrb[69].mxu1 }
 0x5e1   : > { %v2180_v55 = vadd.f32 %v2148_v12, %v6300_v31  ;;  %v2118_v7 = vsub.f32 %v8095_v63, %v2032_v8  ;;  %v2242_v27 = vmin.f32 %v5117_v28, %v2210_v23  ;;  %v8214_v8 = vld [vmem:[#allocation19_spill] sm:$0xff]  ;;  %v8225_v63 = vld [vmem:[#allocation29_spill] sm:$0xff] }
 0x5e2   : > { %v2211_v19 = vmax.f32 %v5106_v44, %v2179_v34  ;;  %v2149_v10 = vmul.f32 %v2117_v43, %v5097_v61  ;;  %v6573_v20 = vsub.f32 %v2177_v13, %v2241_v9 }
 0x5e3   : > { %v2212_v2 = vmax.f32 %v5106_v44, %v2180_v55  ;;  %v2150_v15 = vmul.f32 %v2118_v7, %v5097_v61  ;;  %v2036_v22 = vpop.f32.mrb[70].mxu1  ;;  %v6571_v50 = vsub.f32 %v2178_v14, %v2242_v27 }
 0x5e4   : > { %v2181_v51 = vadd.f32 %v2149_v10, %v6323_v39  ;;  %v2119_v31 = vsub.f32 %v7907_v62, %v2036_v22  ;;  %v2038_v12 = vpop.f32.mrb[71].mxu1  ;;  %v2243_v23 = vmin.f32 %v5117_v28, %v2211_v19  ;;  %v8215_v10 = vld [vmem:[#allocation20_spill] sm:$0xff] }
 0x5e5   : > { %v2182_v6 = vadd.f32 %v2150_v15, %v6318_v1  ;;  %v2120_v43 = vsub.f32 %v8214_v8, %v2038_v12  ;;  %2369 = vmatprep.mubr.f32.mxu0 %v6571_v50  ;;  %v2244_v7 = vmin.f32 %v5117_v28, %v2212_v2  ;;  %v8216_v8 = vld [vmem:[#allocation21_spill] sm:$0xff] }
 0x5e6   : > { %v2213_v14 = vmax.f32 %v5106_v44, %v2181_v51  ;;  %v2151_v13 = vmul.f32 %v2119_v31, %v5097_v61  ;;  %2370 = vmatmul.mubr.f32.vlgmr.msra.gmra.mrb[96].mxu0 %v6573_v20  ;;  %v6591_v12 = vsub.f32 %v2179_v34, %v2243_v23 }
 0x5e7   : > { %v2214_v39 = vmax.f32 %v5106_v44, %v2182_v6  ;;  %v2152_v9 = vmul.f32 %v2120_v43, %v5097_v61  ;;  %v2042_v27 = vpop.f32.mrb[72].mxu1  ;;  %v6587_v19 = vsub.f32 %v2180_v55, %v2244_v7 }
 0x5e8   : > { %v2183_v1 = vadd.f32 %v2151_v13, %v6341_v59  ;;  %v2121_v15 = vsub.f32 %v8215_v10, %v2042_v27  ;;  %v2044_v22 = vpop.f32.mrb[73].mxu1  ;;  %v2245_v2 = vmin.f32 %v5117_v28, %v2213_v14  ;;  %v8217_v13 = vld [vmem:[#allocation22_spill] sm:$0xff] }
 0x5e9   : > { %v2184_v31 = vadd.f32 %v2152_v9, %v6336_v30  ;;  %v2122_v57 = vsub.f32 %v8216_v8, %v2044_v22  ;;  %2375 = vmatprep.mubr.f32.mxu0 %v6587_v19  ;;  %v2246_v43 = vmin.f32 %v5117_v28, %v2214_v39  ;;  %v8218_v22 = vld [vmem:[#allocation23_spill] sm:$0xff] }
 0x5ea   : > { %v2215_v55 = vmax.f32 %v5106_v44, %v2183_v1  ;;  %v2153_v7 = vmul.f32 %v2121_v15, %v5097_v61  ;;  %2376 = vmatmul.mubr.f32.gmra.mrb[98].mxu0 %v6591_v12  ;;  %v6607_v10 = vsub.f32 %v2181_v51, %v2245_v2 }
 0x5eb   : > { %v2216_v59 = vmax.f32 %v5106_v44, %v2184_v31  ;;  %v2154_v34 = vmul.f32 %v2122_v57, %v5097_v61  ;;  %v2048_v23 = vpop.f32.mrb[74].mxu1  ;;  %v6603_v14 = vsub.f32 %v2182_v6, %v2246_v43 }
 0x5ec   : > { %v2185_v30 = vadd.f32 %v2153_v7, %v6359_v25  ;;  %v2123_v9 = vsub.f32 %v8217_v13, %v2048_v23  ;;  %v2050_v27 = vpop.f32.mrb[75].mxu1  ;;  %v2247_v39 = vmin.f32 %v5117_v28, %v2215_v55  ;;  %v8219_v7 = vld [vmem:[#allocation24_spill] sm:$0xff] }
 0x5ed   : > { %v2186_v15 = vadd.f32 %v2154_v34, %v6354_v58  ;;  %v2124_v8 = vsub.f32 %v8218_v22, %v2050_v27  ;;  %2381 = vmatprep.mubr.f32.mxu0 %v6603_v14  ;;  %v2248_v57 = vmin.f32 %v5117_v28, %v2216_v59  ;;  %v8220_v34 = vmov %v8219_v7  ;;  %v8221_v22 = vld [vmem:[#allocation25_spill] sm:$0xff] }
 0x5ee   : > { %v2217_v6 = vmax.f32 %v5106_v44, %v2185_v30  ;;  %v2155_v43 = vmul.f32 %v2123_v9, %v5097_v61  ;;  %2382 = vmatmul.mubr.f32.gmra.mrb[100].mxu0 %v6607_v10  ;;  %v6623_v27 = vsub.f32 %v2183_v1, %v2247_v39 }
 0x5ef   : > { %v2218_v25 = vmax.f32 %v5106_v44, %v2186_v15  ;;  %v2156_v51 = vmul.f32 %v2124_v8, %v5097_v61  ;;  %v2054_v2 = vpop.f32.mrb[76].mxu1  ;;  %v6619_v55 = vsub.f32 %v2184_v31, %v2248_v57 }
 0x5f0   : > { %v2187_v58 = vadd.f32 %v2155_v43, %v6377_v11  ;;  %v2125_v23 = vsub.f32 %v8219_v7, %v2054_v2  ;;  %v2056_v13 = vpop.f32.mrb[77].mxu1  ;;  %v2249_v59 = vmin.f32 %v5117_v28, %v2217_v6 }
 0x5f1   : > { %v2188_v9 = vadd.f32 %v2156_v51, %v6372_v0  ;;  %v2126_v62 = vsub.f32 %v8221_v22, %v2056_v13  ;;  %2387 = vmatprep.mubr.f32.mxu0 %v6619_v55  ;;  %v2250_v8 = vmin.f32 %v5117_v28, %v2218_v25 }
 0x5f2   : > { %v2219_v31 = vmax.f32 %v5106_v44, %v2187_v58  ;;  %v2157_v57 = vmul.f32 %v2125_v23, %v5097_v61  ;;  %2388 = vmatmul.mubr.f32.gmra.mrb[102].mxu0 %v6623_v27  ;;  %v6639_v2 = vsub.f32 %v2185_v30, %v2249_v59  ;;  %v8222_v23 = vld [vmem:[#allocation27_spill] sm:$0xff] }
 0x5f3   : > { %v2220_v11 = vmax.f32 %v5106_v44, %v2188_v9  ;;  %v2158_v1 = vmul.f32 %v2126_v62, %v5097_v61  ;;  %v2060_v39 = vpop.f32.mrb[78].mxu1  ;;  %v6635_v6 = vsub.f32 %v2186_v15, %v2250_v8 }
 0x5f4   : > { %v2189_v0 = vadd.f32 %v2157_v57, %v6395_v5  ;;  %v2127_v43 = vsub.f32 %v8166_v56, %v2060_v39  ;;  %v2062_v51 = vpop.f32.mrb[79].mxu1  ;;  %v2251_v25 = vmin.f32 %v5117_v28, %v2219_v31  ;;  %v8223_v31 = vld [vmem:[#allocation28_spill] sm:$0xff] }
 0x5f5   : > { %v2190_v7 = vadd.f32 %v2158_v1, %v6390_v32  ;;  %v2128_v13 = vsub.f32 %v8222_v23, %v2062_v51  ;;  %2393 = vmatprep.mubr.f32.mxu0 %v6635_v6  ;;  %v2252_v62 = vmin.f32 %v5117_v28, %v2220_v11  ;;  %v8224_v23 = vld [vmem:[#allocation117_spill] sm:$0xff] }
 0x5f6   : > { %v2221_v15 = vmax.f32 %v5106_v44, %v2189_v0  ;;  %v2159_v22 = vmul.f32 %v2127_v43, %v5097_v61  ;;  %2394 = vmatmul.mubr.f32.gmra.mrb[104].mxu0 %v6639_v2  ;;  %v6655_v51 = vsub.f32 %v2187_v58, %v2251_v25 }
 0x5f7   : > { %v2222_v5 = vmax.f32 %v5106_v44, %v2190_v7  ;;  %v2160_v30 = vmul.f32 %v2128_v13, %v5097_v61  ;;  %v2066_v59 = vpop.f32.mrb[80].mxu1  ;;  %v6651_v8 = vsub.f32 %v2188_v9, %v2252_v62 }
 0x5f8   : > { %v2191_v32 = vadd.f32 %v2159_v22, %v6413_v26  ;;  %v2129_v1 = vsub.f32 %v8223_v31, %v2066_v59  ;;  %v2068_v39 = vpop.f32.mrb[81].mxu1  ;;  %v2253_v11 = vmin.f32 %v5117_v28, %v2221_v15 }
 0x5f9   : > { %v2192_v43 = vadd.f32 %v2160_v30, %v8224_v23  ;;  %v2130_v56 = vsub.f32 %v8225_v63, %v2068_v39  ;;  %2399 = vmatprep.mubr.f32.mxu0 %v6651_v8  ;;  %v2254_v13 = vmin.f32 %v5117_v28, %v2222_v5  ;;  %v8226_v30 = vld [vmem:[#allocation30_spill] sm:$0xff]  ;;  %v8228_v63 = vld [vmem:[#allocation31_spill] sm:$0xff] }
 0x5fa   : > { %v2223_v9 = vmax.f32 %v5106_v44, %v2191_v32  ;;  %v2161_v62 = vmul.f32 %v2129_v1, %v5097_v61  ;;  %2400 = vmatmul.mubr.f32.gmra.mrb[106].mxu0 %v6655_v51  ;;  %v8227_v59 = vmov %v8226_v30  ;;  %v6671_v23 = vsub.f32 %v2189_v0, %v2253_v11 }
 0x5fb   : > { %v2224_v26 = vmax.f32 %v5106_v44, %v2192_v43  ;;  %v2162_v58 = vmul.f32 %v2130_v56, %v5097_v61  ;;  %v2072_v25 = vpop.f32.mrb[82].mxu1  ;;  %v6667_v15 = vsub.f32 %v2190_v7, %v2254_v13 }
 0x5fc   : > { %v2193_v22 = vadd.f32 %v2161_v62, %v6431_v60  ;;  %v2131_v31 = vsub.f32 %v8226_v30, %v2072_v25  ;;  %v2074_v39 = vpop.f32.mrb[83].mxu1  ;;  %v2255_v5 = vmin.f32 %v5117_v28, %v2223_v9  ;;  %v8229_v62 = vld [vmem:[#allocation32_spill] sm:$0xff] }
 0x5fd   : > { %v2194_v1 = vadd.f32 %v2162_v58, %v6426_v47  ;;  %v2132_v57 = vsub.f32 %v8228_v63, %v2074_v39  ;;  %2405 = vmatprep.mubr.f32.mxu0 %v6667_v15  ;;  %v2256_v56 = vmin.f32 %v5117_v28, %v2224_v26  ;;  %v8230_v39 = vld [vmem:[#allocation33_spill] sm:$0xff] }
 0x5fe   : > { %v2225_v7 = vmax.f32 %v5106_v44, %v2193_v22  ;;  %v2163_v13 = vmul.f32 %v2131_v31, %v5097_v61  ;;  %2406 = vmatmul.mubr.f32.gmra.mrb[108].mxu0 %v6671_v23  ;;  %v6687_v30 = vsub.f32 %v2191_v32, %v2255_v5 }
 0x5ff   : > { %v2226_v60 = vmax.f32 %v5106_v44, %v2194_v1  ;;  %v2164_v0 = vmul.f32 %v2132_v57, %v5097_v61  ;;  %v2078_v11 = vpop.f32.mrb[84].mxu1  ;;  %v6683_v9 = vsub.f32 %v2192_v43, %v2256_v56 }
 0x600   : > { %v2195_v47 = vadd.f32 %v2163_v13, %v6449_v17  ;;  %v2133_v58 = vsub.f32 %v8229_v62, %v2078_v11  ;;  %v2080_v25 = vpop.f32.mrb[85].mxu1  ;;  %v2257_v26 = vmin.f32 %v5117_v28, %v2225_v7 }
 0x601   : > { %v2196_v31 = vadd.f32 %v2164_v0, %v6444_v37  ;;  %v2134_v63 = vsub.f32 %v8230_v39, %v2080_v25  ;;  %2411 = vmatprep.mubr.f32.mxu0 %v6683_v9  ;;  %v2258_v57 = vmin.f32 %v5117_v28, %v2226_v60 }
 0x602   : > { %v2227_v43 = vmax.f32 %v5106_v44, %v2195_v47  ;;  %v2165_v56 = vmul.f32 %v2133_v58, %v5097_v61  ;;  %2412 = vmatmul.mubr.f32.gmra.mrb[110].mxu0 %v6687_v30  ;;  %v6703_v11 = vsub.f32 %v2193_v22, %v2257_v26 }
 0x603   : > { %v2228_v17 = vmax.f32 %v5106_v44, %v2196_v31  ;;  %v2166_v32 = vmul.f32 %v2134_v63, %v5097_v61  ;;  %v2084_v5 = vpop.f32.mrb[86].mxu1  ;;  %v6699_v7 = vsub.f32 %v2194_v1, %v2258_v57 }
 0x604   : > { %v2197_v37 = vadd.f32 %v2165_v56, %v6467_v29  ;;  %v2135_v13 = vsub.f32 %v8182_v35, %v2084_v5  ;;  %v2086_v0 = vpop.f32.mrb[87].mxu1  ;;  %v2259_v60 = vmin.f32 %v5117_v28, %v2227_v43  ;;  %v8231_v56 = vld [vmem:[#allocation36_spill] sm:$0xff] }
 0x605   : > { %v2198_v58 = vadd.f32 %v2166_v32, %v6462_v24  ;;  %v2136_v25 = vsub.f32 %v8186_v54, %v2086_v0  ;;  %2417 = vmatprep.mubr.f32.mxu0 %v6699_v7  ;;  %v2260_v63 = vmin.f32 %v5117_v28, %v2228_v17  ;;  %v8232_v54 = vld [vmem:[#allocation37_spill] sm:$0xff] }
 0x606   : > { %v2229_v1 = vmax.f32 %v5106_v44, %v2197_v37  ;;  %v2167_v57 = vmul.f32 %v2135_v13, %v5097_v61  ;;  %2418 = vmatmul.mubr.f32.gmra.mrb[112].mxu0 %v6703_v11  ;;  %v6719_v0 = vsub.f32 %v2195_v47, %v2259_v60 }
 0x607   : > { %v2230_v29 = vmax.f32 %v5106_v44, %v2198_v58  ;;  %v2168_v22 = vmul.f32 %v2136_v25, %v5097_v61  ;;  %v2090_v26 = vpop.f32.mrb[88].mxu1  ;;  %v6715_v43 = vsub.f32 %v2196_v31, %v2260_v63 }
 0x608   : > { %v2199_v24 = vadd.f32 %v2167_v57, %v6485_v38  ;;  %v2137_v32 = vsub.f32 %v8231_v56, %v2090_v26  ;;  %v2092_v5 = vpop.f32.mrb[89].mxu1  ;;  %v2261_v17 = vmin.f32 %v5117_v28, %v2229_v1 }
 0x609   : > { %v2200_v13 = vadd.f32 %v2168_v22, %v6480_v49  ;;  %v2138_v35 = vsub.f32 %v8232_v54, %v2092_v5  ;;  %2423 = vmatprep.mubr.f32.mxu0 %v6715_v43  ;;  %v2262_v25 = vmin.f32 %v5117_v28, %v2230_v29  ;;  %v8233_v5 = vld [vmem:[#allocation39_spill] sm:$0xff] }
 0x60a   : > { %v2231_v31 = vmax.f32 %v5106_v44, %v2199_v24  ;;  %v2169_v63 = vmul.f32 %v2137_v32, %v5097_v61  ;;  %2424 = vmatmul.mubr.f32.gmra.mrb[114].mxu0 %v6719_v0  ;;  %v6735_v26 = vsub.f32 %v2197_v37, %v2261_v17  ;;  %v8234_v54 = vmov %v8233_v5 }
 0x60b   : > { %v2232_v38 = vmax.f32 %v5106_v44, %v2200_v13  ;;  %v2170_v47 = vmul.f32 %v2138_v35, %v5097_v61  ;;  %v2096_v60 = vpop.f32.mrb[90].mxu1  ;;  %v6731_v1 = vsub.f32 %v2198_v58, %v2262_v25 }
 0x60c   : > { %v2201_v49 = vadd.f32 %v2169_v63, %v6503_v3  ;;  %v2139_v57 = vsub.f32 %v8192_v33, %v2096_v60  ;;  %v2098_v22 = vpop.f32.mrb[91].mxu1  ;;  %v2263_v29 = vmin.f32 %v5117_v28, %v2231_v31 }
 0x60d   : > { %v2202_v32 = vadd.f32 %v2170_v47, %v6498_v41  ;;  %v2140_v56 = vsub.f32 %v8233_v5, %v2098_v22  ;;  %2429 = vmatprep.mubr.f32.mxu0 %v6731_v1  ;;  %v2264_v35 = vmin.f32 %v5117_v28, %v2232_v38 }
 0x60e   : > { %v2233_v58 = vmax.f32 %v5106_v44, %v2201_v49  ;;  %v2171_v25 = vmul.f32 %v2139_v57, %v5097_v61  ;;  %2430 = vmatmul.mubr.f32.gmra.mrb[116].mxu0 %v6735_v26  ;;  %v6751_v60 = vsub.f32 %v2199_v24, %v2263_v29 }
 0x60f   : > { %v2234_v3 = vmax.f32 %v5106_v44, %v2202_v32  ;;  %v2172_v37 = vmul.f32 %v2140_v56, %v5097_v61  ;;  %v2102_v17 = vpop.f32.mrb[92].mxu1  ;;  %v6747_v31 = vsub.f32 %v2200_v13, %v2264_v35 }
 0x610   : > { %v2203_v41 = vadd.f32 %v2171_v25, %v6520_v48  ;;  %v2141_v63 = vsub.f32 %v8133_v52, %v2102_v17  ;;  %v2104_v47 = vpop.f32.mrb[93].mxu1  ;;  %v2265_v38 = vmin.f32 %v5117_v28, %v2233_v58 }
 0x611   : > { %v2204_v57 = vadd.f32 %v2172_v37, %v6516_v4  ;;  %v2142_v22 = vsub.f32 %v8196_v40, %v2104_v47  ;;  %2435 = vmatprep.mubr.f32.mxu0 %v6747_v31  ;;  %v2266_v56 = vmin.f32 %v5117_v28, %v2234_v3 }
 0x612   : > { %v2235_v13 = vmax.f32 %v5106_v44, %v2203_v41  ;;  %v2173_v5 = vmul.f32 %v2141_v63, %v5097_v61  ;;  %2436 = vmatmul.mubr.f32.gmra.mrb[118].mxu0 %v6751_v60  ;;  %v6767_v37 = vsub.f32 %v2201_v49, %v2265_v38 }
 0x613   : > { %v2236_v48 = vmax.f32 %v5106_v44, %v2204_v57  ;;  %v2174_v24 = vmul.f32 %v2142_v22, %v5097_v61  ;;  %v2108_v29 = vpop.f32.mrb[94].mxu1  ;;  %v6763_v35 = vsub.f32 %v2202_v32, %v2266_v56 }
 0x614   : > { %v2205_v4 = vadd.f32 %v2173_v5, %v6533_v16  ;;  %v2143_v58 = vsub.f32 %v8074_v53, %v2108_v29  ;;  %v2110_v25 = vpop.f32.mrb[95].mxu1  ;;  %v2267_v3 = vmin.f32 %v5117_v28, %v2235_v13  ;;  %v8235_v5 = vld [vmem:[#allocation118_spill] sm:$0xff] }
 0x615   : > { %v2206_v17 = vadd.f32 %v2174_v24, %v6530_v21  ;;  %v2144_v63 = vsub.f32 %v8200_v36, %v2110_v25  ;;  %2441 = vmatprep.mubr.f32.mxu0 %v6763_v35  ;;  %v2268_v47 = vmin.f32 %v5117_v28, %v2236_v48 }
 0x616   : > { %v2237_v32 = vmax.f32 %v5106_v44, %v2205_v4  ;;  %v2175_v22 = vmul.f32 %v2143_v58, %v5097_v61  ;;  %2442 = vmatmul.mubr.f32.gmra.mrb[120].mxu0 %v6767_v37  ;;  %v6782_v56 = vsub.f32 %v2203_v41, %v2267_v3 }
 0x617   : > { %v2238_v16 = vmax.f32 %v5106_v44, %v2206_v17  ;;  %v2176_v49 = vmul.f32 %v2144_v63, %v5097_v61  ;;  %v6779_v38 = vsub.f32 %v2204_v57, %v2268_v47 }
 0x618   : > { %v2207_v21 = vadd.f32 %v2175_v22, %v6543_v18  ;;  %v2269_v13 = vmin.f32 %v5117_v28, %v2237_v32 }
 0x619   : > { %v2208_v48 = vadd.f32 %v2176_v49, %v8235_v5  ;;  %2447 = vmatprep.mubr.f32.mxu0 %v6779_v38  ;;  %v2270_v24 = vmin.f32 %v5117_v28, %v2238_v16 }
 0x61a   : > { %v2239_v29 = vmax.f32 %v5106_v44, %v2207_v21  ;;  %2448 = vmatmul.mubr.f32.gmra.mrb[122].mxu0 %v6782_v56  ;;  %v6793_v25 = vsub.f32 %v2205_v4, %v2269_v13 }
 0x61b   : > { %v2240_v58 = vmax.f32 %v5106_v44, %v2208_v48  ;;  %v6791_v57 = vsub.f32 %v2206_v17, %v2270_v24  ;;  %v8238_v24 = vld [vmem:[#allocation15_spill] sm:$0xff] }
 0x61c   : > { %v2271_v18 = vmin.f32 %v5117_v28, %v2239_v29 }
 0x61d   : > { %2453 = vmatprep.mubr.f32.mxu0 %v6791_v57  ;;  %v2272_v41 = vmin.f32 %v5117_v28, %v2240_v58 }
 0x61e   : > { %2454 = vmatmul.mubr.f32.gmra.mrb[124].mxu0 %v6793_v25  ;;  %v6801_v63 = vsub.f32 %v2207_v21, %v2271_v18 }
 0x61f   : > { %v6799_v3 = vsub.f32 %v2208_v48, %v2272_v41 }
 0x620   : > { %8237 = vst [vmem:[#allocation111_spill] sm:$0xff] %v6801_v63 }
 0x621   : > { %8236 = vst [vmem:[#allocation112_spill] sm:$0xff] %v6799_v3  ;;  %2459 = vmatprep.mubr.f32.mxu0 %v6799_v3 }
 0x622   : > { %2460 = vmatmul.mubr.f32.gmra.mrb[126].mxu0 %v6801_v63 }
 0x6b9   : > { %v2371_v17 = vpop.f32.mrb[96].mxu0 }
 0x6ba   : > { %v2466_v4 = vsub.f32 %v8028_v46, %v2371_v17  ;;  %v2373_v47 = vpop.f32.mrb[97].mxu0 }
 0x6bb   : > { %v2467_v32 = vsub.f32 %v8212_v42, %v2373_v47 }
 0x6bc   : > { %v2498_v22 = vmul.f32 %v2466_v4, %v5097_v61 }
 0x6bd   : > { %v2499_v16 = vmul.f32 %v2467_v32, %v5097_v61  ;;  %v2377_v49 = vpop.f32.mrb[98].mxu0 }
 0x6be   : > { %v2530_v13 = vadd.f32 %v2498_v22, %v6573_v20  ;;  %v2468_v21 = vsub.f32 %v8152_v45, %v2377_v49  ;;  %v2379_v5 = vpop.f32.mrb[99].mxu0  ;;  %v8239_v22 = vld [vmem:[#allocation16_spill] sm:$0xff] }
 0x6bf   : > { %v2531_v48 = vadd.f32 %v2499_v16, %v6571_v50  ;;  %v2469_v29 = vsub.f32 %v8238_v24, %v2379_v5  ;;  %v8240_v42 = vmov %v8239_v22  ;;  %v8241_v16 = vld [vmem:[#allocation17_spill] sm:$0xff] }
 0x6c0   : > { %v2562_v18 = vmax.f32 %v5106_v44, %v2530_v13  ;;  %v2500_v41 = vmul.f32 %v2468_v21, %v5097_v61 }
 0x6c1   : > { %v2563_v17 = vmax.f32 %v5106_v44, %v2531_v48  ;;  %v2501_v4 = vmul.f32 %v2469_v29, %v5097_v61  ;;  %v2383_v47 = vpop.f32.mrb[100].mxu0 }
 0x6c2   : > { %v2594_v32 = vmin.f32 %v5117_v28, %v2562_v18  ;;  %v2532_v20 = vadd.f32 %v2500_v41, %v6591_v12  ;;  %v2470_v49 = vsub.f32 %v8239_v22, %v2383_v47  ;;  %v2385_v45 = vpop.f32.mrb[101].mxu0 }
 0x6c3   : > { %v2533_v50 = vadd.f32 %v2501_v4, %v6587_v19  ;;  %v2471_v5 = vsub.f32 %v8241_v16, %v2385_v45  ;;  %v2595_v24 = vmin.f32 %v5117_v28, %v2563_v17  ;;  %v8242_v19 = vld [vmem:[#allocation18_spill] sm:$0xff]  ;;  %v8243_v16 = vld [vmem:[#allocation19_spill] sm:$0xff] }
 0x6c4   : > { %v2564_v21 = vmax.f32 %v5106_v44, %v2532_v20  ;;  %v2502_v46 = vmul.f32 %v2470_v49, %v5097_v61  ;;  %v6829_v12 = vsub.f32 %v2530_v13, %v2594_v32 }
 0x6c5   : > { %v2565_v29 = vmax.f32 %v5106_v44, %v2533_v50  ;;  %v2503_v3 = vmul.f32 %v2471_v5, %v5097_v61  ;;  %v2389_v18 = vpop.f32.mrb[102].mxu0  ;;  %v6827_v63 = vsub.f32 %v2531_v48, %v2595_v24 }
 0x6c6   : > { %v2534_v41 = vadd.f32 %v2502_v46, %v6607_v10  ;;  %v2472_v4 = vsub.f32 %v8242_v19, %v2389_v18  ;;  %v2391_v45 = vpop.f32.mrb[103].mxu0  ;;  %v2596_v17 = vmin.f32 %v5117_v28, %v2564_v21 }
 0x6c7   : > { %v2535_v22 = vadd.f32 %v2503_v3, %v6603_v14  ;;  %v2473_v49 = vsub.f32 %v8243_v16, %v2391_v45  ;;  %2722 = vmatprep.mubr.f32.mxu1 %v6827_v63  ;;  %v2597_v5 = vmin.f32 %v5117_v28, %v2565_v29  ;;  %v8244_v3 = vld [vmem:[#allocation20_spill] sm:$0xff]  ;;  %v8245_v16 = vld [vmem:[#allocation21_spill] sm:$0xff] }
 0x6c8   : > { %v2566_v48 = vmax.f32 %v5106_v44, %v2534_v41  ;;  %v2504_v13 = vmul.f32 %v2472_v4, %v5097_v61  ;;  %2723 = vmatmul.mubr.f32.vlgmr.msra.gmra.mrb[96].mxu1 %v6829_v12  ;;  %v6847_v19 = vsub.f32 %v2532_v20, %v2596_v17 }
 0x6c9   : > { %v2567_v46 = vmax.f32 %v5106_v44, %v2535_v22  ;;  %v2505_v10 = vmul.f32 %v2473_v49, %v5097_v61  ;;  %v2395_v32 = vpop.f32.mrb[104].mxu0  ;;  %v6843_v24 = vsub.f32 %v2533_v50, %v2597_v5 }
 0x6ca   : > { %v2536_v14 = vadd.f32 %v2504_v13, %v6623_v27  ;;  %v2474_v21 = vsub.f32 %v8244_v3, %v2395_v32  ;;  %v2397_v18 = vpop.f32.mrb[105].mxu0  ;;  %v2598_v29 = vmin.f32 %v5117_v28, %v2566_v48  ;;  %v8246_v13 = vld [vmem:[#allocation22_spill] sm:$0xff] }
 0x6cb   : > { %v2537_v4 = vadd.f32 %v2505_v10, %v6619_v55  ;;  %v2475_v47 = vsub.f32 %v8245_v16, %v2397_v18  ;;  %2728 = vmatprep.mubr.f32.mxu1 %v6843_v24  ;;  %v2599_v49 = vmin.f32 %v5117_v28, %v2567_v46  ;;  %v8247_v32 = vmov %v8246_v13  ;;  %v8248_v16 = vld [vmem:[#allocation23_spill] sm:$0xff] }
 0x6cc   : > { %v2568_v50 = vmax.f32 %v5106_v44, %v2536_v14  ;;  %v2506_v5 = vmul.f32 %v2474_v21, %v5097_v61  ;;  %2729 = vmatmul.mubr.f32.gmra.mrb[98].mxu1 %v6847_v19  ;;  %v6863_v18 = vsub.f32 %v2534_v41, %v2598_v29 }
 0x6cd   : > { %v2569_v27 = vmax.f32 %v5106_v44, %v2537_v4  ;;  %v2507_v20 = vmul.f32 %v2475_v47, %v5097_v61  ;;  %v2401_v17 = vpop.f32.mrb[106].mxu0  ;;  %v6859_v48 = vsub.f32 %v2535_v22, %v2599_v49 }
 0x6ce   : > { %v2538_v55 = vadd.f32 %v2506_v5, %v6639_v2  ;;  %v2476_v10 = vsub.f32 %v8246_v13, %v2401_v17  ;;  %v2403_v3 = vpop.f32.mrb[107].mxu0  ;;  %v2600_v46 = vmin.f32 %v5117_v28, %v2568_v50 }
 0x6cf   : > { %v2539_v21 = vadd.f32 %v2507_v20, %v6635_v6  ;;  %v2477_v45 = vsub.f32 %v8248_v16, %v2403_v3  ;;  %2734 = vmatprep.mubr.f32.mxu1 %v6859_v48  ;;  %v2601_v47 = vmin.f32 %v5117_v28, %v2569_v27 }
 0x6d0   : > { %v2570_v22 = vmax.f32 %v5106_v44, %v2538_v55  ;;  %v2508_v49 = vmul.f32 %v2476_v10, %v5097_v61  ;;  %2735 = vmatmul.mubr.f32.gmra.mrb[100].mxu1 %v6863_v18  ;;  %v6879_v17 = vsub.f32 %v2536_v14, %v2600_v46  ;;  %v8249_v10 = vld [vmem:[#allocation25_spill] sm:$0xff] }
 0x6d1   : > { %v2571_v2 = vmax.f32 %v5106_v44, %v2539_v21  ;;  %v2509_v41 = vmul.f32 %v2477_v45, %v5097_v61  ;;  %v2407_v29 = vpop.f32.mrb[108].mxu0  ;;  %v6875_v50 = vsub.f32 %v2537_v4, %v2601_v47 }
 0x6d2   : > { %v2540_v6 = vadd.f32 %v2508_v49, %v6655_v51  ;;  %v2478_v5 = vsub.f32 %v8220_v34, %v2407_v29  ;;  %v2409_v20 = vpop.f32.mrb[109].mxu0  ;;  %v2602_v27 = vmin.f32 %v5117_v28, %v2570_v22  ;;  %v8250_v22 = vld [vmem:[#allocation26_spill] sm:$0xff] }
 0x6d3   : > { %v2541_v13 = vadd.f32 %v2509_v41, %v6651_v8  ;;  %v2479_v3 = vsub.f32 %v8249_v10, %v2409_v20  ;;  %2740 = vmatprep.mubr.f32.mxu1 %v6875_v50  ;;  %v2603_v45 = vmin.f32 %v5117_v28, %v2571_v2  ;;  %v8251_v10 = vld [vmem:[#allocation27_spill] sm:$0xff] }
 0x6d4   : > { %v2572_v4 = vmax.f32 %v5106_v44, %v2540_v6  ;;  %v2510_v16 = vmul.f32 %v2478_v5, %v5097_v61  ;;  %2741 = vmatmul.mubr.f32.gmra.mrb[102].mxu1 %v6879_v17  ;;  %v6895_v20 = vsub.f32 %v2538_v55, %v2602_v27 }
 0x6d5   : > { %v2573_v51 = vmax.f32 %v5106_v44, %v2541_v13  ;;  %v2511_v14 = vmul.f32 %v2479_v3, %v5097_v61  ;;  %v2413_v46 = vpop.f32.mrb[110].mxu0  ;;  %v6891_v47 = vsub.f32 %v2539_v21, %v2603_v45 }
 0x6d6   : > { %v2542_v8 = vadd.f32 %v2510_v16, %v6671_v23  ;;  %v2480_v41 = vsub.f32 %v8250_v22, %v2413_v46  ;;  %v2415_v29 = vpop.f32.mrb[111].mxu0  ;;  %v2604_v2 = vmin.f32 %v5117_v28, %v2572_v4  ;;  %v8252_v16 = vld [vmem:[#allocation28_spill] sm:$0xff] }
 0x6d7   : > { %v2543_v5 = vadd.f32 %v2511_v14, %v6667_v15  ;;  %v2481_v34 = vsub.f32 %v8251_v10, %v2415_v29  ;;  %2746 = vmatprep.mubr.f32.mxu1 %v6891_v47  ;;  %v2605_v3 = vmin.f32 %v5117_v28, %v2573_v51  ;;  %v8253_v46 = vmov %v8252_v16  ;;  %v8254_v10 = vld [vmem:[#allocation29_spill] sm:$0xff] }
 0x6d8   : > { %v2574_v21 = vmax.f32 %v5106_v44, %v2542_v8  ;;  %v2512_v45 = vmul.f32 %v2480_v41, %v5097_v61  ;;  %2747 = vmatmul.mubr.f32.gmra.mrb[104].mxu1 %v6895_v20  ;;  %v6911_v29 = vsub.f32 %v2540_v6, %v2604_v2 }
 0x6d9   : > { %v2575_v23 = vmax.f32 %v5106_v44, %v2543_v5  ;;  %v2513_v55 = vmul.f32 %v2481_v34, %v5097_v61  ;;  %v2419_v27 = vpop.f32.mrb[112].mxu0  ;;  %v6907_v4 = vsub.f32 %v2541_v13, %v2605_v3 }
 0x6da   : > { %v2544_v15 = vadd.f32 %v2512_v45, %v6687_v30  ;;  %v2482_v14 = vsub.f32 %v8252_v16, %v2419_v27  ;;  %v2421_v22 = vpop.f32.mrb[113].mxu0  ;;  %v2606_v51 = vmin.f32 %v5117_v28, %v2574_v21 }
 0x6db   : > { %v2545_v41 = vadd.f32 %v2513_v55, %v6683_v9  ;;  %v2483_v49 = vsub.f32 %v8254_v10, %v2421_v22  ;;  %2752 = vmatprep.mubr.f32.mxu1 %v6907_v4  ;;  %v2607_v34 = vmin.f32 %v5117_v28, %v2575_v23 }
 0x6dc   : > { %v2576_v13 = vmax.f32 %v5106_v44, %v2544_v15  ;;  %v2514_v3 = vmul.f32 %v2482_v14, %v5097_v61  ;;  %2753 = vmatmul.mubr.f32.gmra.mrb[106].mxu1 %v6911_v29  ;;  %v6927_v27 = vsub.f32 %v2542_v8, %v2606_v51  ;;  %v8255_v14 = vld [vmem:[#allocation31_spill] sm:$0xff] }
 0x6dd   : > { %v2577_v30 = vmax.f32 %v5106_v44, %v2545_v41  ;;  %v2515_v6 = vmul.f32 %v2483_v49, %v5097_v61  ;;  %v2425_v2 = vpop.f32.mrb[114].mxu0  ;;  %v6923_v21 = vsub.f32 %v2543_v5, %v2607_v34  ;;  %v8256_v58 = vmov %v8255_v14 }
 0x6de   : > { %v2546_v9 = vadd.f32 %v2514_v3, %v6703_v11  ;;  %v2484_v45 = vsub.f32 %v8227_v59, %v2425_v2  ;;  %v2427_v55 = vpop.f32.mrb[115].mxu0  ;;  %v2608_v23 = vmin.f32 %v5117_v28, %v2576_v13 }
 0x6df   : > { %v2547_v16 = vadd.f32 %v2515_v6, %v6699_v7  ;;  %v2485_v22 = vsub.f32 %v8255_v14, %v2427_v55  ;;  %2758 = vmatprep.mubr.f32.mxu1 %v6923_v21  ;;  %v2609_v49 = vmin.f32 %v5117_v28, %v2577_v30 }
 0x6e0   : > { %v2578_v5 = vmax.f32 %v5106_v44, %v2546_v9  ;;  %v2516_v10 = vmul.f32 %v2484_v45, %v5097_v61  ;;  %2759 = vmatmul.mubr.f32.gmra.mrb[108].mxu1 %v6927_v27  ;;  %v6943_v6 = vsub.f32 %v2544_v15, %v2608_v23 }
 0x6e1   : > { %v2579_v11 = vmax.f32 %v5106_v44, %v2547_v16  ;;  %v2517_v8 = vmul.f32 %v2485_v22, %v5097_v61  ;;  %v2431_v51 = vpop.f32.mrb[116].mxu0  ;;  %v6939_v34 = vsub.f32 %v2545_v41, %v2609_v49  ;;  %v8257_v49 = vld [vmem:[#allocation34_spill] sm:$0xff] }
 0x6e2   : > { %v2548_v7 = vadd.f32 %v2516_v10, %v6719_v0  ;;  %v2486_v13 = vsub.f32 %v8229_v62, %v2431_v51  ;;  %v2433_v3 = vpop.f32.mrb[117].mxu0  ;;  %v2610_v30 = vmin.f32 %v5117_v28, %v2578_v5 }
 0x6e3   : > { %v2549_v2 = vadd.f32 %v2517_v8, %v6715_v43  ;;  %v2487_v45 = vsub.f32 %v8230_v39, %v2433_v3  ;;  %2764 = vmatprep.mubr.f32.mxu1 %v6939_v34  ;;  %v2611_v55 = vmin.f32 %v5117_v28, %v2579_v11 }
 0x6e4   : > { %v2580_v41 = vmax.f32 %v5106_v44, %v2548_v7  ;;  %v2518_v14 = vmul.f32 %v2486_v13, %v5097_v61  ;;  %2765 = vmatmul.mubr.f32.gmra.mrb[110].mxu1 %v6943_v6  ;;  %v6959_v8 = vsub.f32 %v2546_v9, %v2610_v30  ;;  %v8258_v13 = vld [vmem:[#allocation35_spill] sm:$0xff] }
 0x6e5   : > { %v2581_v0 = vmax.f32 %v5106_v44, %v2549_v2  ;;  %v2519_v15 = vmul.f32 %v2487_v45, %v5097_v61  ;;  %v2437_v23 = vpop.f32.mrb[118].mxu0  ;;  %v6955_v22 = vsub.f32 %v2547_v16, %v2611_v55 }
 0x6e6   : > { %v2550_v43 = vadd.f32 %v2518_v14, %v6735_v26  ;;  %v2488_v5 = vsub.f32 %v8257_v49, %v2437_v23  ;;  %v2439_v10 = vpop.f32.mrb[119].mxu0  ;;  %v2612_v11 = vmin.f32 %v5117_v28, %v2580_v41  ;;  %v8259_v14 = vld [vmem:[#allocation36_spill] sm:$0xff] }
 0x6e7   : > { %v2551_v51 = vadd.f32 %v2519_v15, %v6731_v1  ;;  %v2489_v3 = vsub.f32 %v8258_v13, %v2439_v10  ;;  %2770 = vmatprep.mubr.f32.mxu1 %v6955_v22  ;;  %v2613_v45 = vmin.f32 %v5117_v28, %v2581_v0  ;;  %v8260_v39 = vmov %v8259_v14  ;;  %v8261_v13 = vld [vmem:[#allocation37_spill] sm:$0xff] }
 0x6e8   : > { %v2582_v16 = vmax.f32 %v5106_v44, %v2550_v43  ;;  %v2520_v55 = vmul.f32 %v2488_v5, %v5097_v61  ;;  %2771 = vmatmul.mubr.f32.gmra.mrb[112].mxu1 %v6959_v8  ;;  %v6975_v10 = vsub.f32 %v2548_v7, %v2612_v11  ;;  %v8262_v49 = vmov %v8261_v13 }
 0x6e9   : > { %v2583_v26 = vmax.f32 %v5106_v44, %v2551_v51  ;;  %v2521_v9 = vmul.f32 %v2489_v3, %v5097_v61  ;;  %v2443_v30 = vpop.f32.mrb[120].mxu0  ;;  %v6971_v41 = vsub.f32 %v2549_v2, %v2613_v45 }
 0x6ea   : > { %v2552_v1 = vadd.f32 %v2520_v55, %v6751_v60  ;;  %v2490_v15 = vsub.f32 %v8259_v14, %v2443_v30  ;;  %v2445_v23 = vpop.f32.mrb[121].mxu0  ;;  %v2614_v0 = vmin.f32 %v5117_v28, %v2582_v16 }
 0x6eb   : > { %v2553_v5 = vadd.f32 %v2521_v9, %v6747_v31  ;;  %v2491_v62 = vsub.f32 %v8261_v13, %v2445_v23  ;;  %2776 = vmatprep.mubr.f32.mxu1 %v6971_v41  ;;  %v2615_v3 = vmin.f32 %v5117_v28, %v2583_v26 }
 0x6ec   : > { %v2584_v2 = vmax.f32 %v5106_v44, %v2552_v1  ;;  %v2522_v45 = vmul.f32 %v2490_v15, %v5097_v61  ;;  %2777 = vmatmul.mubr.f32.gmra.mrb[114].mxu1 %v6975_v10  ;;  %v6991_v30 = vsub.f32 %v2550_v43, %v2614_v0 }
 0x6ed   : > { %v2585_v60 = vmax.f32 %v5106_v44, %v2553_v5  ;;  %v2523_v7 = vmul.f32 %v2491_v62, %v5097_v61  ;;  %v2449_v11 = vpop.f32.mrb[122].mxu0  ;;  %v6987_v16 = vsub.f32 %v2551_v51, %v2615_v3 }
 0x6ee   : > { %v2554_v31 = vadd.f32 %v2522_v45, %v6767_v37  ;;  %v2492_v55 = vsub.f32 %v8192_v33, %v2449_v11  ;;  %v2451_v9 = vpop.f32.mrb[123].mxu0  ;;  %v2616_v26 = vmin.f32 %v5117_v28, %v2584_v2 }
 0x6ef   : > { %v2555_v14 = vadd.f32 %v2523_v7, %v6763_v35  ;;  %v2493_v15 = vsub.f32 %v8234_v54, %v2451_v9  ;;  %2782 = vmatprep.mubr.f32.mxu1 %v6987_v16  ;;  %v2617_v62 = vmin.f32 %v5117_v28, %v2585_v60 }
 0x6f0   : > { %v2586_v51 = vmax.f32 %v5106_v44, %v2554_v31  ;;  %v2524_v23 = vmul.f32 %v2492_v55, %v5097_v61  ;;  %2783 = vmatmul.mubr.f32.gmra.mrb[116].mxu1 %v6991_v30  ;;  %v7007_v45 = vsub.f32 %v2552_v1, %v2616_v26 }
 0x6f1   : > { %v2587_v37 = vmax.f32 %v5106_v44, %v2555_v14  ;;  %v2525_v43 = vmul.f32 %v2493_v15, %v5097_v61  ;;  %v2455_v0 = vpop.f32.mrb[124].mxu0  ;;  %v7003_v13 = vsub.f32 %v2553_v5, %v2617_v62 }
 0x6f2   : > { %v2556_v35 = vadd.f32 %v2524_v23, %v6782_v56  ;;  %v2494_v3 = vsub.f32 %v8133_v52, %v2455_v0  ;;  %v2457_v2 = vpop.f32.mrb[125].mxu0  ;;  %v2618_v60 = vmin.f32 %v5117_v28, %v2586_v51 }
 0x6f3   : > { %v2557_v7 = vadd.f32 %v2525_v43, %v6779_v38  ;;  %v2495_v11 = vsub.f32 %v8196_v40, %v2457_v2  ;;  %2788 = vmatprep.mubr.f32.mxu1 %v7003_v13  ;;  %v2619_v55 = vmin.f32 %v5117_v28, %v2587_v37 }
 0x6f4   : > { %v2588_v5 = vmax.f32 %v5106_v44, %v2556_v35  ;;  %v2526_v9 = vmul.f32 %v2494_v3, %v5097_v61  ;;  %2789 = vmatmul.mubr.f32.gmra.mrb[118].mxu1 %v7007_v45  ;;  %v7023_v23 = vsub.f32 %v2554_v31, %v2618_v60 }
 0x6f5   : > { %v2589_v56 = vmax.f32 %v5106_v44, %v2557_v7  ;;  %v2527_v1 = vmul.f32 %v2495_v11, %v5097_v61  ;;  %v2461_v26 = vpop.f32.mrb[126].mxu0  ;;  %v7019_v15 = vsub.f32 %v2555_v14, %v2619_v55  ;;  %v8263_v11 = vld [vmem:[#allocation111_spill] sm:$0xff] }
 0x6f6   : > { %v2558_v38 = vadd.f32 %v2526_v9, %v6793_v25  ;;  %v2496_v62 = vsub.f32 %v8074_v53, %v2461_v26  ;;  %v2463_v51 = vpop.f32.mrb[127].mxu0  ;;  %v2620_v37 = vmin.f32 %v5117_v28, %v2588_v5  ;;  %v8264_v9 = vld [vmem:[#allocation112_spill] sm:$0xff] }
 0x6f7   : > { %v2559_v43 = vadd.f32 %v2527_v1, %v6791_v57  ;;  %v2497_v0 = vsub.f32 %v8200_v36, %v2463_v51  ;;  %2794 = vmatprep.mubr.f32.mxu1 %v7019_v15  ;;  %v2621_v3 = vmin.f32 %v5117_v28, %v2589_v56 }
 0x6f8   : > { %v2590_v14 = vmax.f32 %v5106_v44, %v2558_v38  ;;  %v2528_v2 = vmul.f32 %v2496_v62, %v5097_v61  ;;  %2795 = vmatmul.mubr.f32.gmra.mrb[120].mxu1 %v7023_v23  ;;  %v7038_v55 = vsub.f32 %v2556_v35, %v2620_v37 }
 0x6f9   : > { %v2591_v25 = vmax.f32 %v5106_v44, %v2559_v43  ;;  %v2529_v31 = vmul.f32 %v2497_v0, %v5097_v61  ;;  %v7035_v60 = vsub.f32 %v2557_v7, %v2621_v3 }
 0x6fa   : > { %v2560_v57 = vadd.f32 %v2528_v2, %v8263_v11  ;;  %v2622_v5 = vmin.f32 %v5117_v28, %v2590_v14  ;;  %v8269_v14 = vld [vmem:[#allocation12_spill] sm:$0xff] }
 0x6fb   : > { %v2561_v56 = vadd.f32 %v2529_v31, %v8264_v9  ;;  %2800 = vmatprep.mubr.f32.mxu1 %v7035_v60  ;;  %v2623_v1 = vmin.f32 %v5117_v28, %v2591_v25  ;;  %v8270_v25 = vld [vmem:[#allocation13_spill] sm:$0xff] }
 0x6fc   : > { %v2592_v26 = vmax.f32 %v5106_v44, %v2560_v57  ;;  %2801 = vmatmul.mubr.f32.gmra.mrb[122].mxu1 %v7038_v55  ;;  %v7049_v51 = vsub.f32 %v2558_v38, %v2622_v5 }
 0x6fd   : > { %v2593_v62 = vmax.f32 %v5106_v44, %v2561_v56  ;;  %v7047_v7 = vsub.f32 %v2559_v43, %v2623_v1  ;;  %v8271_v1 = vld [vmem:[#allocation14_spill] sm:$0xff] }
 0x6fe   : > { %8266 = vst [vmem:[#allocation129_spill] sm:$0xff] %v7049_v51  ;;  %v2624_v35 = vmin.f32 %v5117_v28, %v2592_v26 }
 0x6ff   : > { %8265 = vst [vmem:[#allocation127_spill] sm:$0xff] %v7047_v7  ;;  %2806 = vmatprep.mubr.f32.mxu1 %v7047_v7  ;;  %v2625_v37 = vmin.f32 %v5117_v28, %v2593_v62 }
 0x700   : > { %2807 = vmatmul.mubr.f32.gmra.mrb[124].mxu1 %v7049_v51  ;;  %v7057_v3 = vsub.f32 %v2560_v57, %v2624_v35  ;;  %v8272_v35 = vld [vmem:[#allocation15_spill] sm:$0xff] }
 0x701   : > { %v7055_v0 = vsub.f32 %v2561_v56, %v2625_v37 }
 0x702   : > { %8268 = vst [vmem:[#allocation137_spill] sm:$0xff] %v7057_v3 }
 0x703   : > { %8267 = vst [vmem:[#allocation133_spill] sm:$0xff] %v7055_v0  ;;  %2812 = vmatprep.mubr.f32.mxu1 %v7055_v0 }
 0x704   : > { %2813 = vmatmul.mubr.f32.gmra.mrb[126].mxu1 %v7057_v3 }
 0x79b   : > { %v2724_v43 = vpop.f32.mrb[96].mxu1 }
 0x79c   : > { %v2819_v38 = vsub.f32 %v8269_v14, %v2724_v43  ;;  %v2726_v2 = vpop.f32.mrb[97].mxu1 }
 0x79d   : > { %v2820_v31 = vsub.f32 %v8270_v25, %v2726_v2 }
 0x79e   : > { %v2851_v11 = vmul.f32 %v2819_v38, %v5097_v61 }
 0x79f   : > { %v2852_v5 = vmul.f32 %v2820_v31, %v5097_v61  ;;  %v2730_v9 = vpop.f32.mrb[98].mxu1 }
 0x7a0   : > { %v2883_v56 = vadd.f32 %v2851_v11, %v6829_v12  ;;  %v2821_v57 = vsub.f32 %v8271_v1, %v2730_v9  ;;  %v2732_v26 = vpop.f32.mrb[99].mxu1  ;;  %v8273_v1 = vld [vmem:[#allocation17_spill] sm:$0xff] }
 0x7a1   : > { %v2884_v62 = vadd.f32 %v2852_v5, %v6827_v63  ;;  %v2822_v37 = vsub.f32 %v8272_v35, %v2732_v26 }
 0x7a2   : > { %v2915_v0 = vmax.f32 %v5106_v44, %v2883_v56  ;;  %v2853_v43 = vmul.f32 %v2821_v57, %v5097_v61 }
 0x7a3   : > { %v2916_v14 = vmax.f32 %v5106_v44, %v2884_v62  ;;  %v2854_v38 = vmul.f32 %v2822_v37, %v5097_v61  ;;  %v2736_v2 = vpop.f32.mrb[100].mxu1 }
 0x7a4   : > { %v2885_v25 = vadd.f32 %v2853_v43, %v6847_v19  ;;  %v2823_v31 = vsub.f32 %v8240_v42, %v2736_v2  ;;  %v2738_v11 = vpop.f32.mrb[101].mxu1  ;;  %v2947_v9 = vmin.f32 %v5117_v28, %v2915_v0 }
 0x7a5   : > { %v2886_v5 = vadd.f32 %v2854_v38, %v6843_v24  ;;  %v2824_v26 = vsub.f32 %v8273_v1, %v2738_v11  ;;  %v2948_v35 = vmin.f32 %v5117_v28, %v2916_v14  ;;  %v8276_v38 = vld [vmem:[#allocation18_spill] sm:$0xff] }
 0x7a6   : > { %v2917_v57 = vmax.f32 %v5106_v44, %v2885_v25  ;;  %v2855_v3 = vmul.f32 %v2823_v31, %v5097_v61  ;;  %v7081_v36 = vsub.f32 %v2883_v56, %v2947_v9   ;;  %v8277_v31 = vld [vmem:[#allocation19_spill] sm:$0xff] }
 0x7a7   : > { %v2918_v37 = vmax.f32 %v5106_v44, %v2886_v5  ;;  %v2856_v43 = vmul.f32 %v2824_v26, %v5097_v61  ;;  %v2742_v2 = vpop.f32.mrb[102].mxu1  ;;  %v7085_v42 = vsub.f32 %v2884_v62, %v2948_v35  }
 0x7a8   : > { %8274 = vst [vmem:[#allocation148_spill] sm:$0xff] %v7081_v36  ;;  %v2887_v0 = vadd.f32 %v2855_v3, %v6863_v18  ;;  %v2825_v7 = vsub.f32 %v8276_v38, %v2742_v2  ;;  %v2744_v11 = vpop.f32.mrb[103].mxu1  ;;  %v3011_v14 = vsub.f32 %v7081_v36, %v6829_v12  ;;  %v2949_v1 = vmin.f32 %v5117_v28, %v2917_v57 }
 0x7a9   : > { %8275 = vst [vmem:[#allocation149_spill] sm:$0xff] %v7085_v42  ;;  %v2888_v56 = vadd.f32 %v2856_v43, %v6859_v48  ;;  %v2826_v9 = vsub.f32 %v8277_v31, %v2744_v11  ;;  %v3012_v26 = vsub.f32 %v7085_v42, %v6827_v63  ;;  %v2950_v62 = vmin.f32 %v5117_v28, %v2918_v37  ;;  %v8281_v63 = vld [vmem:[#allocation20_spill] sm:$0xff] }
 0x7aa   : > { %v2919_v35 = vmax.f32 %v5106_v44, %v2887_v0  ;;  %v2857_v3 = vmul.f32 %v2825_v7, %v5097_v61  ;;  %v3043_v2 = vmul.f32 %v3011_v14, %v3011_v14  ;;  %v7099_v31 = vsub.f32 %v2885_v25, %v2949_v1   ;;  %v8282_v14 = vld [vmem:[#allocation21_spill] sm:$0xff] }
 0x7ab   : > { %v2920_v12 = vmax.f32 %v5106_v44, %v2888_v56  ;;  %v2858_v57 = vmul.f32 %v2826_v9, %v5097_v61  ;;  %v2748_v36 = vpop.f32.mrb[104].mxu1  ;;  %v3044_v43 = vmul.f32 %v3012_v26, %v3012_v26  ;;  %v7103_v53 = vsub.f32 %v2886_v5, %v2950_v62  }
 0x7ac   : > { %8278 = vst [vmem:[#allocation150_spill] sm:$0xff] %v7099_v31  ;;  %v8279_v38 = vmov %v7099_v31  ;;  %v2889_v11 = vadd.f32 %v2857_v3, %v6879_v17  ;;  %v2827_v42 = vsub.f32 %v8281_v63, %v2748_v36  ;;  %v2750_v37 = vpop.f32.mrb[105].mxu1  ;;  %v2951_v7 = vmin.f32 %v5117_v28, %v2919_v35 }
 0x7ad   : > { %8280 = vst [vmem:[#allocation151_spill] sm:$0xff] %v7103_v53  ;;  %v3013_v51 = vsub.f32 %v8279_v38, %v6847_v19  ;;  %v2890_v25 = vadd.f32 %v2858_v57, %v6875_v50  ;;  %v2828_v1 = vsub.f32 %v8282_v14, %v2750_v37  ;;  %v3075_v31 = vadd.f32 %v3044_v43, %v3043_v2 }
 0x7ae   : > { %v3014_v9 = vsub.f32 %v7103_v53, %v6843_v24  ;;  %v2921_v5 = vmax.f32 %v5106_v44, %v2889_v11  ;;  %v2859_v26 = vmul.f32 %v2827_v42, %v5097_v61  ;;  %v2952_v36 = vmin.f32 %v5117_v28, %v2920_v12  ;;  %v8283_v12 = vld [vmem:[#allocation23_spill] sm:$0xff] }
 0x7af   : > { %v3045_v62 = vmul.f32 %v3013_v51, %v3013_v51  ;;  %v2922_v3 = vmax.f32 %v5106_v44, %v2890_v25  ;;  %v2860_v19 = vmul.f32 %v2828_v1, %v5097_v61  ;;  %3076 = vadd.xlane.f32.xlu0 %v3075_v31  ;;  %v2754_v35 = vpop.f32.mrb[106].mxu1  ;;  %v7119_v63 = vsub.f32 %v2887_v0, %v2951_v7  }
 0x7b0   : > { %v3046_v57 = vmul.f32 %v3014_v9, %v3014_v9  ;;  %v2891_v2 = vadd.f32 %v2859_v26, %v6895_v20  ;;  %v2829_v24 = vsub.f32 %v8247_v32, %v2754_v35  ;;  %v2756_v43 = vpop.f32.mrb[107].mxu1  ;;  %v7123_v37 = vsub.f32 %v2888_v56, %v2952_v36  }
 0x7b1   : > { %v2953_v42 = vmin.f32 %v5117_v28, %v2921_v5  ;;  %v2892_v51 = vadd.f32 %v2860_v19, %v6891_v47  ;;  %v2830_v14 = vsub.f32 %v8283_v12, %v2756_v43  ;;  %v3015_v1 = vsub.f32 %v7119_v63, %v6863_v18  ;;  %v8284_v19 = vld [vmem:[#allocation24_spill] sm:$0xff] }
 0x7b2   : > { %v3078_v38 = vadd.f32 %v3046_v57, %v3045_v62  ;;  %v2923_v0 = vmax.f32 %v5106_v44, %v2891_v2  ;;  %v2861_v7 = vmul.f32 %v2829_v24, %v5097_v61  ;;  %v3016_v31 = vsub.f32 %v7123_v37, %v6859_v48 }
 0x7b3   : > { %v2954_v56 = vmin.f32 %v5117_v28, %v2922_v3  ;;  %v2924_v9 = vmax.f32 %v5106_v44, %v2892_v51  ;;  %v2862_v5 = vmul.f32 %v2830_v14, %v5097_v61  ;;  %v2760_v26 = vpop.f32.mrb[108].mxu1  ;;  %v3047_v36 = vmul.f32 %v3015_v1, %v3015_v1  ;;  %v8286_v3 = vld [vmem:[#allocation25_spill] sm:$0xff] }
 0x7b4   : > { %3079 = vadd.xlane.f32.xlu0 %v3078_v38  ;;  %v7137_v62 = vsub.f32 %v2889_v11, %v2953_v42   ;;  %v2893_v18 = vadd.f32 %v2861_v7, %v6911_v29  ;;  %v2831_v35 = vsub.f32 %v8284_v19, %v2760_v26  ;;  %v2762_v57 = vpop.f32.mrb[109].mxu1  ;;  %v3048_v24 = vmul.f32 %v3016_v31, %v3016_v31 }
 0x7b5   : > { %v7141_v25 = vsub.f32 %v2890_v25, %v2954_v56   ;;  %v2894_v48 = vadd.f32 %v2862_v5, %v6907_v4  ;;  %v2832_v12 = vsub.f32 %v8286_v3, %v2762_v57  ;;  %v2955_v38 = vmin.f32 %v5117_v28, %v2923_v0  ;;  %v8287_v0 = vld [vmem:[#allocation26_spill] sm:$0xff] }
 0x7b6   : > { %v3017_v14 = vsub.f32 %v7137_v62, %v6879_v17  ;;  %v2925_v11 = vmax.f32 %v5106_v44, %v2893_v18  ;;  %v2863_v42 = vmul.f32 %v2831_v35, %v5097_v61  ;;  %v3081_v1 = vadd.f32 %v3048_v24, %v3047_v36 }
 0x7b7   : > { %v8285_v43 = vmov %v7141_v25  ;;  %v2926_v31 = vmax.f32 %v5106_v44, %v2894_v48  ;;  %v2864_v25 = vmul.f32 %v2832_v12, %v5097_v61  ;;  %v2766_v56 = vpop.f32.mrb[110].mxu1  ;;  %v2956_v26 = vmin.f32 %v5117_v28, %v2924_v9 }
 0x7b8   : > { %v3018_v7 = vsub.f32 %v8285_v43, %v6875_v50  ;;  %v3049_v5 = vmul.f32 %v3017_v14, %v3017_v14  ;;  %v2895_v17 = vadd.f32 %v2863_v42, %v6927_v27  ;;  %3082 = vadd.xlane.f32.xlu1 %v3081_v1  ;;  %v2833_v19 = vsub.f32 %v8287_v0, %v2766_v56  ;;  %v2768_v57 = vpop.f32.mrb[111].mxu1  ;;  %v8288_v50 = vld [vmem:[#allocation27_spill] sm:$0xff] }
 0x7b9   : > { %v7157_v35 = vsub.f32 %v2891_v2, %v2955_v38   ;;  %v2896_v36 = vadd.f32 %v2864_v25, %v6923_v21  ;;  %v2834_v24 = vsub.f32 %v8288_v50, %v2768_v57  ;;  %v7161_v32 = vsub.f32 %v2892_v51, %v2956_v26  }
 0x7ba   : > { %v3050_v3 = vmul.f32 %v3018_v7, %v3018_v7  ;;  %v2957_v12 = vmin.f32 %v5117_v28, %v2925_v11  ;;  %v2927_v14 = vmax.f32 %v5106_v44, %v2895_v17  ;;  %v2865_v9 = vmul.f32 %v2833_v19, %v5097_v61  ;;  %v8290_v19 = vld [vmem:[#allocation29_spill] sm:$0xff] }
 0x7bb   : > { %v3019_v1 = vsub.f32 %v7157_v35, %v6895_v20  ;;  %v2928_v7 = vmax.f32 %v5106_v44, %v2896_v36  ;;  %v2866_v2 = vmul.f32 %v2834_v24, %v5097_v61  ;;  %v2772_v38 = vpop.f32.mrb[112].mxu1  ;;  %v3020_v25 = vsub.f32 %v7161_v32, %v6891_v47 }
 0x7bc   : > { %v3084_v42 = vadd.f32 %v3050_v3, %v3049_v5  ;;  %v2958_v51 = vmin.f32 %v5117_v28, %v2926_v31  ;;  %v2897_v11 = vadd.f32 %v2865_v9, %v6943_v6  ;;  %v2835_v56 = vsub.f32 %v8253_v46, %v2772_v38  ;;  %v2774_v26 = vpop.f32.mrb[113].mxu1 }
 0x7bd   : > { %v3051_v5 = vmul.f32 %v3019_v1, %v3019_v1  ;;  %v7175_v0 = vsub.f32 %v2893_v18, %v2957_v12   ;;  %v2898_v20 = vadd.f32 %v2866_v2, %v6939_v34  ;;  %v2836_v3 = vsub.f32 %v8290_v19, %v2774_v26 }
 0x7be   : > { %3085 = vadd.xlane.f32.xlu1 %v3084_v42  ;;  %v3052_v50 = vmul.f32 %v3020_v25, %v3020_v25  ;;  %v7179_v24 = vsub.f32 %v2894_v48, %v2958_v51   ;;  %v2929_v47 = vmax.f32 %v5106_v44, %v2897_v11  ;;  %v2867_v31 = vmul.f32 %v2835_v56, %v5097_v61 }
 0x7bf   : > { %v8289_v57 = vmov %v7175_v0  ;;  %v2959_v42 = vmin.f32 %v5117_v28, %v2927_v14  ;;  %v2930_v1 = vmax.f32 %v5106_v44, %v2898_v20  ;;  %v2868_v18 = vmul.f32 %v2836_v3, %v5097_v61  ;;  %v2778_v2 = vpop.f32.mrb[114].mxu1 }
 0x7c0   : > { %v8291_v53 = vmov %v7179_v24  ;;  %v3021_v9 = vsub.f32 %v8289_v57, %v6911_v29  ;;  %v3087_v12 = vadd.f32 %v3052_v50, %v3051_v5  ;;  %v2899_v48 = vadd.f32 %v2867_v31, %v6959_v8  ;;  %v2780_v51 = vpop.f32.mrb[115].mxu1 }
 0x7c1   : > { %v3022_v38 = vsub.f32 %v8291_v53, %v6907_v4  ;;  %v2837_v25 = vsub.f32 %v8227_v59, %v2778_v2  ;;  %v2960_v26 = vmin.f32 %v5117_v28, %v2928_v7  ;;  %v2900_v29 = vadd.f32 %v2868_v18, %v6955_v22 }
 0x7c2   : > { %v3053_v56 = vmul.f32 %v3021_v9, %v3021_v9  ;;  %3088 = vadd.xlane.f32.xlu0 %v3087_v12  ;;  %v2838_v14 = vsub.f32 %v8256_v58, %v2780_v51  ;;  %v7195_v18 = vsub.f32 %v2895_v17, %v2959_v42   ;;  %v2931_v5 = vmax.f32 %v5106_v44, %v2899_v48  ;;  %v8294_v42 = vld [vmem:[#allocation32_spill] sm:$0xff] }
 0x7c3   : > { %v3054_v0 = vmul.f32 %v3022_v38, %v3022_v38  ;;  %v2869_v4 = vmul.f32 %v2837_v25, %v5097_v61  ;;  %v7199_v19 = vsub.f32 %v2896_v36, %v2960_v26   ;;  %v2961_v3 = vmin.f32 %v5117_v28, %v2929_v47  ;;  %v2784_v9 = vpop.f32.mrb[116].mxu1  ;;  %v8295_v25 = vld [vmem:[#allocation33_spill] sm:$0xff] }
 0x7c4   : > { %v8292_v50 = vmov %v7195_v18  ;;  %v2932_v24 = vmax.f32 %v5106_v44, %v2900_v29  ;;  %v2870_v7 = vmul.f32 %v2838_v14, %v5097_v61  ;;  %v2839_v18 = vsub.f32 %v8294_v42, %v2784_v9  ;;  %v2786_v2 = vpop.f32.mrb[117].mxu1 }
 0x7c5   : > { %v8293_v46 = vmov %v7199_v19  ;;  %v3090_v31 = vadd.f32 %v3054_v0, %v3053_v56  ;;  %v3023_v12 = vsub.f32 %v8292_v50, %v6927_v27  ;;  %v2901_v17 = vadd.f32 %v2869_v4, %v6975_v10 }
 0x7c6   : > { %v3024_v36 = vsub.f32 %v8293_v46, %v6923_v21  ;;  %v2962_v38 = vmin.f32 %v5117_v28, %v2930_v1  ;;  %v2902_v47 = vadd.f32 %v2870_v7, %v6971_v41  ;;  %v2840_v51 = vsub.f32 %v8295_v25, %v2786_v2  ;;  %v8299_v2 = vld [vmem:[#allocation35_spill] sm:$0xff] }
 0x7c7   : > { %3091 = vadd.xlane.f32.xlu1 %v3090_v31  ;;  %v3055_v56 = vmul.f32 %v3023_v12, %v3023_v12  ;;  %v7213_v19 = vsub.f32 %v2897_v11, %v2961_v3   ;;  %v2933_v27 = vmax.f32 %v5106_v44, %v2901_v17  ;;  %v2871_v26 = vmul.f32 %v2839_v18, %v5097_v61  ;;  %v2790_v1 = vpop.f32.mrb[118].mxu1  ;;  %v8298_v3 = vld [vmem:[#allocation34_spill] sm:$0xff] }
 0x7c8   : > { %v3056_v14 = vmul.f32 %v3024_v36, %v3024_v36  ;;  %v7217_v0 = vsub.f32 %v2898_v20, %v2962_v38   ;;  %v2934_v4 = vmax.f32 %v5106_v44, %v2902_v47  ;;  %v2872_v21 = vmul.f32 %v2840_v51, %v5097_v61  ;;  %v2792_v12 = vpop.f32.mrb[119].mxu1 }
 0x7c9   : > { %v8296_v58 = vmov %v7213_v19  ;;  %v2963_v31 = vmin.f32 %v5117_v28, %v2931_v5  ;;  %v2903_v11 = vadd.f32 %v2871_v26, %v6991_v30  ;;  %v2841_v9 = vsub.f32 %v8298_v3, %v2790_v1 }
 0x7ca   : > { %v8297_v42 = vmov %v7217_v0  ;;  %v3025_v7 = vsub.f32 %v8296_v58, %v6943_v6  ;;  %v3093_v19 = vadd.f32 %v3056_v14, %v3055_v56  ;;  %v2904_v18 = vadd.f32 %v2872_v21, %v6987_v16 }
 0x7cb   : > { %v3026_v20 = vsub.f32 %v8297_v42, %v6939_v34  ;;  %v2842_v36 = vsub.f32 %v8299_v2, %v2792_v12  ;;  %v2964_v25 = vmin.f32 %v5117_v28, %v2932_v24  ;;  %v2935_v6 = vmax.f32 %v5106_v44, %v2903_v11  ;;  %v2796_v34 = vpop.f32.mrb[120].mxu1 }
 0x7cc   : > { %v3057_v38 = vmul.f32 %v3025_v7, %v3025_v7  ;;  %3094 = vadd.xlane.f32.xlu0 %v3093_v19  ;;  %v2873_v5 = vmul.f32 %v2841_v9, %v5097_v61  ;;  %v7233_v14 = vsub.f32 %v2899_v48, %v2963_v31   ;;  %v2936_v26 = vmax.f32 %v5106_v44, %v2904_v18  ;;  %v2798_v19 = vpop.f32.mrb[121].mxu1 }
 0x7cd   : > { %v3058_v51 = vmul.f32 %v3026_v20, %v3026_v20  ;;  %v2874_v0 = vmul.f32 %v2842_v36, %v5097_v61  ;;  %v7237_v12 = vsub.f32 %v2900_v29, %v2964_v25   ;;  %v2965_v21 = vmin.f32 %v5117_v28, %v2933_v27 }
 0x7ce   : > { %v8300_v56 = vmov %v7233_v14  ;;  %v2905_v1 = vadd.f32 %v2873_v5, %v7007_v45  ;;  %v2843_v7 = vsub.f32 %v8260_v39, %v2796_v34  ;;  %v2844_v14 = vsub.f32 %v8262_v49, %v2798_v19 }
 0x7cf   : > { %v8301_v59 = vmov %v7237_v12  ;;  %v3096_v24 = vadd.f32 %v3058_v51, %v3057_v38  ;;  %v3027_v3 = vsub.f32 %v8300_v56, %v6959_v8  ;;  %v2906_v48 = vadd.f32 %v2874_v0, %v7003_v13  ;;  %v2802_v25 = vpop.f32.mrb[122].mxu1 }
 0x7d0   : > { %v3028_v31 = vsub.f32 %v8301_v59, %v6955_v22  ;;  %v2966_v29 = vmin.f32 %v5117_v28, %v2934_v4  ;;  %v2937_v27 = vmax.f32 %v5106_v44, %v2905_v1  ;;  %v2875_v9 = vmul.f32 %v2843_v7, %v5097_v61  ;;  %v2804_v0 = vpop.f32.mrb[123].mxu1 }
 0x7d1   : > { %3097 = vadd.xlane.f32.xlu1 %v3096_v24  ;;  %v3059_v12 = vmul.f32 %v3027_v3, %v3027_v3  ;;  %v7251_v20 = vsub.f32 %v2901_v17, %v2965_v21   ;;  %v2938_v2 = vmax.f32 %v5106_v44, %v2906_v48  ;;  %v2876_v8 = vmul.f32 %v2844_v14, %v5097_v61 }
 0x7d2   : > { %v3060_v38 = vmul.f32 %v3028_v31, %v3028_v31  ;;  %v7255_v5 = vsub.f32 %v2902_v47, %v2966_v29   ;;  %v2907_v22 = vadd.f32 %v2875_v9, %v7023_v23  ;;  %v2845_v4 = vsub.f32 %v8192_v33, %v2802_v25 }
 0x7d3   : > { %v8302_v36 = vmov %v7251_v20  ;;  %v2967_v24 = vmin.f32 %v5117_v28, %v2935_v6  ;;  %v2908_v17 = vadd.f32 %v2876_v8, %v7019_v15  ;;  %v2846_v7 = vsub.f32 %v8234_v54, %v2804_v0  ;;  %v2808_v9 = vpop.f32.mrb[124].mxu1 }
 0x7d4   : > { %v8303_v51 = vmov %v7255_v5  ;;  %v3029_v34 = vsub.f32 %v8302_v36, %v6975_v10  ;;  %v3099_v21 = vadd.f32 %v3060_v38, %v3059_v12  ;;  %v2939_v47 = vmax.f32 %v5106_v44, %v2907_v22  ;;  %v2810_v8 = vpop.f32.mrb[125].mxu1 }
 0x7d5   : > { %v3030_v19 = vsub.f32 %v8303_v51, %v6971_v41  ;;  %v2877_v3 = vmul.f32 %v2845_v4, %v5097_v61  ;;  %v2968_v31 = vmin.f32 %v5117_v28, %v2936_v26  ;;  %v2940_v29 = vmax.f32 %v5106_v44, %v2908_v17 }
 0x7d6   : > { %v3061_v14 = vmul.f32 %v3029_v34, %v3029_v34  ;;  %3100 = vadd.xlane.f32.xlu0 %v3099_v21  ;;  %v2878_v10 = vmul.f32 %v2846_v7, %v5097_v61  ;;  %v7271_v12 = vsub.f32 %v2903_v11, %v2967_v24   ;;  %v2847_v41 = vsub.f32 %v8133_v52, %v2808_v9 }
 0x7d7   : > { %v3062_v6 = vmul.f32 %v3030_v19, %v3030_v19  ;;  %v2909_v20 = vadd.f32 %v2877_v3, %v7038_v55  ;;  %v7275_v0 = vsub.f32 %v2904_v18, %v2968_v31   ;;  %v2969_v25 = vmin.f32 %v5117_v28, %v2937_v27  ;;  %v2814_v19 = vpop.f32.mrb[126].mxu1  ;;  %v8307_v3 = vld [vmem:[#allocation129_spill] sm:$0xff]  ;;  %v8308_v31 = vld [vmem:[#allocation42_spill] sm:$0xff] }
 0x7d8   : > { %v8304_v38 = vmov %v7271_v12  ;;  %v2910_v26 = vadd.f32 %v2878_v10, %v7035_v60  ;;  %v2848_v4 = vsub.f32 %v8196_v40, %v2810_v8  ;;  %v2879_v24 = vmul.f32 %v2847_v41, %v5097_v61  ;;  %v8311_v12 = vld [vmem:[#allocation43_spill] sm:$0xff] }
 0x7d9   : > { %v8305_v33 = vmov %v7275_v0  ;;  %v3102_v5 = vadd.f32 %v3062_v6, %v3061_v14  ;;  %v3031_v34 = vsub.f32 %v8304_v38, %v6991_v30  ;;  %v2941_v11 = vmax.f32 %v5106_v44, %v2909_v20  ;;  %v2816_v6 = vpop.f32.mrb[127].mxu1 }
 0x7da   : > { %v3032_v21 = vsub.f32 %v8305_v33, %v6987_v16  ;;  %v2970_v18 = vmin.f32 %v5117_v28, %v2938_v2  ;;  %v2942_v0 = vmax.f32 %v5106_v44, %v2910_v26  ;;  %v2880_v27 = vmul.f32 %v2848_v4, %v5097_v61  ;;  %v8310_v16 = vld [vmem:[#allocation127_spill] sm:$0xff] }
 0x7db   : > { %3103 = vadd.xlane.f32.xlu1 %v3102_v5  ;;  %v3063_v7 = vmul.f32 %v3031_v34, %v3031_v34  ;;  %v7289_v1 = vsub.f32 %v2905_v1, %v2969_v25   ;;  %v2911_v30 = vadd.f32 %v2879_v24, %v8307_v3  ;;  %v2849_v10 = vsub.f32 %v8308_v31, %v2814_v19 }
 0x7dc   : > { %v3064_v14 = vmul.f32 %v3032_v21, %v3032_v21  ;;  %v7293_v2 = vsub.f32 %v2906_v48, %v2970_v18   ;;  %v2912_v9 = vadd.f32 %v2880_v27, %v8310_v16  ;;  %v2850_v8 = vsub.f32 %v8311_v12, %v2816_v6  ;;  %v8312_v27 = vld [vmem:[#allocation137_spill] sm:$0xff] }
 0x7dd   : > { %v8306_v39 = vmov %v7289_v1  ;;  %v2971_v4 = vmin.f32 %v5117_v28, %v2939_v47  ;;  %v2943_v25 = vmax.f32 %v5106_v44, %v2911_v30  ;;  %v2881_v34 = vmul.f32 %v2849_v10, %v5097_v61 }
 0x7de   : > { %v8309_v41 = vmov %v7293_v2  ;;  %v3033_v5 = vsub.f32 %v8306_v39, %v7007_v45  ;;  %v3105_v1 = vadd.f32 %v3064_v14, %v3063_v7  ;;  %v2944_v48 = vmax.f32 %v5106_v44, %v2912_v9  ;;  %v8313_v14 = vld [vmem:[#allocation133_spill] sm:$0xff] }
 0x7df   : > { %v3034_v24 = vsub.f32 %v8309_v41, %v7003_v13  ;;  %v2882_v2 = vmul.f32 %v2850_v8, %v5097_v61  ;;  %v2972_v18 = vmin.f32 %v5117_v28, %v2940_v29  ;;  %v2913_v45 = vadd.f32 %v2881_v34, %v8312_v27 }
 0x7e0   : > { %v3065_v21 = vmul.f32 %v3033_v5, %v3033_v5  ;;  %3106 = vadd.xlane.f32.xlu0 %v3105_v1  ;;  %v7308_v47 = vsub.f32 %v2907_v22, %v2971_v4   ;;  %v2973_v7 = vmin.f32 %v5117_v28, %v2941_v11  ;;  %v2974_v13 = vmin.f32 %v5117_v28, %v2942_v0 }
 0x7e1   : > { %v3066_v19 = vmul.f32 %v3034_v24, %v3034_v24  ;;  %v2914_v31 = vadd.f32 %v2882_v2, %v8313_v14  ;;  %v7312_v4 = vsub.f32 %v2908_v17, %v2972_v18   ;;  %v2975_v10 = vmin.f32 %v5117_v28, %v2943_v25 }
 0x7e2   : > { %v2945_v61 = vmax.f32 %v5106_v44, %v2913_v45  ;;  %v3035_v29 = vsub.f32 %v7308_v47, %v7023_v23  ;;  %v7319_v5 = vsub.f32 %v2909_v20, %v2973_v7   ;;  %v7324_v12 = vsub.f32 %v2910_v26, %v2974_v13  }
 0x7e3   : > { %v8314_v40 = vmov %v7312_v4  ;;  %v3108_v6 = vadd.f32 %v3066_v19, %v3065_v21  ;;  %v2946_v22 = vmax.f32 %v5106_v44, %v2914_v31  ;;  %v2976_v17 = vmin.f32 %v5117_v28, %v2944_v48 }
 0x7e4   : > { %v8315_v34 = vmov %v7319_v5  ;;  %v3036_v11 = vsub.f32 %v8314_v40, %v7019_v15  ;;  %v8316_v49 = vmov %v7324_v12  ;;  %v3067_v0 = vmul.f32 %v3035_v29, %v3035_v29 }
 0x7e5   : > { %3109 = vadd.xlane.f32.xlu1 %v3108_v6  ;;  %v3037_v8 = vsub.f32 %v8315_v34, %v7038_v55  ;;  %v7329_v7 = vsub.f32 %v2911_v30, %v2975_v10   ;;  %v2977_v23 = vmin.f32 %v5117_v28, %v2945_v61  ;;  %v2978_v20 = vmin.f32 %v5117_v28, %v2946_v22 }
 0x7e6   : > { %v3068_v5 = vmul.f32 %v3036_v11, %v3036_v11  ;;  %v3038_v44 = vsub.f32 %v8316_v49, %v7035_v60  ;;  %v7335_v15 = vsub.f32 %v2912_v9, %v2976_v17  }
 0x7e7   : > { %v8317_v52 = vmov %v7329_v7  ;;  %v3069_v26 = vmul.f32 %v3037_v8, %v3037_v8  ;;  %v7339_v9 = vsub.f32 %v2913_v45, %v2977_v23   ;;  %v7341_v11 = vsub.f32 %v2914_v31, %v2978_v20  }
 0x7e8   : > { %v8318_v54 = vmov %v7335_v15  ;;  %v3039_v4 = vsub.f32 %v8317_v52, %v8307_v3  ;;  %v3111_v30 = vadd.f32 %v3068_v5, %v3067_v0  ;;  %v3070_v25 = vmul.f32 %v3038_v44, %v3038_v44 }
 0x7e9   : > { %v8319_v48 = vmov %v7339_v9  ;;  %v8320_v55 = vmov %v7341_v11  ;;  %v3040_v28 = vsub.f32 %v8318_v54, %v8310_v16 }
 0x7ea   : > { %v3071_v1 = vmul.f32 %v3039_v4, %v3039_v4  ;;  %v3041_v60 = vsub.f32 %v8319_v48, %v8312_v27  ;;  %3112 = vadd.xlane.f32.xlu0 %v3111_v30  ;;  %v3114_v24 = vadd.f32 %v3070_v25, %v3069_v26  ;;  %v3042_v3 = vsub.f32 %v8320_v55, %v8313_v14 }
 0x7eb   : > { %v3072_v2 = vmul.f32 %v3040_v28, %v3040_v28 }
 0x7ec   : > { %v3073_v21 = vmul.f32 %v3041_v60, %v3041_v60  ;;  %3115 = vadd.xlane.f32.xlu1 %v3114_v24  ;;  %v3074_v18 = vmul.f32 %v3042_v3, %v3042_v3 }
 0x7ed   : > { %v3117_v9 = vadd.f32 %v3072_v2, %v3071_v1 }
 0x7ee   : > { %v3120_v45 = vadd.f32 %v3074_v18, %v3073_v21 }
 0x7ef   : > { %3118 = vadd.xlane.f32.xlu0 %v3117_v9 }
 0x7f0   : > { %3121 = vadd.xlane.f32.xlu1 %v3120_v45 }
 0x83c   : > { %v3077_v19 = vpop.xlane.xlu0 %3076 }
 0x841   : > { %v3080_v7 = vpop.xlane.xlu0 %3079 }
 0x845   : > { %v3083_v16 = vpop.xlane.xlu1 %3082 }
 0x84b   : > { %v3086_v31 = vpop.xlane.xlu1 %3085 }
 0x84f   : > { %v3089_v13 = vpop.xlane.xlu0 %3088 }
 0x850   : > { %v3123_v0 = vmax.f32 %v3077_v19, %v3089_v13  ;;  %v8334_v13 = vmov %v8303_v51 }
 0x854   : > { %v3092_v27 = vpop.xlane.xlu1 %3091 }
 0x855   : > { %v3124_v12 = vmax.f32 %v3080_v7, %v3092_v27  ;;  %v8325_v7 = vmov %v8317_v52  ;;  %v8347_v27 = vmov %v7137_v62 }
 0x859   : > { %v3095_v10 = vpop.xlane.xlu0 %3094 }
 0x85a   : > { %v3125_v8 = vmax.f32 %v3083_v16, %v3095_v10  ;;  %v8333_v10 = vmov %v8304_v38  ;;  %v8340_v16 = vmov %v8293_v46 }
 0x85e   : > { %v3098_v61 = vpop.xlane.xlu1 %3097 }
 0x85f   : > { %v3126_v23 = vmax.f32 %v3086_v31, %v3098_v61  ;;  %v8351_v31 = vld [vmem:[#allocation150_spill] sm:$0xff] }
 0x863   : > { %v3101_v6 = vpop.xlane.xlu0 %3100 }
 0x864   : > { %v3127_v44 = vmax.f32 %v3123_v0, %v3101_v6  ;;  %v8326_v6 = vmov %v8316_v49  ;;  %v8332_v0 = vmov %v8305_v33 }
 0x868   : > { %v3104_v29 = vpop.xlane.xlu1 %3103 }
 0x869   : > { %v3128_v20 = vmax.f32 %v3124_v12, %v3104_v29  ;;  %v8336_v12 = vmov %v8301_v59  ;;  %v8350_v29 = vld [vmem:[#allocation151_spill] sm:$0xff] }
 0x86d   : > { %v3107_v22 = vpop.xlane.xlu0 %3106 }
 0x86e   : > { %v3129_v15 = vmax.f32 %v3125_v8, %v3107_v22  ;;  %v8324_v8 = vmov %v8318_v54  ;;  %v8345_v22 = vmov %v7157_v35 }
 0x872   : > { %v3110_v14 = vpop.xlane.xlu1 %3109 }
 0x873   : > { %v3130_v26 = vmax.f32 %v3126_v23, %v3110_v14  ;;  %v8337_v14 = vmov %v8300_v56  ;;  %v8343_v23 = vmov %v8289_v57 }
 0x877   : > { %v3113_v11 = vpop.xlane.xlu0 %3112 }
 0x878   : > { %v3131_v25 = vmax.f32 %v3127_v44, %v3113_v11  ;;  %v8322_v11 = vmov %v8320_v55 }
 0x879   : > { %v3116_v17 = vpop.xlane.xlu1 %3115 }
 0x87a   : > { %v3132_v4 = vmax.f32 %v3128_v20, %v3116_v17  ;;  %v8338_v17 = vmov %v8297_v42  ;;  %v8344_v20 = vmov %v7161_v32 }
 0x87c   : > { %v3119_v5 = vpop.xlane.xlu0 %3118  ;;  %v3135_v60 = vmax.f32 %v3131_v25, %v3132_v4  ;;  %v8328_v4 = vmov %v8314_v40  ;;  %v8346_v25 = vmov %v8285_v43 }
 0x87d   : > { %v3122_v30 = vpop.xlane.xlu1 %3121  ;;  %v3133_v28 = vmax.f32 %v3129_v15, %v3119_v5  ;;  %v8327_v5 = vmov %v8315_v34  ;;  %v8335_v15 = vmov %v8302_v36 }
 0x87e   : > { %v3134_v1 = vmax.f32 %v3130_v26, %v3122_v30  ;;  %v8349_v26 = vmov %v7119_v63  ;;  %v8353_v30 = vld [vmem:[#allocation148_spill] sm:$0xff] }
 0x880   : > { %v3136_v24 = vmax.f32 %v3133_v28, %v3134_v1  ;;  %v8331_v1 = vmov %v8306_v39  ;;  %v8352_v28 = vld [vmem:[#allocation149_spill] sm:$0xff] }
 0x882   : > { %v3137_v2 = vmax.f32 %v3135_v60, %v3136_v24  ;;  %v8348_v24 = vmov %v7123_v37 }
 0x884   : > { %v3138_v3 = vrot.slane %v3137_v2, 4 }
 0x886   : > { %v3139_v21 = vmax.f32 %v3137_v2, %v3138_v3  ;;  %v8329_v3 = vmov %v7308_v47  ;;  %v8330_v2 = vmov %v8309_v41 }
 0x888   : > { %v3140_v9 = vrot.slane %v3139_v21, 2 }
 0x88a   : > { %v3141_v18 = vmax.f32 %v3139_v21, %v3140_v9  ;;  %v8323_v9 = vmov %v8319_v48  ;;  %v8342_v21 = vmov %v8291_v53 }
 0x88c   : > { %v3142_v45 = vrot.slane %v3141_v18, 1 }
 0x88e   : > { %v3143_v19 = vmax.f32 %v3141_v18, %v3142_v45  ;;  %v8341_v18 = vmov %v8292_v50 }
 0x890   : > { %3814 = vpush %v3143_v19  ;;  %v8339_v19 = vmov %v8296_v58 }
 0x8c1   : > { %s3815_s21 = spop %3814 }
 0x8c2   : > { %p3145_p2 = scmp.lt.f32.partialorder %s3815_s21, 1e-12 }
 0x8c4   : > { %s3146_s24 = scalar_select %p3145_p2, 1, 0 }
 0x8c6   : > { %p178_p4 = scmp.eq.s32.totalorder %s3146_s24, 0 }
 0x8c8   : > { %p7352_p5 = pnand %p178_p4, %p177_p3 }
 0x8c9   :  { %v8355_v61 = vld [vmem:[#allocation148_spill] sm:$0xff] (%p7352_p5)  ;;  %v8356_v44 = vld [vmem:[#allocation149_spill] sm:$0xff] (%p7352_p5)  ;;  %v8357_v60 = vld [vmem:[#allocation150_spill] sm:$0xff] (%p7352_p5)  ;;  %3152 = vst [vmem:[#allocation8 + $0x20] sm:$0xff] (%p7352_p5), %v7119_v63  ;;  %s4425_s0 = smov (%p7352_p5), [#allocation8]  }
 0x8ca   :  { %182 = sbr.rel (!%p7352_p5) target bundleno = 87 (0x57), region = 47  ;;  %3148 = vst [vmem:[#allocation8] sm:$0xff] (%p7352_p5), %v8355_v61  ;;  %3149 = vst [vmem:[#allocation8 + $0x8] sm:$0xff] (%p7352_p5), %v8356_v44  ;;  %v8358_v45 = vld [vmem:[#allocation151_spill] sm:$0xff] (%p7352_p5)  ;;  %s3185_s26 = sshll.u32 (%p7352_p5), %s4425_s0, 4  ;;  %s3186_s26 = int_to_ptr.vmem [resolvable:$true] %s3185_s26 }
 0x8cb   :  { %3150 = vst [vmem:[#allocation8 + $0x10] sm:$0xff] (%p7352_p5), %v8357_v60  ;;  %3151 = vst [vmem:[#allocation8 + $0x18] sm:$0xff] (%p7352_p5), %v8358_v45  ;;  %s4129_s27 = scalar_lea.vmem (%p7352_p5), %s3186_s26, 4096  ;;  %p4134_p7 = scmp.lt.s32.totalorder (%p7352_p5), %s3186_s26, %s3186_s26 }
 0x8cc   :  { %3153 = vst [vmem:[#allocation8 + $0x28] sm:$0xff] (%p7352_p5), %v7123_v37  ;;  %3154 = vst [vmem:[#allocation8 + $0x30] sm:$0xff] (%p7352_p5), %v7137_v62  ;;  %p4130_p6 = scmp.ne.s32.totalorder (%p7352_p5), %s3186_s26, %s4129_s27  ;;  %p4135_p8 = scmp.lt.s32.totalorder (%p7352_p5), %s4129_s27, %s4129_s27 }
 0x8cd   :  { %3155 = vst [vmem:[#allocation8 + $0x38] sm:$0xff] (%p7352_p5), %v8285_v43  ;;  %3156 = vst [vmem:[#allocation8 + $0x40] sm:$0xff] (%p7352_p5), %v7157_v35 }
 0x8ce   :  { %3157 = vst [vmem:[#allocation8 + $0x48] sm:$0xff] (%p7352_p5), %v7161_v32  ;;  %3158 = vst [vmem:[#allocation8 + $0x50] sm:$0xff] (%p7352_p5), %v8289_v57  ;;  %p4136_p9 = por (%p7352_p5), %p4135_p8, %p4134_p7 }
 0x8cf   :  { %3159 = vst [vmem:[#allocation8 + $0x58] sm:$0xff] (%p7352_p5), %v8291_v53  ;;  %3160 = vst [vmem:[#allocation8 + $0x60] sm:$0xff] (%p7352_p5), %v8292_v50 }
 0x8d0   :  { %3161 = vst [vmem:[#allocation8 + $0x68] sm:$0xff] (%p7352_p5), %v8293_v46  ;;  %3162 = vst [vmem:[#allocation8 + $0x70] sm:$0xff] (%p7352_p5), %v8296_v58  ;;  %p4137_p10 = pnand (%p7352_p5), %p4136_p9, %p4130_p6 }
 0x8d1   :  { %3163 = vst [vmem:[#allocation8 + $0x78] sm:$0xff] %v8297_v42  ;;  %3164 = vst [vmem:[#allocation8 + $0x80] sm:$0xff] %v8300_v56 }
 0x8d2   :  { %3165 = vst [vmem:[#allocation8 + $0x88] sm:$0xff] %v8301_v59  ;;  %3166 = vst [vmem:[#allocation8 + $0x90] sm:$0xff] %v8302_v36 }
 0x8d3   :  { %3167 = vst [vmem:[#allocation8 + $0x98] sm:$0xff] %v8303_v51  ;;  %3168 = vst [vmem:[#allocation8 + $0xa0] sm:$0xff] %v8304_v38 }
 0x8d4   :  { %3169 = vst [vmem:[#allocation8 + $0xa8] sm:$0xff] %v8305_v33  ;;  %3170 = vst [vmem:[#allocation8 + $0xb0] sm:$0xff] %v8306_v39 }
 0x8d5   :  { %3171 = vst [vmem:[#allocation8 + $0xb8] sm:$0xff] %v8309_v41  ;;  %3172 = vst [vmem:[#allocation8 + $0xc0] sm:$0xff] %v7308_v47 }
 0x8d6   :  { %3173 = vst [vmem:[#allocation8 + $0xc8] sm:$0xff] %v8314_v40  ;;  %3174 = vst [vmem:[#allocation8 + $0xd0] sm:$0xff] %v8315_v34 }
 0x8d7   :  { %3175 = vst [vmem:[#allocation8 + $0xd8] sm:$0xff] %v8316_v49  ;;  %3176 = vst [vmem:[#allocation8 + $0xe0] sm:$0xff] %v8317_v52 }
 0x8d8   :  { %3177 = vst [vmem:[#allocation8 + $0xe8] sm:$0xff] %v8318_v54  ;;  %3178 = vst [vmem:[#allocation8 + $0xf0] sm:$0xff] %v8319_v48 }
 0x8d9   :  { %3179 = vst [vmem:[#allocation8 + $0xf8] sm:$0xff] %v8320_v55 }
 0x8da   :  { %4140 = shalt.err (!%p4137_p10)
}
 0x8db   :  { %s4141_s30 = scalar_lea.hbm %s7508_s3, 4096 }
 0x8dc   :  { %p4142_p11 = scmp.ne.s32.totalorder %s7508_s3, %s4141_s30  ;;  %p4145_p12 = scmp.lt.u32.totalorder %s4141_s30, %s7508_s3 }
 0x8de   :  { %p4147_p13 = pnand %p4145_p12, %p4142_p11 }
 0x8e0   :  { %4150 = shalt.err (!%p4147_p13)
}
 0x8e1   :  { %3191 = dma.vmem_to_hbm [thread:$0]  %s3186_s26, 4096, %s7508_s3, [#allocation5], %s4422_s22, %s4422_s22, %s4423_s23  }
 0x8e2   :  { %4287 = dma.done.wait [#allocation5], 4096  }
 0x8e3   :  { %4288 = vsyncadd [#allocation5], 4294963200 }
 0x8e4   :  { %3195 = vsyncpa [#allocation4], 1 }
 0x8e5   :  { %3196 = vsyncpa [#allocation7], 1 }
 0x8e6   :  { %3197 = vsyncpa [#allocation5], 1 }

</bundles_post_ra>
